<compile_context>
chip_gen: v7x
topology: tpu7x:2x2x1
jax: 0.10.0
libtpu: 0.0.40
codegen_flags: <defaults>
</compile_context>

<pallas_src>
import functools

import jax
import jax.numpy as jnp
from jax import lax
from jax.experimental import pallas as pl
from jax.experimental.pallas import tpu as pltpu

LANES = 128  # pad all output-channel / feature dims to this -> lane-dense stores & dots


# ------------------------------ fused kernel -------------------------------- #

def _cnn_fused_kernel(x_col_ref, w1_ref, w2_ref, wfc1_ref, wfc2_ref, wfc3_ref,
                      shifts_ref, out_ref, p1pad_scr,
                      *, N, H, W, C1, C2, F1, F2):
    """Entire CNN forward in one VMEM-resident kernel invocation."""
    f32 = jnp.float32
    bf16 = jnp.bfloat16
    H2, W2 = H // 2, W // 2
    H4, W4 = H2 // 2, W2 // 2
    CP = LANES

    # ---- conv1: single K = 9*Cin contraction + folded-BN shift + ReLU --------
    z1 = jnp.dot(x_col_ref[...], w1_ref[...], preferred_element_type=f32)   # (N*H*W, CP)
    y1 = jnp.maximum(z1 + shifts_ref[0:1, :], 0.0).reshape(N, H, W, CP)

    # ---- pool1: vectorized 2x2 max (no per-pixel masked stores) --------------
    yh = y1.reshape(N, H2, 2, W, CP).max(axis=2)       # H-pool: major-dim split, free
    p1 = yh.reshape(N, H2, W2, 2, CP).max(axis=3)      # W-pool: sublane-pair reduce

    # ---- conv2 input: zero-padded scratch (one dense fill + one bulk store) --
    p1pad_scr[...] = jnp.zeros(p1pad_scr.shape, p1pad_scr.dtype)
    p1pad_scr[:, 1:H2 + 1, 1:W2 + 1, :] = p1

    # ---- conv2: 9 slim (K = C1) taps, strictly sequential accumulation -------
    acc2 = jnp.zeros((N * H2 * W2, CP), f32)
    for i in range(3):
        for j in range(3):
            win = p1pad_scr[:, i:i + H2, j:j + W2, :]                      # (N,H2,W2,CP)
            lhs = win.reshape(N * H2 * W2, CP)[:, :C1].astype(bf16)        # (N*H2*W2,C1)
            acc2 = acc2 + jnp.dot(lhs, w2_ref[i * 3 + j],
                                  preferred_element_type=f32)
    y2 = jnp.maximum(acc2 + shifts_ref[1:2, :], 0.0).reshape(N, H2, W2, CP)

    # ---- pool2: vectorized 2x2 max --------------------------------------------
    y2h = y2.reshape(N, H4, 2, W2, CP).max(axis=2)
    p2 = y2h.reshape(N, H4, W4, 2, CP).max(axis=3)                          # (N,H4,W4,CP)
    p2b = p2.astype(bf16)

    # ---- fc1: per-(h,w) slim (K = C2) blocks (NCHW flatten absorbed in weight) -
    accf = jnp.zeros((N, CP), f32)
    for h in range(H4):
        for w in range(W4):
            v = p2b[:, h, w, :C2]                                            # (N, C2)
            accf = accf + jnp.dot(v, wfc1_ref[h * W4 + w],
                                  preferred_element_type=f32)
    h1 = jnp.maximum(accf + shifts_ref[2:3, :], 0.0)

    # ---- fc2 / fc3 (fc*_drop: identity in eval mode) ---------------------------
    h2 = jnp.maximum(jnp.dot(h1[:, :F1].astype(bf16), wfc2_ref[...],
                             preferred_element_type=f32) + shifts_ref[3:4, :], 0.0)
    logits = jnp.dot(h2[:, :F2].astype(bf16), wfc3_ref[...],
                     preferred_element_type=f32) + shifts_ref[4:5, :]
    out_ref[...] = logits.astype(out_ref.dtype)


def cnn_forward(x_nchw, fp, *, num_classes):
    """PyTorch-style NCHW input -> logits, via the single fused Pallas kernel."""
    N, Cin, H, W = x_nchw.shape
    H2, W2 = H // 2, W // 2
    H4, W4 = H2 // 2, W2 // 2
    CP = LANES
    C1 = fp["w2"].shape[1]
    C2 = fp["wfc1"].shape[1]
    F1 = fp["wfc2"].shape[0]
    F2 = fp["wfc3"].shape[0]

    # NCHW -> NHWC, 'same' pad, and im2col for conv1.  This is layout plumbing only:
    # it presents a lane-dense (N*H*W, 9*Cin) LHS so conv1 is ONE K=9*Cin matmul
    # instead of 9 narrow-lane (Cin=4) relayout+matmul passes inside the kernel.
    x = jnp.transpose(x_nchw, (0, 2, 3, 1)).astype(jnp.float32)
    xp = jnp.pad(x, ((0, 0), (1, 1), (1, 1), (0, 0)))
    cols = [xp[:, i:i + H, j:j + W, :] for i in range(3) for j in range(3)]
    x_col = jnp.concatenate(cols, axis=-1).reshape(N * H * W, 9 * Cin)
    x_col = x_col.astype(jnp.bfloat16)

    args = (x_col, fp["w1"], fp["w2"], fp["wfc1"], fp["wfc2"], fp["wfc3"], fp["shifts"])
    bytes_accessed = sum(int(a.size) * a.dtype.itemsize for a in args) + N * CP * 4
    flops = 2 * CP * (N * H * W * 9 * Cin        # conv1
                      + N * H2 * W2 * 9 * C1     # conv2
                      + N * H4 * W4 * C2         # fc1
                      + N * F1 + N * F2)         # fc2, fc3

    kernel = functools.partial(_cnn_fused_kernel, N=N, H=H, W=W,
                               C1=C1, C2=C2, F1=F1, F2=F2)
    out = pl.pallas_call(
        kernel,
        out_shape=jax.ShapeDtypeStruct((N, CP), jnp.float32),
        grid=(1,),
        in_specs=[
            pl.BlockSpec(x_col.shape, lambda i: (0, 0)),
            pl.BlockSpec(fp["w1"].shape, lambda i: (0, 0)),
            pl.BlockSpec(fp["w2"].shape, lambda i: (0, 0, 0)),
            pl.BlockSpec(fp["wfc1"].shape, lambda i: (0, 0, 0)),
            pl.BlockSpec(fp["wfc2"].shape, lambda i: (0, 0)),
            pl.BlockSpec(fp["wfc3"].shape, lambda i: (0, 0)),
            pl.BlockSpec(fp["shifts"].shape, lambda i: (0, 0)),
        ],
        out_specs=pl.BlockSpec((N, CP), lambda i: (0, 0)),
        scratch_shapes=[
            pltpu.VMEM((N, H2 + 2, W2 + 2, CP), jnp.float32),   # zero-padded conv2 input
        ],
        compiler_params=pltpu.CompilerParams(
            dimension_semantics=("arbitrary",),
            # right-sized from 32 MiB; leaves headroom for relayout/spill buffers
            vmem_limit_bytes=8 * 1024 * 1024,
        ),
        cost_estimate=pl.CostEstimate(flops=flops, transcendentals=0,
                                      bytes_accessed=bytes_accessed),
    )(*args)
    return out[:, :num_classes]


# ------------------------------- parameters --------------------------------- #

def init_params(key, in_channels, img_size, hidden_channels, fc_dims, num_classes):
    """Raw (PyTorch-equivalent) parameters, including eval-mode BN stats/affine."""
    C1, C2 = hidden_channels
    F1, F2 = fc_dims
    H4 = W4 = img_size // 4
    flatten_size = C2 * H4 * W4
    ks = jax.random.split(key, 8)

    def kaiming_conv(k, cin, cout):                 # kaiming_normal_, mode='fan_out', relu
        std = (2.0 / (cout * 9)) ** 0.5
        return std * jax.random.normal(k, (3, 3, cin, cout), jnp.float32)   # HWIO

    def conv_bias(k, cin, cout):                    # PyTorch default conv bias init
        bound = 1.0 / ((cin * 9) ** 0.5)
        return jax.random.uniform(k, (cout,), jnp.float32, -bound, bound)

    def linear_w(k, fin, fout):                     # normal(0, 0.01), stored as (in, out)
        return 0.01 * jax.random.normal(k, (fin, fout), jnp.float32)

    def bn_init(c):                                 # gamma=1, beta=0, mean=0, var=1
        return dict(gamma=jnp.ones((c,), jnp.float32), beta=jnp.zeros((c,), jnp.float32),
                    mean=jnp.zeros((c,), jnp.float32), var=jnp.ones((c,), jnp.float32))

    return dict(
        w1=kaiming_conv(ks[0], in_channels, C1), b1=conv_bias(ks[1], in_channels, C1),
        bn1=bn_init(C1),
        w2=kaiming_conv(ks[2], C1, C2), b2=conv_bias(ks[3], C1, C2),
        bn2=bn_init(C2),
        wfc1=linear_w(ks[4], flatten_size, F1), bfc1=jnp.zeros((F1,), jnp.float32),
        bnfc1=bn_init(F1),
        wfc2=linear_w(ks[5], F1, F2), bfc2=jnp.zeros((F2,), jnp.float32),
        bnfc2=bn_init(F2),
        wfc3=linear_w(ks[6], F2, num_classes), bfc3=jnp.zeros((num_classes,), jnp.float32),
    )


def fuse_params(p, in_channels, img_size, hidden_channels, fc_dims, num_classes):
    """Fold BN (eval) per-channel scale/shift into weights, keep the contraction (K)
    dims slim (no zero-pad DMA), pad only output dims lane-dense (128), absorb the
    PyTorch NCHW flatten into per-spatial-position fc1 blocks, and cast to bf16."""
    eps = 1e-5
    C1, C2 = hidden_channels
    F1, F2 = fc_dims
    H4 = W4 = img_size // 4
    CP = LANES

    def bn_fold(w_io, b, bn):                       # per-output-channel fold
        scale = bn["gamma"] / jnp.sqrt(bn["var"] + eps)
        return w_io * scale, bn["beta"] + (b - bn["mean"]) * scale

    # conv1 -> one K = 9*Cin contraction: (9*Cin, 128)
    w1, s1 = bn_fold(p["w1"], p["b1"], p["bn1"])
    w1 = jnp.pad(w1.reshape(9 * in_channels, C1), ((0, 0), (0, CP - C1)))

    # conv2 -> 9 slim taps: (9, C1, 128)
    w2, s2 = bn_fold(p["w2"], p["b2"], p["bn2"])
    w2 = jnp.pad(w2.reshape(9, C1, C2), ((0, 0), (0, 0), (0, CP - C2)))

    # fc1: raw rows are in NCHW-flatten order c*H4*W4 + h*W4 + w; regroup as
    # per-(h, w) blocks of (channel, out) so the kernel contracts the NHWC feature.
    wf1, sf1 = bn_fold(p["wfc1"], p["bfc1"], p["bnfc1"])
    wf1 = wf1.reshape(C2, H4, W4, F1).transpose(1, 2, 0, 3).reshape(H4 * W4, C2, F1)
    wf1 = jnp.pad(wf1, ((0, 0), (0, 0), (0, CP - F1)))

    wf2, sf2 = bn_fold(p["wfc2"], p["bfc2"], p["bnfc2"])
    wf2 = jnp.pad(wf2, ((0, 0), (0, CP - F2)))

    wf3 = jnp.pad(p["wfc3"], ((0, 0), (0, CP - num_classes)))
    sf3 = p["bfc3"]

    def padv(v):
        return jnp.pad(v, (0, CP - v.shape[0]))

    shifts = jnp.stack([padv(s1), padv(s2), padv(sf1), padv(sf2), padv(sf3)], axis=0)

    bf16 = jnp.bfloat16
    return dict(w1=w1.astype(bf16), w2=w2.astype(bf16), wfc1=wf1.astype(bf16),
                wfc2=wf2.astype(bf16), wfc3=wf3.astype(bf16),
                shifts=shifts.astype(jnp.float32))


# ------------------------- pure-JAX reference check ------------------------- #

def reference_forward(x_nchw, p):
    eps = 1e-5
    x = jnp.transpose(x_nchw, (0, 2, 3, 1)).astype(jnp.float32)

    def bn(z, prm):
        scale = prm["gamma"] / jnp.sqrt(prm["var"] + eps)
        return (z - prm["mean"]) * scale + prm["beta"]

    def conv_block(x, w, b, bnp):
        y = lax.conv_general_dilated(x, w, (1, 1), "SAME",
                                     dimension_numbers=("NHWC", "HWIO", "NHWC"),
                                     precision=lax.Precision.HIGHEST)
        y = jnp.maximum(bn(y + b, bnp), 0.0)
        n, h, ww, c = y.shape
        return y.reshape(n, h // 2, 2, ww // 2, 2, c).max(axis=(2, 4))

    y = conv_block(x, p["w1"], p["b1"], p["bn1"])
    y = conv_block(y, p["w2"], p["b2"], p["bn2"])
    n = y.shape[0]
    feat = jnp.transpose(y, (0, 3, 1, 2)).reshape(n, -1)            # PyTorch NCHW flatten
    dot = lambda a, b: jnp.dot(a, b, precision=lax.Precision.HIGHEST)
    h1 = jnp.maximum(bn(dot(feat, p["wfc1"]) + p["bfc1"], p["bnfc1"]), 0.0)
    h2 = jnp.maximum(bn(dot(h1, p["wfc2"]) + p["bfc2"], p["bnfc2"]), 0.0)
    return dot(h2, p["wfc3"]) + p["bfc3"]


# ----------------------------------- main ------------------------------------ #

if __name__ == "__main__":
    # Small config consistent with the module: in_channels=4, img_size=16,
    # hidden_channels=(8, 16), fc_dims=(32, 16), num_classes=10.
    in_channels, img_size, num_classes = 4, 16, 10
    hidden_channels, fc_dims = (8, 16), (32, 16)

    key = jax.random.PRNGKey(0)
    kx, kp = jax.random.split(key)
    x = jax.random.normal(kx, (2, in_channels, img_size, img_size), jnp.float32)

    raw = init_params(kp, in_channels, img_size, hidden_channels, fc_dims, num_classes)
    fused = fuse_params(raw, in_channels, img_size, hidden_channels, fc_dims, num_classes)

    fwd = jax.jit(functools.partial(cnn_forward, num_classes=num_classes))
    logits = jax.block_until_ready(fwd(x, fused))

    ref = reference_forward(x, raw)
    assert logits.shape == (2, num_classes)
    assert jnp.allclose(logits, ref, atol=2e-3, rtol=2e-2), (
        f"mismatch: max abs diff {jnp.max(jnp.abs(logits - ref))}")

    print("KERNEL_OK")
</pallas_src>

<mosaic_0001>
module attributes {stable_mosaic.version = 11 : i64} {
  func.func @_cnn_fused_kernel(%arg0: i32, %arg1: memref<512x36xbf16, #tpu.memory_space<vmem>>, %arg2: memref<36x128xbf16, #tpu.memory_space<vmem>>, %arg3: memref<9x8x128xbf16, #tpu.memory_space<vmem>>, %arg4: memref<16x16x128xbf16, #tpu.memory_space<vmem>>, %arg5: memref<32x128xbf16, #tpu.memory_space<vmem>>, %arg6: memref<16x128xbf16, #tpu.memory_space<vmem>>, %arg7: memref<5x128xf32, #tpu.memory_space<vmem>>, %arg8: memref<2x128xf32, #tpu.memory_space<vmem>>, %arg9: memref<2x10x10x128xf32, #tpu.memory_space<vmem>>) attributes {dimension_semantics = [#tpu.dimension_semantics<arbitrary>], iteration_bounds = array<i64: 1>, scalar_prefetch = 0 : i64, scratch_operands = 1 : i64, tpu.core_type = #tpu.core_type<tc>, window_params = [{pipeline_mode = #tpu.pipeline_mode<synchronous>, transform_indices = @transform_0, window_bounds = array<i64: 512, 36>}, {pipeline_mode = #tpu.pipeline_mode<synchronous>, transform_indices = @transform_1, window_bounds = array<i64: 36, 128>}, {pipeline_mode = #tpu.pipeline_mode<synchronous>, transform_indices = @transform_2, window_bounds = array<i64: 9, 8, 128>}, {pipeline_mode = #tpu.pipeline_mode<synchronous>, transform_indices = @transform_3, window_bounds = array<i64: 16, 16, 128>}, {pipeline_mode = #tpu.pipeline_mode<synchronous>, transform_indices = @transform_4, window_bounds = array<i64: 32, 128>}, {pipeline_mode = #tpu.pipeline_mode<synchronous>, transform_indices = @transform_5, window_bounds = array<i64: 16, 128>}, {pipeline_mode = #tpu.pipeline_mode<synchronous>, transform_indices = @transform_6, window_bounds = array<i64: 5, 128>}, {pipeline_mode = #tpu.pipeline_mode<synchronous>, transform_indices = @transform_7, window_bounds = array<i64: 2, 128>}]} {
    %c0 = arith.constant 0 : index
    %c0_0 = arith.constant 0 : index
    %0 = vector.load %arg1[%c0, %c0_0] : memref<512x36xbf16, #tpu.memory_space<vmem>>, vector<512x36xbf16>
    %c0_1 = arith.constant 0 : index
    %c0_2 = arith.constant 0 : index
    %1 = vector.load %arg2[%c0_1, %c0_2] : memref<36x128xbf16, #tpu.memory_space<vmem>>, vector<36x128xbf16>
    %cst = arith.constant dense<0.000000e+00> : vector<512x128xf32>
    %2 = tpu.matmul %0, %1, %cst {dimension_numbers = #tpu.dot_dimension_numbers<[1], [0], [0], [1], [0, 0, 1, 1], [], []>} : vector<512x36xbf16>, vector<36x128xbf16>, vector<512x128xf32> -> vector<512x128xf32>
    %c0_3 = arith.constant 0 : index
    %c0_4 = arith.constant 0 : index
    %3 = vector.load %arg7[%c0_3, %c0_4] : memref<5x128xf32, #tpu.memory_space<vmem>>, vector<1x128xf32>
    %4 = vector.broadcast %3 : vector<1x128xf32> to vector<512x128xf32>
    %5 = arith.addf %2, %4 : vector<512x128xf32>
    %cst_5 = arith.constant 0.000000e+00 : f32
    %6 = vector.broadcast %cst_5 : f32 to vector<512x128xf32>
    %7 = arith.maximumf %5, %6 : vector<512x128xf32>
    %8 = vector.shape_cast %7 : vector<512x128xf32> to vector<2x16x16x128xf32>
    %9 = vector.shape_cast %8 : vector<2x16x16x128xf32> to vector<2x8x2x16x128xf32>
    %cst_6 = arith.constant dense<0xFF800000> : vector<2x8x16x128xf32>
    %10 = vector.multi_reduction <maximumf>, %9, %cst_6 [2] : vector<2x8x2x16x128xf32> to vector<2x8x16x128xf32>
    %11 = vector.shape_cast %10 : vector<2x8x16x128xf32> to vector<2x8x8x2x128xf32>
    %cst_7 = arith.constant dense<0xFF800000> : vector<2x8x8x128xf32>
    %12 = vector.multi_reduction <maximumf>, %11, %cst_7 [3] : vector<2x8x8x2x128xf32> to vector<2x8x8x128xf32>
    %cst_8 = arith.constant 0.000000e+00 : f32
    %13 = vector.broadcast %cst_8 : f32 to vector<2x10x10x128xf32>
    %c0_9 = arith.constant 0 : index
    %c0_10 = arith.constant 0 : index
    %c0_11 = arith.constant 0 : index
    %c0_12 = arith.constant 0 : index
    %14 = vector.load %arg9[%c0_9, %c0_10, %c0_11, %c0_12] : memref<2x10x10x128xf32, #tpu.memory_space<vmem>>, vector<2x10x10x128xf32>
    tpu.vector_store %arg9[%c0_9, %c0_10, %c0_11, %c0_12], %13 {strides = array<i32>} : memref<2x10x10x128xf32, #tpu.memory_space<vmem>>, vector<2x10x10x128xf32>,
    %c0_13 = arith.constant 0 : index
    %c1 = arith.constant 1 : index
    %c1_14 = arith.constant 1 : index
    %c0_15 = arith.constant 0 : index
    %15 = vector.load %arg9[%c0_13, %c1, %c1_14, %c0_15] : memref<2x10x10x128xf32, #tpu.memory_space<vmem>>, vector<2x8x8x128xf32>
    tpu.vector_store %arg9[%c0_13, %c1, %c1_14, %c0_15], %12 {strides = array<i32>} : memref<2x10x10x128xf32, #tpu.memory_space<vmem>>, vector<2x8x8x128xf32>,
    %cst_16 = arith.constant 0.000000e+00 : f32
    %16 = vector.broadcast %cst_16 : f32 to vector<128x128xf32>
    %c0_17 = arith.constant 0 : index
    %c0_18 = arith.constant 0 : index
    %c0_19 = arith.constant 0 : index
    %c0_20 = arith.constant 0 : index
    %17 = vector.load %arg9[%c0_17, %c0_18, %c0_19, %c0_20] : memref<2x10x10x128xf32, #tpu.memory_space<vmem>>, vector<2x8x8x128xf32>
    %18 = vector.shape_cast %17 : vector<2x8x8x128xf32> to vector<128x128xf32>
    %19 = vector.extract_strided_slice %18 {offsets = [0, 0], sizes = [128, 8], strides = [1, 1]} : vector<128x128xf32> to vector<128x8xf32>
    %20 = arith.truncf %19 : vector<128x8xf32> to vector<128x8xbf16>
    %c0_21 = arith.constant 0 : index
    %c0_22 = arith.constant 0 : index
    %c0_23 = arith.constant 0 : index
    %21 = vector.load %arg3[%c0_21, %c0_22, %c0_23] : memref<9x8x128xbf16, #tpu.memory_space<vmem>>, vector<1x8x128xbf16>
    %22 = vector.shape_cast %21 : vector<1x8x128xbf16> to vector<8x128xbf16>
    %cst_24 = arith.constant dense<0.000000e+00> : vector<128x128xf32>
    %23 = tpu.matmul %20, %22, %cst_24 {dimension_numbers = #tpu.dot_dimension_numbers<[1], [0], [0], [1], [0, 0, 1, 1], [], []>} : vector<128x8xbf16>, vector<8x128xbf16>, vector<128x128xf32> -> vector<128x128xf32>
    %24 = arith.addf %16, %23 : vector<128x128xf32>
    %c0_25 = arith.constant 0 : index
    %c0_26 = arith.constant 0 : index
    %c1_27 = arith.constant 1 : index
    %c0_28 = arith.constant 0 : index
    %25 = vector.load %arg9[%c0_25, %c0_26, %c1_27, %c0_28] : memref<2x10x10x128xf32, #tpu.memory_space<vmem>>, vector<2x8x8x128xf32>
    %26 = vector.shape_cast %25 : vector<2x8x8x128xf32> to vector<128x128xf32>
    %27 = vector.extract_strided_slice %26 {offsets = [0, 0], sizes = [128, 8], strides = [1, 1]} : vector<128x128xf32> to vector<128x8xf32>
    %28 = arith.truncf %27 : vector<128x8xf32> to vector<128x8xbf16>
    %c1_29 = arith.constant 1 : index
    %c0_30 = arith.constant 0 : index
    %c0_31 = arith.constant 0 : index
    %29 = vector.load %arg3[%c1_29, %c0_30, %c0_31] : memref<9x8x128xbf16, #tpu.memory_space<vmem>>, vector<1x8x128xbf16>
    %30 = vector.shape_cast %29 : vector<1x8x128xbf16> to vector<8x128xbf16>
    %cst_32 = arith.constant dense<0.000000e+00> : vector<128x128xf32>
    %31 = tpu.matmul %28, %30, %cst_32 {dimension_numbers = #tpu.dot_dimension_numbers<[1], [0], [0], [1], [0, 0, 1, 1], [], []>} : vector<128x8xbf16>, vector<8x128xbf16>, vector<128x128xf32> -> vector<128x128xf32>
    %32 = arith.addf %24, %31 : vector<128x128xf32>
    %c0_33 = arith.constant 0 : index
    %c0_34 = arith.constant 0 : index
    %c2 = arith.constant 2 : index
    %c0_35 = arith.constant 0 : index
    %33 = vector.load %arg9[%c0_33, %c0_34, %c2, %c0_35] : memref<2x10x10x128xf32, #tpu.memory_space<vmem>>, vector<2x8x8x128xf32>
    %34 = vector.shape_cast %33 : vector<2x8x8x128xf32> to vector<128x128xf32>
    %35 = vector.extract_strided_slice %34 {offsets = [0, 0], sizes = [128, 8], strides = [1, 1]} : vector<128x128xf32> to vector<128x8xf32>
    %36 = arith.truncf %35 : vector<128x8xf32> to vector<128x8xbf16>
    %c2_36 = arith.constant 2 : index
    %c0_37 = arith.constant 0 : index
    %c0_38 = arith.constant 0 : index
    %37 = vector.load %arg3[%c2_36, %c0_37, %c0_38] : memref<9x8x128xbf16, #tpu.memory_space<vmem>>, vector<1x8x128xbf16>
    %38 = vector.shape_cast %37 : vector<1x8x128xbf16> to vector<8x128xbf16>
    %cst_39 = arith.constant dense<0.000000e+00> : vector<128x128xf32>
    %39 = tpu.matmul %36, %38, %cst_39 {dimension_numbers = #tpu.dot_dimension_numbers<[1], [0], [0], [1], [0, 0, 1, 1], [], []>} : vector<128x8xbf16>, vector<8x128xbf16>, vector<128x128xf32> -> vector<128x128xf32>
    %40 = arith.addf %32, %39 : vector<128x128xf32>
    %c0_40 = arith.constant 0 : index
    %c1_41 = arith.constant 1 : index
    %c0_42 = arith.constant 0 : index
    %c0_43 = arith.constant 0 : index
    %41 = vector.load %arg9[%c0_40, %c1_41, %c0_42, %c0_43] : memref<2x10x10x128xf32, #tpu.memory_space<vmem>>, vector<2x8x8x128xf32>
    %42 = vector.shape_cast %41 : vector<2x8x8x128xf32> to vector<128x128xf32>
    %43 = vector.extract_strided_slice %42 {offsets = [0, 0], sizes = [128, 8], strides = [1, 1]} : vector<128x128xf32> to vector<128x8xf32>
    %44 = arith.truncf %43 : vector<128x8xf32> to vector<128x8xbf16>
    %c3 = arith.constant 3 : index
    %c0_44 = arith.constant 0 : index
    %c0_45 = arith.constant 0 : index
    %45 = vector.load %arg3[%c3, %c0_44, %c0_45] : memref<9x8x128xbf16, #tpu.memory_space<vmem>>, vector<1x8x128xbf16>
    %46 = vector.shape_cast %45 : vector<1x8x128xbf16> to vector<8x128xbf16>
    %cst_46 = arith.constant dense<0.000000e+00> : vector<128x128xf32>
    %47 = tpu.matmul %44, %46, %cst_46 {dimension_numbers = #tpu.dot_dimension_numbers<[1], [0], [0], [1], [0, 0, 1, 1], [], []>} : vector<128x8xbf16>, vector<8x128xbf16>, vector<128x128xf32> -> vector<128x128xf32>
    %48 = arith.addf %40, %47 : vector<128x128xf32>
    %c0_47 = arith.constant 0 : index
    %c1_48 = arith.constant 1 : index
    %c1_49 = arith.constant 1 : index
    %c0_50 = arith.constant 0 : index
    %49 = vector.load %arg9[%c0_47, %c1_48, %c1_49, %c0_50] : memref<2x10x10x128xf32, #tpu.memory_space<vmem>>, vector<2x8x8x128xf32>
    %50 = vector.shape_cast %49 : vector<2x8x8x128xf32> to vector<128x128xf32>
    %51 = vector.extract_strided_slice %50 {offsets = [0, 0], sizes = [128, 8], strides = [1, 1]} : vector<128x128xf32> to vector<128x8xf32>
    %52 = arith.truncf %51 : vector<128x8xf32> to vector<128x8xbf16>
    %c4 = arith.constant 4 : index
    %c0_51 = arith.constant 0 : index
    %c0_52 = arith.constant 0 : index
    %53 = vector.load %arg3[%c4, %c0_51, %c0_52] : memref<9x8x128xbf16, #tpu.memory_space<vmem>>, vector<1x8x128xbf16>
    %54 = vector.shape_cast %53 : vector<1x8x128xbf16> to vector<8x128xbf16>
    %cst_53 = arith.constant dense<0.000000e+00> : vector<128x128xf32>
    %55 = tpu.matmul %52, %54, %cst_53 {dimension_numbers = #tpu.dot_dimension_numbers<[1], [0], [0], [1], [0, 0, 1, 1], [], []>} : vector<128x8xbf16>, vector<8x128xbf16>, vector<128x128xf32> -> vector<128x128xf32>
    %56 = arith.addf %48, %55 : vector<128x128xf32>
    %c0_54 = arith.constant 0 : index
    %c1_55 = arith.constant 1 : index
    %c2_56 = arith.constant 2 : index
    %c0_57 = arith.constant 0 : index
    %57 = vector.load %arg9[%c0_54, %c1_55, %c2_56, %c0_57] : memref<2x10x10x128xf32, #tpu.memory_space<vmem>>, vector<2x8x8x128xf32>
    %58 = vector.shape_cast %57 : vector<2x8x8x128xf32> to vector<128x128xf32>
    %59 = vector.extract_strided_slice %58 {offsets = [0, 0], sizes = [128, 8], strides = [1, 1]} : vector<128x128xf32> to vector<128x8xf32>
    %60 = arith.truncf %59 : vector<128x8xf32> to vector<128x8xbf16>
    %c5 = arith.constant 5 : index
    %c0_58 = arith.constant 0 : index
    %c0_59 = arith.constant 0 : index
    %61 = vector.load %arg3[%c5, %c0_58, %c0_59] : memref<9x8x128xbf16, #tpu.memory_space<vmem>>, vector<1x8x128xbf16>
    %62 = vector.shape_cast %61 : vector<1x8x128xbf16> to vector<8x128xbf16>
    %cst_60 = arith.constant dense<0.000000e+00> : vector<128x128xf32>
    %63 = tpu.matmul %60, %62, %cst_60 {dimension_numbers = #tpu.dot_dimension_numbers<[1], [0], [0], [1], [0, 0, 1, 1], [], []>} : vector<128x8xbf16>, vector<8x128xbf16>, vector<128x128xf32> -> vector<128x128xf32>
    %64 = arith.addf %56, %63 : vector<128x128xf32>
    %c0_61 = arith.constant 0 : index
    %c2_62 = arith.constant 2 : index
    %c0_63 = arith.constant 0 : index
    %c0_64 = arith.constant 0 : index
    %65 = vector.load %arg9[%c0_61, %c2_62, %c0_63, %c0_64] : memref<2x10x10x128xf32, #tpu.memory_space<vmem>>, vector<2x8x8x128xf32>
    %66 = vector.shape_cast %65 : vector<2x8x8x128xf32> to vector<128x128xf32>
    %67 = vector.extract_strided_slice %66 {offsets = [0, 0], sizes = [128, 8], strides = [1, 1]} : vector<128x128xf32> to vector<128x8xf32>
    %68 = arith.truncf %67 : vector<128x8xf32> to vector<128x8xbf16>
    %c6 = arith.constant 6 : index
    %c0_65 = arith.constant 0 : index
    %c0_66 = arith.constant 0 : index
    %69 = vector.load %arg3[%c6, %c0_65, %c0_66] : memref<9x8x128xbf16, #tpu.memory_space<vmem>>, vector<1x8x128xbf16>
    %70 = vector.shape_cast %69 : vector<1x8x128xbf16> to vector<8x128xbf16>
    %cst_67 = arith.constant dense<0.000000e+00> : vector<128x128xf32>
    %71 = tpu.matmul %68, %70, %cst_67 {dimension_numbers = #tpu.dot_dimension_numbers<[1], [0], [0], [1], [0, 0, 1, 1], [], []>} : vector<128x8xbf16>, vector<8x128xbf16>, vector<128x128xf32> -> vector<128x128xf32>
    %72 = arith.addf %64, %71 : vector<128x128xf32>
    %c0_68 = arith.constant 0 : index
    %c2_69 = arith.constant 2 : index
    %c1_70 = arith.constant 1 : index
    %c0_71 = arith.constant 0 : index
    %73 = vector.load %arg9[%c0_68, %c2_69, %c1_70, %c0_71] : memref<2x10x10x128xf32, #tpu.memory_space<vmem>>, vector<2x8x8x128xf32>
    %74 = vector.shape_cast %73 : vector<2x8x8x128xf32> to vector<128x128xf32>
    %75 = vector.extract_strided_slice %74 {offsets = [0, 0], sizes = [128, 8], strides = [1, 1]} : vector<128x128xf32> to vector<128x8xf32>
    %76 = arith.truncf %75 : vector<128x8xf32> to vector<128x8xbf16>
    %c7 = arith.constant 7 : index
    %c0_72 = arith.constant 0 : index
    %c0_73 = arith.constant 0 : index
    %77 = vector.load %arg3[%c7, %c0_72, %c0_73] : memref<9x8x128xbf16, #tpu.memory_space<vmem>>, vector<1x8x128xbf16>
    %78 = vector.shape_cast %77 : vector<1x8x128xbf16> to vector<8x128xbf16>
    %cst_74 = arith.constant dense<0.000000e+00> : vector<128x128xf32>
    %79 = tpu.matmul %76, %78, %cst_74 {dimension_numbers = #tpu.dot_dimension_numbers<[1], [0], [0], [1], [0, 0, 1, 1], [], []>} : vector<128x8xbf16>, vector<8x128xbf16>, vector<128x128xf32> -> vector<128x128xf32>
    %80 = arith.addf %72, %79 : vector<128x128xf32>
    %c0_75 = arith.constant 0 : index
    %c2_76 = arith.constant 2 : index
    %c2_77 = arith.constant 2 : index
    %c0_78 = arith.constant 0 : index
    %81 = vector.load %arg9[%c0_75, %c2_76, %c2_77, %c0_78] : memref<2x10x10x128xf32, #tpu.memory_space<vmem>>, vector<2x8x8x128xf32>
    %82 = vector.shape_cast %81 : vector<2x8x8x128xf32> to vector<128x128xf32>
    %83 = vector.extract_strided_slice %82 {offsets = [0, 0], sizes = [128, 8], strides = [1, 1]} : vector<128x128xf32> to vector<128x8xf32>
    %84 = arith.truncf %83 : vector<128x8xf32> to vector<128x8xbf16>
    %c8 = arith.constant 8 : index
    %c0_79 = arith.constant 0 : index
    %c0_80 = arith.constant 0 : index
    %85 = vector.load %arg3[%c8, %c0_79, %c0_80] : memref<9x8x128xbf16, #tpu.memory_space<vmem>>, vector<1x8x128xbf16>
    %86 = vector.shape_cast %85 : vector<1x8x128xbf16> to vector<8x128xbf16>
    %cst_81 = arith.constant dense<0.000000e+00> : vector<128x128xf32>
    %87 = tpu.matmul %84, %86, %cst_81 {dimension_numbers = #tpu.dot_dimension_numbers<[1], [0], [0], [1], [0, 0, 1, 1], [], []>} : vector<128x8xbf16>, vector<8x128xbf16>, vector<128x128xf32> -> vector<128x128xf32>
    %88 = arith.addf %80, %87 : vector<128x128xf32>
    %c1_82 = arith.constant 1 : index
    %c0_83 = arith.constant 0 : index
    %89 = vector.load %arg7[%c1_82, %c0_83] : memref<5x128xf32, #tpu.memory_space<vmem>>, vector<1x128xf32>
    %90 = vector.broadcast %89 : vector<1x128xf32> to vector<128x128xf32>
    %91 = arith.addf %88, %90 : vector<128x128xf32>
    %cst_84 = arith.constant 0.000000e+00 : f32
    %92 = vector.broadcast %cst_84 : f32 to vector<128x128xf32>
    %93 = arith.maximumf %91, %92 : vector<128x128xf32>
    %94 = vector.shape_cast %93 : vector<128x128xf32> to vector<2x8x8x128xf32>
    %95 = vector.shape_cast %94 : vector<2x8x8x128xf32> to vector<2x4x2x8x128xf32>
    %cst_85 = arith.constant dense<0xFF800000> : vector<2x4x8x128xf32>
    %96 = vector.multi_reduction <maximumf>, %95, %cst_85 [2] : vector<2x4x2x8x128xf32> to vector<2x4x8x128xf32>
    %97 = vector.shape_cast %96 : vector<2x4x8x128xf32> to vector<2x4x4x2x128xf32>
    %cst_86 = arith.constant dense<0xFF800000> : vector<2x4x4x128xf32>
    %98 = vector.multi_reduction <maximumf>, %97, %cst_86 [3] : vector<2x4x4x2x128xf32> to vector<2x4x4x128xf32>
    %99 = arith.truncf %98 : vector<2x4x4x128xf32> to vector<2x4x4x128xbf16>
    %cst_87 = arith.constant 0.000000e+00 : f32
    %100 = vector.broadcast %cst_87 : f32 to vector<2x128xf32>
    %101 = vector.extract_strided_slice %99 {offsets = [0, 0, 0, 0], sizes = [2, 1, 1, 16], strides = [1, 1, 1, 1]} : vector<2x4x4x128xbf16> to vector<2x1x1x16xbf16>
    %102 = vector.shape_cast %101 : vector<2x1x1x16xbf16> to vector<2x16xbf16>
    %c0_88 = arith.constant 0 : index
    %c0_89 = arith.constant 0 : index
    %c0_90 = arith.constant 0 : index
    %103 = vector.load %arg4[%c0_88, %c0_89, %c0_90] : memref<16x16x128xbf16, #tpu.memory_space<vmem>>, vector<1x16x128xbf16>
    %104 = vector.shape_cast %103 : vector<1x16x128xbf16> to vector<16x128xbf16>
    %cst_91 = arith.constant dense<0.000000e+00> : vector<2x128xf32>
    %105 = tpu.matmul %102, %104, %cst_91 {dimension_numbers = #tpu.dot_dimension_numbers<[1], [0], [0], [1], [0, 0, 1, 1], [], []>} : vector<2x16xbf16>, vector<16x128xbf16>, vector<2x128xf32> -> vector<2x128xf32>
    %106 = arith.addf %100, %105 : vector<2x128xf32>
    %107 = vector.extract_strided_slice %99 {offsets = [0, 0, 1, 0], sizes = [2, 1, 1, 16], strides = [1, 1, 1, 1]} : vector<2x4x4x128xbf16> to vector<2x1x1x16xbf16>
    %108 = vector.shape_cast %107 : vector<2x1x1x16xbf16> to vector<2x16xbf16>
    %c1_92 = arith.constant 1 : index
    %c0_93 = arith.constant 0 : index
    %c0_94 = arith.constant 0 : index
    %109 = vector.load %arg4[%c1_92, %c0_93, %c0_94] : memref<16x16x128xbf16, #tpu.memory_space<vmem>>, vector<1x16x128xbf16>
    %110 = vector.shape_cast %109 : vector<1x16x128xbf16> to vector<16x128xbf16>
    %cst_95 = arith.constant dense<0.000000e+00> : vector<2x128xf32>
    %111 = tpu.matmul %108, %110, %cst_95 {dimension_numbers = #tpu.dot_dimension_numbers<[1], [0], [0], [1], [0, 0, 1, 1], [], []>} : vector<2x16xbf16>, vector<16x128xbf16>, vector<2x128xf32> -> vector<2x128xf32>
    %112 = arith.addf %106, %111 : vector<2x128xf32>
    %113 = vector.extract_strided_slice %99 {offsets = [0, 0, 2, 0], sizes = [2, 1, 1, 16], strides = [1, 1, 1, 1]} : vector<2x4x4x128xbf16> to vector<2x1x1x16xbf16>
    %114 = vector.shape_cast %113 : vector<2x1x1x16xbf16> to vector<2x16xbf16>
    %c2_96 = arith.constant 2 : index
    %c0_97 = arith.constant 0 : index
    %c0_98 = arith.constant 0 : index
    %115 = vector.load %arg4[%c2_96, %c0_97, %c0_98] : memref<16x16x128xbf16, #tpu.memory_space<vmem>>, vector<1x16x128xbf16>
    %116 = vector.shape_cast %115 : vector<1x16x128xbf16> to vector<16x128xbf16>
    %cst_99 = arith.constant dense<0.000000e+00> : vector<2x128xf32>
    %117 = tpu.matmul %114, %116, %cst_99 {dimension_numbers = #tpu.dot_dimension_numbers<[1], [0], [0], [1], [0, 0, 1, 1], [], []>} : vector<2x16xbf16>, vector<16x128xbf16>, vector<2x128xf32> -> vector<2x128xf32>
    %118 = arith.addf %112, %117 : vector<2x128xf32>
    %119 = vector.extract_strided_slice %99 {offsets = [0, 0, 3, 0], sizes = [2, 1, 1, 16], strides = [1, 1, 1, 1]} : vector<2x4x4x128xbf16> to vector<2x1x1x16xbf16>
    %120 = vector.shape_cast %119 : vector<2x1x1x16xbf16> to vector<2x16xbf16>
    %c3_100 = arith.constant 3 : index
    %c0_101 = arith.constant 0 : index
    %c0_102 = arith.constant 0 : index
    %121 = vector.load %arg4[%c3_100, %c0_101, %c0_102] : memref<16x16x128xbf16, #tpu.memory_space<vmem>>, vector<1x16x128xbf16>
    %122 = vector.shape_cast %121 : vector<1x16x128xbf16> to vector<16x128xbf16>
    %cst_103 = arith.constant dense<0.000000e+00> : vector<2x128xf32>
    %123 = tpu.matmul %120, %122, %cst_103 {dimension_numbers = #tpu.dot_dimension_numbers<[1], [0], [0], [1], [0, 0, 1, 1], [], []>} : vector<2x16xbf16>, vector<16x128xbf16>, vector<2x128xf32> -> vector<2x128xf32>
    %124 = arith.addf %118, %123 : vector<2x128xf32>
    %125 = vector.extract_strided_slice %99 {offsets = [0, 1, 0, 0], sizes = [2, 1, 1, 16], strides = [1, 1, 1, 1]} : vector<2x4x4x128xbf16> to vector<2x1x1x16xbf16>
    %126 = vector.shape_cast %125 : vector<2x1x1x16xbf16> to vector<2x16xbf16>
    %c4_104 = arith.constant 4 : index
    %c0_105 = arith.constant 0 : index
    %c0_106 = arith.constant 0 : index
    %127 = vector.load %arg4[%c4_104, %c0_105, %c0_106] : memref<16x16x128xbf16, #tpu.memory_space<vmem>>, vector<1x16x128xbf16>
    %128 = vector.shape_cast %127 : vector<1x16x128xbf16> to vector<16x128xbf16>
    %cst_107 = arith.constant dense<0.000000e+00> : vector<2x128xf32>
    %129 = tpu.matmul %126, %128, %cst_107 {dimension_numbers = #tpu.dot_dimension_numbers<[1], [0], [0], [1], [0, 0, 1, 1], [], []>} : vector<2x16xbf16>, vector<16x128xbf16>, vector<2x128xf32> -> vector<2x128xf32>
    %130 = arith.addf %124, %129 : vector<2x128xf32>
    %131 = vector.extract_strided_slice %99 {offsets = [0, 1, 1, 0], sizes = [2, 1, 1, 16], strides = [1, 1, 1, 1]} : vector<2x4x4x128xbf16> to vector<2x1x1x16xbf16>
    %132 = vector.shape_cast %131 : vector<2x1x1x16xbf16> to vector<2x16xbf16>
    %c5_108 = arith.constant 5 : index
    %c0_109 = arith.constant 0 : index
    %c0_110 = arith.constant 0 : index
    %133 = vector.load %arg4[%c5_108, %c0_109, %c0_110] : memref<16x16x128xbf16, #tpu.memory_space<vmem>>, vector<1x16x128xbf16>
    %134 = vector.shape_cast %133 : vector<1x16x128xbf16> to vector<16x128xbf16>
    %cst_111 = arith.constant dense<0.000000e+00> : vector<2x128xf32>
    %135 = tpu.matmul %132, %134, %cst_111 {dimension_numbers = #tpu.dot_dimension_numbers<[1], [0], [0], [1], [0, 0, 1, 1], [], []>} : vector<2x16xbf16>, vector<16x128xbf16>, vector<2x128xf32> -> vector<2x128xf32>
    %136 = arith.addf %130, %135 : vector<2x128xf32>
    %137 = vector.extract_strided_slice %99 {offsets = [0, 1, 2, 0], sizes = [2, 1, 1, 16], strides = [1, 1, 1, 1]} : vector<2x4x4x128xbf16> to vector<2x1x1x16xbf16>
    %138 = vector.shape_cast %137 : vector<2x1x1x16xbf16> to vector<2x16xbf16>
    %c6_112 = arith.constant 6 : index
    %c0_113 = arith.constant 0 : index
    %c0_114 = arith.constant 0 : index
    %139 = vector.load %arg4[%c6_112, %c0_113, %c0_114] : memref<16x16x128xbf16, #tpu.memory_space<vmem>>, vector<1x16x128xbf16>
    %140 = vector.shape_cast %139 : vector<1x16x128xbf16> to vector<16x128xbf16>
    %cst_115 = arith.constant dense<0.000000e+00> : vector<2x128xf32>
    %141 = tpu.matmul %138, %140, %cst_115 {dimension_numbers = #tpu.dot_dimension_numbers<[1], [0], [0], [1], [0, 0, 1, 1], [], []>} : vector<2x16xbf16>, vector<16x128xbf16>, vector<2x128xf32> -> vector<2x128xf32>
    %142 = arith.addf %136, %141 : vector<2x128xf32>
    %143 = vector.extract_strided_slice %99 {offsets = [0, 1, 3, 0], sizes = [2, 1, 1, 16], strides = [1, 1, 1, 1]} : vector<2x4x4x128xbf16> to vector<2x1x1x16xbf16>
    %144 = vector.shape_cast %143 : vector<2x1x1x16xbf16> to vector<2x16xbf16>
    %c7_116 = arith.constant 7 : index
    %c0_117 = arith.constant 0 : index
    %c0_118 = arith.constant 0 : index
    %145 = vector.load %arg4[%c7_116, %c0_117, %c0_118] : memref<16x16x128xbf16, #tpu.memory_space<vmem>>, vector<1x16x128xbf16>
    %146 = vector.shape_cast %145 : vector<1x16x128xbf16> to vector<16x128xbf16>
    %cst_119 = arith.constant dense<0.000000e+00> : vector<2x128xf32>
    %147 = tpu.matmul %144, %146, %cst_119 {dimension_numbers = #tpu.dot_dimension_numbers<[1], [0], [0], [1], [0, 0, 1, 1], [], []>} : vector<2x16xbf16>, vector<16x128xbf16>, vector<2x128xf32> -> vector<2x128xf32>
    %148 = arith.addf %142, %147 : vector<2x128xf32>
    %149 = vector.extract_strided_slice %99 {offsets = [0, 2, 0, 0], sizes = [2, 1, 1, 16], strides = [1, 1, 1, 1]} : vector<2x4x4x128xbf16> to vector<2x1x1x16xbf16>
    %150 = vector.shape_cast %149 : vector<2x1x1x16xbf16> to vector<2x16xbf16>
    %c8_120 = arith.constant 8 : index
    %c0_121 = arith.constant 0 : index
    %c0_122 = arith.constant 0 : index
    %151 = vector.load %arg4[%c8_120, %c0_121, %c0_122] : memref<16x16x128xbf16, #tpu.memory_space<vmem>>, vector<1x16x128xbf16>
    %152 = vector.shape_cast %151 : vector<1x16x128xbf16> to vector<16x128xbf16>
    %cst_123 = arith.constant dense<0.000000e+00> : vector<2x128xf32>
    %153 = tpu.matmul %150, %152, %cst_123 {dimension_numbers = #tpu.dot_dimension_numbers<[1], [0], [0], [1], [0, 0, 1, 1], [], []>} : vector<2x16xbf16>, vector<16x128xbf16>, vector<2x128xf32> -> vector<2x128xf32>
    %154 = arith.addf %148, %153 : vector<2x128xf32>
    %155 = vector.extract_strided_slice %99 {offsets = [0, 2, 1, 0], sizes = [2, 1, 1, 16], strides = [1, 1, 1, 1]} : vector<2x4x4x128xbf16> to vector<2x1x1x16xbf16>
    %156 = vector.shape_cast %155 : vector<2x1x1x16xbf16> to vector<2x16xbf16>
    %c9 = arith.constant 9 : index
    %c0_124 = arith.constant 0 : index
    %c0_125 = arith.constant 0 : index
    %157 = vector.load %arg4[%c9, %c0_124, %c0_125] : memref<16x16x128xbf16, #tpu.memory_space<vmem>>, vector<1x16x128xbf16>
    %158 = vector.shape_cast %157 : vector<1x16x128xbf16> to vector<16x128xbf16>
    %cst_126 = arith.constant dense<0.000000e+00> : vector<2x128xf32>
    %159 = tpu.matmul %156, %158, %cst_126 {dimension_numbers = #tpu.dot_dimension_numbers<[1], [0], [0], [1], [0, 0, 1, 1], [], []>} : vector<2x16xbf16>, vector<16x128xbf16>, vector<2x128xf32> -> vector<2x128xf32>
    %160 = arith.addf %154, %159 : vector<2x128xf32>
    %161 = vector.extract_strided_slice %99 {offsets = [0, 2, 2, 0], sizes = [2, 1, 1, 16], strides = [1, 1, 1, 1]} : vector<2x4x4x128xbf16> to vector<2x1x1x16xbf16>
    %162 = vector.shape_cast %161 : vector<2x1x1x16xbf16> to vector<2x16xbf16>
    %c10 = arith.constant 10 : index
    %c0_127 = arith.constant 0 : index
    %c0_128 = arith.constant 0 : index
    %163 = vector.load %arg4[%c10, %c0_127, %c0_128] : memref<16x16x128xbf16, #tpu.memory_space<vmem>>, vector<1x16x128xbf16>
    %164 = vector.shape_cast %163 : vector<1x16x128xbf16> to vector<16x128xbf16>
    %cst_129 = arith.constant dense<0.000000e+00> : vector<2x128xf32>
    %165 = tpu.matmul %162, %164, %cst_129 {dimension_numbers = #tpu.dot_dimension_numbers<[1], [0], [0], [1], [0, 0, 1, 1], [], []>} : vector<2x16xbf16>, vector<16x128xbf16>, vector<2x128xf32> -> vector<2x128xf32>
    %166 = arith.addf %160, %165 : vector<2x128xf32>
    %167 = vector.extract_strided_slice %99 {offsets = [0, 2, 3, 0], sizes = [2, 1, 1, 16], strides = [1, 1, 1, 1]} : vector<2x4x4x128xbf16> to vector<2x1x1x16xbf16>
    %168 = vector.shape_cast %167 : vector<2x1x1x16xbf16> to vector<2x16xbf16>
    %c11 = arith.constant 11 : index
    %c0_130 = arith.constant 0 : index
    %c0_131 = arith.constant 0 : index
    %169 = vector.load %arg4[%c11, %c0_130, %c0_131] : memref<16x16x128xbf16, #tpu.memory_space<vmem>>, vector<1x16x128xbf16>
    %170 = vector.shape_cast %169 : vector<1x16x128xbf16> to vector<16x128xbf16>
    %cst_132 = arith.constant dense<0.000000e+00> : vector<2x128xf32>
    %171 = tpu.matmul %168, %170, %cst_132 {dimension_numbers = #tpu.dot_dimension_numbers<[1], [0], [0], [1], [0, 0, 1, 1], [], []>} : vector<2x16xbf16>, vector<16x128xbf16>, vector<2x128xf32> -> vector<2x128xf32>
    %172 = arith.addf %166, %171 : vector<2x128xf32>
    %173 = vector.extract_strided_slice %99 {offsets = [0, 3, 0, 0], sizes = [2, 1, 1, 16], strides = [1, 1, 1, 1]} : vector<2x4x4x128xbf16> to vector<2x1x1x16xbf16>
    %174 = vector.shape_cast %173 : vector<2x1x1x16xbf16> to vector<2x16xbf16>
    %c12 = arith.constant 12 : index
    %c0_133 = arith.constant 0 : index
    %c0_134 = arith.constant 0 : index
    %175 = vector.load %arg4[%c12, %c0_133, %c0_134] : memref<16x16x128xbf16, #tpu.memory_space<vmem>>, vector<1x16x128xbf16>
    %176 = vector.shape_cast %175 : vector<1x16x128xbf16> to vector<16x128xbf16>
    %cst_135 = arith.constant dense<0.000000e+00> : vector<2x128xf32>
    %177 = tpu.matmul %174, %176, %cst_135 {dimension_numbers = #tpu.dot_dimension_numbers<[1], [0], [0], [1], [0, 0, 1, 1], [], []>} : vector<2x16xbf16>, vector<16x128xbf16>, vector<2x128xf32> -> vector<2x128xf32>
    %178 = arith.addf %172, %177 : vector<2x128xf32>
    %179 = vector.extract_strided_slice %99 {offsets = [0, 3, 1, 0], sizes = [2, 1, 1, 16], strides = [1, 1, 1, 1]} : vector<2x4x4x128xbf16> to vector<2x1x1x16xbf16>
    %180 = vector.shape_cast %179 : vector<2x1x1x16xbf16> to vector<2x16xbf16>
    %c13 = arith.constant 13 : index
    %c0_136 = arith.constant 0 : index
    %c0_137 = arith.constant 0 : index
    %181 = vector.load %arg4[%c13, %c0_136, %c0_137] : memref<16x16x128xbf16, #tpu.memory_space<vmem>>, vector<1x16x128xbf16>
    %182 = vector.shape_cast %181 : vector<1x16x128xbf16> to vector<16x128xbf16>
    %cst_138 = arith.constant dense<0.000000e+00> : vector<2x128xf32>
    %183 = tpu.matmul %180, %182, %cst_138 {dimension_numbers = #tpu.dot_dimension_numbers<[1], [0], [0], [1], [0, 0, 1, 1], [], []>} : vector<2x16xbf16>, vector<16x128xbf16>, vector<2x128xf32> -> vector<2x128xf32>
    %184 = arith.addf %178, %183 : vector<2x128xf32>
    %185 = vector.extract_strided_slice %99 {offsets = [0, 3, 2, 0], sizes = [2, 1, 1, 16], strides = [1, 1, 1, 1]} : vector<2x4x4x128xbf16> to vector<2x1x1x16xbf16>
    %186 = vector.shape_cast %185 : vector<2x1x1x16xbf16> to vector<2x16xbf16>
    %c14 = arith.constant 14 : index
    %c0_139 = arith.constant 0 : index
    %c0_140 = arith.constant 0 : index
    %187 = vector.load %arg4[%c14, %c0_139, %c0_140] : memref<16x16x128xbf16, #tpu.memory_space<vmem>>, vector<1x16x128xbf16>
    %188 = vector.shape_cast %187 : vector<1x16x128xbf16> to vector<16x128xbf16>
    %cst_141 = arith.constant dense<0.000000e+00> : vector<2x128xf32>
    %189 = tpu.matmul %186, %188, %cst_141 {dimension_numbers = #tpu.dot_dimension_numbers<[1], [0], [0], [1], [0, 0, 1, 1], [], []>} : vector<2x16xbf16>, vector<16x128xbf16>, vector<2x128xf32> -> vector<2x128xf32>
    %190 = arith.addf %184, %189 : vector<2x128xf32>
    %191 = vector.extract_strided_slice %99 {offsets = [0, 3, 3, 0], sizes = [2, 1, 1, 16], strides = [1, 1, 1, 1]} : vector<2x4x4x128xbf16> to vector<2x1x1x16xbf16>
    %192 = vector.shape_cast %191 : vector<2x1x1x16xbf16> to vector<2x16xbf16>
    %c15 = arith.constant 15 : index
    %c0_142 = arith.constant 0 : index
    %c0_143 = arith.constant 0 : index
    %193 = vector.load %arg4[%c15, %c0_142, %c0_143] : memref<16x16x128xbf16, #tpu.memory_space<vmem>>, vector<1x16x128xbf16>
    %194 = vector.shape_cast %193 : vector<1x16x128xbf16> to vector<16x128xbf16>
    %cst_144 = arith.constant dense<0.000000e+00> : vector<2x128xf32>
    %195 = tpu.matmul %192, %194, %cst_144 {dimension_numbers = #tpu.dot_dimension_numbers<[1], [0], [0], [1], [0, 0, 1, 1], [], []>} : vector<2x16xbf16>, vector<16x128xbf16>, vector<2x128xf32> -> vector<2x128xf32>
    %196 = arith.addf %190, %195 : vector<2x128xf32>
    %c2_145 = arith.constant 2 : index
    %c0_146 = arith.constant 0 : index
    %197 = vector.load %arg7[%c2_145, %c0_146] : memref<5x128xf32, #tpu.memory_space<vmem>>, vector<1x128xf32>
    %198 = vector.broadcast %197 : vector<1x128xf32> to vector<2x128xf32>
    %199 = arith.addf %196, %198 : vector<2x128xf32>
    %cst_147 = arith.constant 0.000000e+00 : f32
    %200 = vector.broadcast %cst_147 : f32 to vector<2x128xf32>
    %201 = arith.maximumf %199, %200 : vector<2x128xf32>
    %202 = vector.extract_strided_slice %201 {offsets = [0, 0], sizes = [2, 32], strides = [1, 1]} : vector<2x128xf32> to vector<2x32xf32>
    %203 = arith.truncf %202 : vector<2x32xf32> to vector<2x32xbf16>
    %c0_148 = arith.constant 0 : index
    %c0_149 = arith.constant 0 : index
    %204 = vector.load %arg5[%c0_148, %c0_149] : memref<32x128xbf16, #tpu.memory_space<vmem>>, vector<32x128xbf16>
    %cst_150 = arith.constant dense<0.000000e+00> : vector<2x128xf32>
    %205 = tpu.matmul %203, %204, %cst_150 {dimension_numbers = #tpu.dot_dimension_numbers<[1], [0], [0], [1], [0, 0, 1, 1], [], []>} : vector<2x32xbf16>, vector<32x128xbf16>, vector<2x128xf32> -> vector<2x128xf32>
    %c3_151 = arith.constant 3 : index
    %c0_152 = arith.constant 0 : index
    %206 = vector.load %arg7[%c3_151, %c0_152] : memref<5x128xf32, #tpu.memory_space<vmem>>, vector<1x128xf32>
    %207 = vector.broadcast %206 : vector<1x128xf32> to vector<2x128xf32>
    %208 = arith.addf %205, %207 : vector<2x128xf32>
    %cst_153 = arith.constant 0.000000e+00 : f32
    %209 = vector.broadcast %cst_153 : f32 to vector<2x128xf32>
    %210 = arith.maximumf %208, %209 : vector<2x128xf32>
    %211 = vector.extract_strided_slice %210 {offsets = [0, 0], sizes = [2, 16], strides = [1, 1]} : vector<2x128xf32> to vector<2x16xf32>
    %212 = arith.truncf %211 : vector<2x16xf32> to vector<2x16xbf16>
    %c0_154 = arith.constant 0 : index
    %c0_155 = arith.constant 0 : index
    %213 = vector.load %arg6[%c0_154, %c0_155] : memref<16x128xbf16, #tpu.memory_space<vmem>>, vector<16x128xbf16>
    %cst_156 = arith.constant dense<0.000000e+00> : vector<2x128xf32>
    %214 = tpu.matmul %212, %213, %cst_156 {dimension_numbers = #tpu.dot_dimension_numbers<[1], [0], [0], [1], [0, 0, 1, 1], [], []>} : vector<2x16xbf16>, vector<16x128xbf16>, vector<2x128xf32> -> vector<2x128xf32>
    %c4_157 = arith.constant 4 : index
    %c0_158 = arith.constant 0 : index
    %215 = vector.load %arg7[%c4_157, %c0_158] : memref<5x128xf32, #tpu.memory_space<vmem>>, vector<1x128xf32>
    %216 = vector.broadcast %215 : vector<1x128xf32> to vector<2x128xf32>
    %217 = arith.addf %214, %216 : vector<2x128xf32>
    %c0_159 = arith.constant 0 : index
    %c0_160 = arith.constant 0 : index
    %218 = vector.load %arg8[%c0_159, %c0_160] : memref<2x128xf32, #tpu.memory_space<vmem>>, vector<2x128xf32>
    tpu.vector_store %arg8[%c0_159, %c0_160], %217 {strides = array<i32>} : memref<2x128xf32, #tpu.memory_space<vmem>>, vector<2x128xf32>,
    return
  }
  func.func @transform_0(%arg0: i32) -> (i32, i32) {
    %c0_i32 = arith.constant 0 : i32
    %c0_i32_0 = arith.constant 0 : i32
    %c0_i32_1 = arith.constant 0 : i32
    return %c0_i32, %c0_i32_0 : i32, i32
  }
  func.func @transform_1(%arg0: i32) -> (i32, i32) {
    %c0_i32 = arith.constant 0 : i32
    %c0_i32_0 = arith.constant 0 : i32
    %c0_i32_1 = arith.constant 0 : i32
    return %c0_i32, %c0_i32_0 : i32, i32
  }
  func.func @transform_2(%arg0: i32) -> (i32, i32, i32) {
    %c0_i32 = arith.constant 0 : i32
    %c0_i32_0 = arith.constant 0 : i32
    %c0_i32_1 = arith.constant 0 : i32
    %c0_i32_2 = arith.constant 0 : i32
    return %c0_i32, %c0_i32_0, %c0_i32_1 : i32, i32, i32
  }
  func.func @transform_3(%arg0: i32) -> (i32, i32, i32) {
    %c0_i32 = arith.constant 0 : i32
    %c0_i32_0 = arith.constant 0 : i32
    %c0_i32_1 = arith.constant 0 : i32
    %c0_i32_2 = arith.constant 0 : i32
    return %c0_i32, %c0_i32_0, %c0_i32_1 : i32, i32, i32
  }
  func.func @transform_4(%arg0: i32) -> (i32, i32) {
    %c0_i32 = arith.constant 0 : i32
    %c0_i32_0 = arith.constant 0 : i32
    %c0_i32_1 = arith.constant 0 : i32
    return %c0_i32, %c0_i32_0 : i32, i32
  }
  func.func @transform_5(%arg0: i32) -> (i32, i32) {
    %c0_i32 = arith.constant 0 : i32
    %c0_i32_0 = arith.constant 0 : i32
    %c0_i32_1 = arith.constant 0 : i32
    return %c0_i32, %c0_i32_0 : i32, i32
  }
  func.func @transform_6(%arg0: i32) -> (i32, i32) {
    %c0_i32 = arith.constant 0 : i32
    %c0_i32_0 = arith.constant 0 : i32
    %c0_i32_1 = arith.constant 0 : i32
    return %c0_i32, %c0_i32_0 : i32, i32
  }
  func.func @transform_7(%arg0: i32) -> (i32, i32) {
    %c0_i32 = arith.constant 0 : i32
    %c0_i32_0 = arith.constant 0 : i32
    %c0_i32_1 = arith.constant 0 : i32
    return %c0_i32, %c0_i32_0 : i32, i32
  }
}

</mosaic_0001>

<bundles_post_ra>
// kernel: cnn_forward.1
= control target key start
LH: loop header
LB: loop body
LE: loop exit
PB: predicated region body
PF: predicated region fallthrough
CT: control target
= control target key end

     0   :  { %vm277_vm0 = vcmask 293888   ;;  %vm374_vm1 = vcmask 1041408   ;;  %s8318_s0 = inlined_call_operand.vmem [shape: bf16[512,36], index: 0, kind: input, shape index: {}]   ;;  %s8319_s1 = inlined_call_operand.vmem [shape: bf16[36,128], index: 1, kind: input, shape index: {}]   ;;  %s8320_s2 = inlined_call_operand.vmem [shape: bf16[9,8,128], index: 2, kind: input, shape index: {}]   ;;  %s8321_s3 = inlined_call_operand.vmem [shape: bf16[16,16,128], index: 3, kind: input, shape index: {}]   ;;  %s8322_s4 = inlined_call_operand.vmem [shape: bf16[32,128], index: 4, kind: input, shape index: {}]   ;;  %s8323_s5 = inlined_call_operand.vmem [shape: bf16[16,128], index: 5, kind: input, shape index: {}]   ;;  %s8324_s6 = inlined_call_operand.vmem [shape: f32[5,128], index: 6, kind: input, shape index: {}]   ;;  %s8325_s7 = inlined_call_operand.hbm [shape: f32[2,128], index: 7, kind: output, shape index: {}]  }
   0x1   :  { %v6568_v0 = vld [vmem:[%s8319_s1] sm:$0xff]   ;;  %v6569_v1 = vld [vmem:[%s8319_s1 + $0x8] sm:$0xff]   ;;  %v6570_v2 = vld [vmem:[%s8319_s1 + $0x10] ss:$0 sps:$4 sm:$0x33]  }
   0x2   :  { %6084 = vmatprep.subr.bf16.mxu0 %v6568_v0  ;;  %v6571_v3 = vld [vmem:[%s8318_s0] sm:$0xff]   ;;  %v376_v4 = vsel %vm374_vm1, %v6570_v2, 0  ;;  %v6572_v5 = vld [vmem:[%s8318_s0 + $0x8] sm:$0xff]   ;;  %v6573_v6 = vld [vmem:[%s8318_s0 + $0x10] sm:$0xff]  }
   0x3   :  { %6085 = vmatpush3.bf16.msra.mxu0 %v6568_v0  ;;  %6090 = vmatprep.mubr.msk.bf16.mxu0 %vm277_vm0, %v6571_v3  ;;  %v6574_v7 = vld [vmem:[%s8318_s0 + $0x18] sm:$0xff]   ;;  %v6575_v8 = vld [vmem:[%s8318_s0 + $0x20] sm:$0xff]   ;;  %v6576_v9 = vld [vmem:[%s8318_s0 + $0x28] sm:$0xff]  }
   0x4   :  { %6086 = vmatprep.subr.bf16.mxu0 %v6569_v1  ;;  %v6577_v10 = vld [vmem:[%s8318_s0 + $0x30] sm:$0xff]   ;;  %v6578_v11 = vld [vmem:[%s8318_s0 + $0x38] sm:$0xff]   ;;  %v6579_v12 = vld [vmem:[%s8318_s0 + $0x40] sm:$0xff]  }
   0x5   :  { %v6580_v13 = vld [vmem:[%s8318_s0 + $0x48] sm:$0xff]   ;;  %v6581_v14 = vld [vmem:[%s8318_s0 + $0x50] sm:$0xff]  }
   0x7   :  { %6087 = vmatpush3.bf16.msra.mxu0 %v6569_v1 }
   0x8   :  { %6554 = vmatprep.subr.msk.bf16.mxu0 %vm374_vm1, %v6570_v2 }
   0xb   :  { %6089 = vmatpush3.bf16.msra.mxu0 %v376_v4 }
   0xe   :  { %6091 = vmatmul.mubr.msk.bf16.vlgmr.msra.gmra.mrb[0].mxu0 %vm277_vm0, %v6572_v5 }
   0xf   :  { %6094 = vmatprep.mubr.msk.bf16.mxu0 %vm277_vm0, %v6573_v6 }
  0x16   :  { %6095 = vmatmul.mubr.msk.bf16.gmra.mrb[4].mxu0 %vm277_vm0, %v6574_v7 }
  0x17   :  { %6098 = vmatprep.mubr.msk.bf16.mxu0 %vm277_vm0, %v6575_v8 }
  0x1e   :  { %6099 = vmatmul.mubr.msk.bf16.gmra.mrb[8].mxu0 %vm277_vm0, %v6576_v9 }
  0x1f   :  { %6102 = vmatprep.mubr.msk.bf16.mxu0 %vm277_vm0, %v6577_v10 }
  0x26   :  { %6103 = vmatmul.mubr.msk.bf16.gmra.mrb[12].mxu0 %vm277_vm0, %v6578_v11 }
  0x27   :  { %6106 = vmatprep.mubr.msk.bf16.mxu0 %vm277_vm0, %v6579_v12 }
  0x2e   :  { %6107 = vmatmul.mubr.msk.bf16.gmra.mrb[16].mxu0 %vm277_vm0, %v6580_v13 }
  0x2f   :  { %6110 = vmatprep.mubr.msk.bf16.mxu0 %vm277_vm0, %v6581_v14 }
  0x30   :  { %12 = vsyncpa [#allocation4], 0  ;;  %v6582_v15 = vld [vmem:[%s8318_s0 + $0x58] sm:$0xff]   ;;  %v6583_v16 = vld [vmem:[%s8318_s0 + $0x60] sm:$0xff]   ;;  %v6650_v35 = vmov 0.0   ;;  %v799_v39 = vlaneseq  ;;  %vm2759_vm2 = vcmask 1043456  }
  0x31   :  { %v6584_v17 = vld [vmem:[%s8318_s0 + $0x68] sm:$0xff]   ;;  %v6585_v18 = vld [vmem:[%s8318_s0 + $0x70] sm:$0xff]   ;;  %v6586_v19 = vld [vmem:[%s8318_s0 + $0x78] sm:$0xff]   ;;  %2365 = vst [vmem:[#allocation2 + $0x10] sm:$0xff] %v6650_v35  ;;  %6316 = vmatprep.subr.bf16.mxu0 %v6650_v35  ;;  %v6651_v37 = vmov 1983009808  }
  0x32   :  { %v6587_v20 = vld [vmem:[%s8318_s0 + $0x80] sm:$0xff]   ;;  %v6588_v21 = vld [vmem:[%s8318_s0 + $0x88] sm:$0xff]   ;;  %v6589_v22 = vld [vmem:[%s8318_s0 + $0x90] sm:$0xff]   ;;  %2366 = vst [vmem:[#allocation2 + $0x18] sm:$0x3] %v6650_v35  ;;  %v797_v38 = vunpack.c.l.s4 %v6651_v37  ;;  %v800_v44 = vshrl.u32 %v799_v39, 7 }
  0x33   :  { %v6590_v23 = vld [vmem:[%s8318_s0 + $0x98] sm:$0xff]   ;;  %v6591_v24 = vld [vmem:[%s8318_s0 + $0xa0] sm:$0xff]   ;;  %v6592_v25 = vld [vmem:[%s8318_s0 + $0xa8] sm:$0xff]   ;;  %2363 = vst [vmem:[#allocation2] sm:$0xff] %v6650_v35  ;;  %vm2531_vm3 = vcmask 1041409   ;;  %vm2533_vm4 = vcmask 1042434  }
  0x34   :  { %v6593_v26 = vld [vmem:[%s8318_s0 + $0xb0] sm:$0xff]   ;;  %v6594_v27 = vld [vmem:[%s8318_s0 + $0xb8] sm:$0xff]   ;;  %v6595_v28 = vld [vmem:[%s8318_s0 + $0xc0] sm:$0xff]   ;;  %2364 = vst [vmem:[#allocation2 + $0x8] sm:$0x3] %v6650_v35  ;;  %v798_v43 = vunpack.c.0.s8 %v797_v38  ;;  %vm2535_vm5 = vcmask 1043459  }
  0x35   :  { %v6596_v29 = vld [vmem:[%s8318_s0 + $0xc8] sm:$0xff]   ;;  %v6597_v30 = vld [vmem:[%s8318_s0 + $0xd0] sm:$0xff]   ;;  %v6598_v31 = vld [vmem:[%s8318_s0 + $0xd8] sm:$0xff]   ;;  %2367 = vst [vmem:[#allocation2 + $0x20] sm:$0xff] %v6650_v35  ;;  %vm2537_vm6 = vcmask 1044484   ;;  %vm2539_vm7 = vcmask 1045509  }
  0x36   :  { %6111 = vmatmul.mubr.msk.bf16.gmra.mrb[20].mxu0 %vm277_vm0, %v6582_v15  ;;  %v6599_v32 = vld [vmem:[%s8318_s0 + $0xe0] sm:$0xff]   ;;  %v6600_v33 = vld [vmem:[%s8318_s0 + $0xe8] sm:$0xff]   ;;  %v6601_v34 = vld [vmem:[%s8318_s0 + $0xf0] sm:$0xff]   ;;  %2368 = vst [vmem:[#allocation2 + $0x28] sm:$0x3] %v6650_v35  ;;  %v6846_v54 = vsub.s32 %v798_v43, %v800_v44  ;;  %vm2541_vm8 = vcmask 1046534  }
  0x37   :  { %6114 = vmatprep.mubr.msk.bf16.mxu0 %vm277_vm0, %v6583_v16  ;;  %2369 = vst [vmem:[#allocation2 + $0x30] sm:$0xff] %v6650_v35  ;;  %2370 = vst [vmem:[#allocation2 + $0x38] sm:$0x3] %v6650_v35  ;;  %v6602_v36 = vld [vmem:[%s8318_s0 + $0xf8] sm:$0xff]   ;;  %v6836_v40 = vld [vmem:[%s8324_s6] ss:$0 sm:$0xff] }
  0x38   :  { %2371 = vst [vmem:[#allocation2 + $0x40] sm:$0xff] %v6650_v35  ;;  %2372 = vst [vmem:[#allocation2 + $0x48] sm:$0x3] %v6650_v35  ;;  %v5780_v41 = vld [vmem:[%s8320_s2 + $0x4] sm:$0xf]  ;;  %vm2543_vm9 = vcmask 1047559  }
  0x39   :  { %2373 = vst [vmem:[#allocation2 + $0x50] sm:$0xff] %v6650_v35  ;;  %2374 = vst [vmem:[#allocation2 + $0x58] sm:$0x3] %v6650_v35  ;;  %6555 = vmatprep.subr.msk.bf16.mxu1 %vm2759_vm2, %v5780_v41  ;;  %v2761_v45 = vsel %vm2759_vm2, %v5780_v41, 0  ;;  %vm2734_vm10 = vcmask 64512   ;;  %vm6652_vm11 = vmmov 0  }
  0x3a   :  { %2375 = vst [vmem:[#allocation2 + $0x60] sm:$0xff] %v6650_v35  ;;  %2376 = vst [vmem:[#allocation2 + $0x68] sm:$0x3] %v6650_v35  ;;  %6155 = vmatpush3.bf16.msra.mxu1 %v2761_v45  ;;  %vm4641_vm12 = vcmask 130048   ;;  %vm5595_vm13 = vcmask 261120   ;;  %s6653_s12 = smov [#allocation3]  }
  0x3b   :  { %2377 = vst [vmem:[#allocation2 + $0x70] sm:$0xff] %v6650_v35  ;;  %2378 = vst [vmem:[#allocation2 + $0x78] sm:$0x3] %v6650_v35  ;;  %s5704_s13 = sshll.u32 %s6653_s12, 4  ;;  %s5705_s13 = int_to_ptr.vmem [resolvable:$true] %s5704_s13 }
  0x3c   :  { %2379 = vst [vmem:[#allocation2 + $0x80] sm:$0xff] %v6650_v35  ;;  %2380 = vst [vmem:[#allocation2 + $0x88] sm:$0x3] %v6650_v35  ;;  %s6626_s14 = scalar_lea.vmem %s5705_s13, 32  ;;  %p6631_p1 = scmp.lt.s32.totalorder %s5705_s13, %s5705_s13 }
  0x3d   :  { %2381 = vst [vmem:[#allocation2 + $0x90] sm:$0xff] %v6650_v35  ;;  %2382 = vst [vmem:[#allocation2 + $0x98] sm:$0x3] %v6650_v35  ;;  %p6627_p0 = scmp.ne.s32.totalorder %s5705_s13, %s6626_s14  ;;  %p6632_p2 = scmp.lt.s32.totalorder %s6626_s14, %s6626_s14 }
  0x3e   :  { %6115 = vmatmul.mubr.msk.bf16.gmra.mrb[24].mxu0 %vm277_vm0, %v6584_v17  ;;  %2383 = vst [vmem:[#allocation2 + $0xa0] sm:$0xff] %v6650_v35  ;;  %2384 = vst [vmem:[#allocation2 + $0xa8] sm:$0x3] %v6650_v35 }
  0x3f   :  { %6118 = vmatprep.mubr.msk.bf16.mxu0 %vm277_vm0, %v6585_v18  ;;  %2385 = vst [vmem:[#allocation2 + $0xb0] sm:$0xff] %v6650_v35  ;;  %2386 = vst [vmem:[#allocation2 + $0xb8] sm:$0x3] %v6650_v35  ;;  %p6633_p3 = por %p6632_p2, %p6631_p1 }
  0x40   :  { %2387 = vst [vmem:[#allocation2 + $0xc0] sm:$0xff] %v6650_v35  ;;  %2388 = vst [vmem:[#allocation2 + $0xc8] sm:$0x3] %v6650_v35 }
  0x41   :  { %2389 = vst [vmem:[#allocation2 + $0xd0] sm:$0xff] %v6650_v35  ;;  %2390 = vst [vmem:[#allocation2 + $0xd8] sm:$0x3] %v6650_v35  ;;  %p6634_p4 = pnand %p6633_p3, %p6627_p0 }
  0x42   :  { %2391 = vst [vmem:[#allocation2 + $0xe0] sm:$0xff] %v6650_v35  ;;  %2392 = vst [vmem:[#allocation2 + $0xe8] sm:$0x3] %v6650_v35 }
  0x43   :  { %2393 = vst [vmem:[#allocation2 + $0xf0] sm:$0xff] %v6650_v35  ;;  %2394 = vst [vmem:[#allocation2 + $0xf8] sm:$0x3] %v6650_v35 }
  0x44   :  { %2395 = vst [vmem:[#allocation2 + $0x100] sm:$0xff] %v6650_v35  ;;  %2396 = vst [vmem:[#allocation2 + $0x108] sm:$0x3] %v6650_v35 }
  0x45   :  { %2397 = vst [vmem:[#allocation2 + $0x110] sm:$0xff] %v6650_v35  ;;  %2398 = vst [vmem:[#allocation2 + $0x118] sm:$0x3] %v6650_v35 }
  0x46   :  { %6119 = vmatmul.mubr.msk.bf16.gmra.mrb[28].mxu0 %vm277_vm0, %v6586_v19  ;;  %2399 = vst [vmem:[#allocation2 + $0x120] sm:$0xff] %v6650_v35  ;;  %2400 = vst [vmem:[#allocation2 + $0x128] sm:$0x3] %v6650_v35 }
  0x47   :  { %6122 = vmatprep.mubr.msk.bf16.mxu0 %vm277_vm0, %v6587_v20  ;;  %2401 = vst [vmem:[#allocation2 + $0x130] sm:$0xff] %v6650_v35  ;;  %2402 = vst [vmem:[#allocation2 + $0x138] sm:$0x3] %v6650_v35 }
  0x4e   :  { %6123 = vmatmul.mubr.msk.bf16.gmra.mrb[32].mxu0 %vm277_vm0, %v6588_v21 }
  0x4f   :  { %6126 = vmatprep.mubr.msk.bf16.mxu0 %vm277_vm0, %v6589_v22 }
  0x56   :  { %6127 = vmatmul.mubr.msk.bf16.gmra.mrb[36].mxu0 %vm277_vm0, %v6590_v23 }
  0x57   :  { %6130 = vmatprep.mubr.msk.bf16.mxu0 %vm277_vm0, %v6591_v24 }
  0x5e   :  { %6131 = vmatmul.mubr.msk.bf16.gmra.mrb[40].mxu0 %vm277_vm0, %v6592_v25 }
  0x5f   :  { %6134 = vmatprep.mubr.msk.bf16.mxu0 %vm277_vm0, %v6593_v26 }
  0x66   :  { %6135 = vmatmul.mubr.msk.bf16.gmra.mrb[44].mxu0 %vm277_vm0, %v6594_v27 }
  0x67   :  { %6138 = vmatprep.mubr.msk.bf16.mxu0 %vm277_vm0, %v6595_v28 }
  0x6e   :  { %6139 = vmatmul.mubr.msk.bf16.gmra.mrb[48].mxu0 %vm277_vm0, %v6596_v29 }
  0x6f   :  { %6142 = vmatprep.mubr.msk.bf16.mxu0 %vm277_vm0, %v6597_v30 }
  0x76   :  { %6143 = vmatmul.mubr.msk.bf16.gmra.mrb[52].mxu0 %vm277_vm0, %v6598_v31 }
  0x77   :  { %6146 = vmatprep.mubr.msk.bf16.mxu0 %vm277_vm0, %v6599_v32 }
  0x7e   :  { %6147 = vmatmul.mubr.msk.bf16.gmra.mrb[56].mxu0 %vm277_vm0, %v6600_v33 }
  0x7f   :  { %6150 = vmatprep.mubr.msk.bf16.mxu0 %vm277_vm0, %v6601_v34 }
  0x86   :  { %6151 = vmatmul.mubr.msk.bf16.gmra.mrb[60].mxu0 %vm277_vm0, %v6602_v36 }
  0xe1   :  { %v6092_v42 = vpop.f32.mrb[0].mxu0 }
  0xe2   :  { %v421_v46 = vadd.f32 %v6092_v42, %v6836_v40  ;;  %v412_v47 = vpop.f32.mrb[1].mxu0 }
  0xe3   :  { %v413_v48 = vadd.f32 %v6836_v40, %v412_v47  ;;  %v6093_v49 = vpop.f32.mrb[2].mxu0 }
  0xe4   :  { %v669_v50 = vmax.f32 %v421_v46, 0.0  ;;  %v424_v51 = vadd.f32 %v6093_v49, %v6836_v40  ;;  %v415_v52 = vpop.f32.mrb[3].mxu0 }
  0xe5   :  { %v667_v53 = vmax.f32 %v413_v48, 0.0  ;;  %v416_v55 = vadd.f32 %v6836_v40, %v415_v52 }
  0xe6   :  { %v670_v56 = vmax.f32 %v424_v51, 0.0 }
  0xe7   :  { %v731_v57 = vmax.f32 %v667_v53, %v669_v50  ;;  %v668_v58 = vmax.f32 %v416_v55, 0.0 }
  0xe9   :  { %v795_v59 = vcombine.high %v731_v57, %v731_v57  ;;  %v802_v60 = vrot.slane %v731_v57, %v6846_v54  ;;  %v732_v61 = vmax.f32 %v668_v58, %v670_v56  ;;  %v6096_v62 = vpop.f32.mrb[4].mxu0 }
  0xea   :  { %v6851_v63 = vadd.f32 %v6096_v62, %v6836_v40  ;;  %v428_v0 = vpop.f32.mrb[5].mxu0 }
  0xeb   :  { %v809_v1 = vrot.slane %v795_v59, %v6846_v54  ;;  %v810_v2 = vcombine.high %v802_v60, %v802_v60  ;;  %v1467_v3 = vsel %vm374_vm1, %v802_v60, -inf  ;;  %v812_v4 = vcombine.high %v732_v61, %v732_v61  ;;  %v6855_v5 = vpop.f32.mrb[6].mxu0 }
  0xec   :  { %v1468_v6 = vrot.slane %v1467_v3, 4  ;;  %v819_v7 = vrot.slane %v732_v61, %v6846_v54  ;;  %v673_v8 = vmax.f32 %v6851_v63, 0.0  ;;  %v6860_v9 = vadd.f32 %v6836_v40, %v428_v0  ;;  %v6862_v10 = vpop.f32.mrb[7].mxu0 }
  0xed   :  { %v811_v11 = vcombine.high %v809_v1, %v809_v1  ;;  %v1474_v12 = vsel %vm374_vm1, %v810_v2, -inf  ;;  %v1481_v13 = vsel %vm374_vm1, %v809_v1, -inf  ;;  %v826_v14 = vrot.slane %v812_v4, %v6846_v54 }
  0xee   :  { %v1469_v15 = vmax.f32 %v1467_v3, %v1468_v6  ;;  %v1475_v16 = vrot.slane %v1474_v12, 4  ;;  %v1482_v17 = vrot.slane %v1481_v13, 4  ;;  %v827_v18 = vcombine.high %v819_v7, %v819_v7 }
  0xef   :  { %v1488_v19 = vsel %vm374_vm1, %v811_v11, -inf  ;;  %v828_v20 = vcombine.high %v826_v14, %v826_v14  ;;  %v1495_v21 = vsel %vm374_vm1, %v819_v7, -inf  ;;  %v1509_v22 = vsel %vm374_vm1, %v826_v14, -inf }
  0xf0   :  { %v1470_v23 = vrot.slane %v1469_v15, 2  ;;  %v1476_v24 = vmax.f32 %v1474_v12, %v1475_v16  ;;  %v1483_v25 = vmax.f32 %v1481_v13, %v1482_v17  ;;  %v1489_v26 = vrot.slane %v1488_v19, 4 }
  0xf1   :  { %v1496_v27 = vrot.slane %v1495_v21, 4  ;;  %v1502_v28 = vsel %vm374_vm1, %v827_v18, -inf  ;;  %v1510_v29 = vrot.slane %v1509_v22, 4  ;;  %v1516_v30 = vsel %vm374_vm1, %v828_v20, -inf  ;;  %v6872_v31 = vpop.f32.mrb[8].mxu0 }
  0xf2   :  { %v1471_v32 = vmax.f32 %v1469_v15, %v1470_v23  ;;  %v1477_v33 = vrot.slane %v1476_v24, 2  ;;  %v1484_v34 = vrot.slane %v1483_v25, 2  ;;  %v1490_v35 = vmax.f32 %v1488_v19, %v1489_v26  ;;  %v6874_v36 = vpop.f32.mrb[9].mxu0 }
  0xf3   :  { %v1497_v37 = vmax.f32 %v1495_v21, %v1496_v27  ;;  %v1503_v38 = vrot.slane %v1502_v28, 4  ;;  %v1511_v39 = vmax.f32 %v1509_v22, %v1510_v29  ;;  %v1517_v41 = vrot.slane %v1516_v30, 4  ;;  %v6876_v42 = vpop.f32.mrb[10].mxu0 }
  0xf4   :  { %v1472_v43 = vrot.slane %v1471_v32, 1  ;;  %v1478_v44 = vmax.f32 %v1476_v24, %v1477_v33  ;;  %v1485_v45 = vmax.f32 %v1483_v25, %v1484_v34  ;;  %v1491_v46 = vrot.slane %v1490_v35, 2  ;;  %v6878_v47 = vpop.f32.mrb[11].mxu0 }
  0xf5   :  { %v1498_v48 = vrot.slane %v1497_v37, 2  ;;  %v1504_v49 = vmax.f32 %v1502_v28, %v1503_v38  ;;  %v1512_v50 = vrot.slane %v1511_v39, 2  ;;  %v1518_v51 = vmax.f32 %v1516_v30, %v1517_v41 }
  0xf6   :  { %v1473_v52 = vmax.f32 %v1471_v32, %v1472_v43  ;;  %v1479_v53 = vrot.slane %v1478_v44, 1  ;;  %v1486_v55 = vrot.slane %v1485_v45, 1  ;;  %v1492_v56 = vmax.f32 %v1490_v35, %v1491_v46 }
  0xf7   :  { %v1499_v57 = vmax.f32 %v1497_v37, %v1498_v48  ;;  %v1505_v58 = vrot.slane %v1504_v49, 2  ;;  %v1513_v59 = vmax.f32 %v1511_v39, %v1512_v50  ;;  %v1519_v60 = vrot.slane %v1518_v51, 2 }
  0xf8   :  { %v1480_v61 = vmax.f32 %v1478_v44, %v1479_v53  ;;  %v1487_v62 = vmax.f32 %v1485_v45, %v1486_v55  ;;  %v1493_v0 = vrot.slane %v1492_v56, 1  ;;  %v671_v1 = vmax.f32 %v6860_v9, 0.0 }
  0xf9   :  { %v1500_v2 = vrot.slane %v1499_v57, 1  ;;  %v1506_v3 = vmax.f32 %v1504_v49, %v1505_v58  ;;  %v1514_v4 = vrot.slane %v1513_v59, 1  ;;  %v1520_v6 = vmax.f32 %v1518_v51, %v1519_v60  ;;  %v6881_v7 = vpop.f32.mrb[12].mxu0 }
  0xfa   :  { %v1494_v11 = vmax.f32 %v1492_v56, %v1493_v0  ;;  %v2532_v12 = vsel %vm2531_vm3, %v1480_v61, %v1473_v52  ;;  %v733_v13 = vmax.f32 %v671_v1, %v673_v8  ;;  %v440_v14 = vadd.f32 %v6855_v5, %v6836_v40  ;;  %v6888_v15 = vpop.f32.mrb[13].mxu0 }
  0xfb   :  { %v2534_v16 = vsel %vm2533_vm4, %v1487_v62, %v2532_v12  ;;  %v1501_v9 = vmax.f32 %v1499_v57, %v1500_v2  ;;  %v1507_v17 = vrot.slane %v1506_v3, 1  ;;  %v1515_v18 = vmax.f32 %v1513_v59, %v1514_v4  ;;  %v6891_v19 = vpop.f32.mrb[14].mxu0 }
  0xfc   :  { %v1521_v20 = vrot.slane %v1520_v6, 1  ;;  %v2536_v21 = vsel %vm2535_vm5, %v1494_v11, %v2534_v16  ;;  %v829_v22 = vcombine.high %v733_v13, %v733_v13  ;;  %v836_v23 = vrot.slane %v733_v13, %v6846_v54  ;;  %v6895_v63 = vpop.f32.mrb[15].mxu0 }
  0xfd   :  { %v1508_v8 = vmax.f32 %v1506_v3, %v1507_v17  ;;  %v2538_v5 = vsel %vm2537_vm6, %v1501_v9, %v2536_v21  ;;  %v674_v24 = vmax.f32 %v440_v14, 0.0  ;;  %v432_v25 = vadd.f32 %v6836_v40, %v6862_v10 }
  0xfe   :  { %v1522_v26 = vmax.f32 %v1520_v6, %v1521_v20  ;;  %v843_v27 = vrot.slane %v829_v22, %v6846_v54  ;;  %v844_v28 = vcombine.high %v836_v23, %v836_v23  ;;  %v1523_v29 = vsel %vm374_vm1, %v836_v23, -inf }
  0xff   :  { %v2540_v30 = vsel %vm2539_vm7, %v1508_v8, %v2538_v5  ;;  %v1524_v32 = vrot.slane %v1523_v29, 4  ;;  %v672_v33 = vmax.f32 %v432_v25, 0.0  ;;  %v453_v34 = vadd.f32 %v6872_v31, %v6836_v40 }
 0x100   :  { %v2542_v35 = vsel %vm2541_vm8, %v1515_v18, %v2540_v30  ;;  %v845_v37 = vcombine.high %v843_v27, %v843_v27  ;;  %v1530_v38 = vsel %vm374_vm1, %v844_v28, -inf  ;;  %v1537_v10 = vsel %vm374_vm1, %v843_v27, -inf }
 0x101   :  { %v6909_v39 = vsel %vm2543_vm9, %v1522_v26, %v2542_v35  ;;  %v1525_v41 = vmax.f32 %v1523_v29, %v1524_v32  ;;  %v1531_v43 = vrot.slane %v1530_v38, 4  ;;  %v1538_v44 = vrot.slane %v1537_v10, 4  ;;  %v6911_v45 = vpop.f32.mrb[16].mxu0 }
 0x102   :  { %2667 = vst [vmem:[#allocation2 + $0x11] sm:$0xff] %v6909_v39  ;;  %v1544_v46 = vsel %vm374_vm1, %v845_v37, -inf  ;;  %v734_v31 = vmax.f32 %v672_v33, %v674_v24  ;;  %v677_v48 = vmax.f32 %v453_v34, 0.0  ;;  %v445_v49 = vadd.f32 %v6836_v40, %v6874_v36  ;;  %v6917_v50 = vpop.f32.mrb[17].mxu0 }
 0x103   :  { %v1526_v51 = vrot.slane %v1525_v41, 2  ;;  %v1532_v52 = vmax.f32 %v1530_v38, %v1531_v43  ;;  %v1539_v53 = vmax.f32 %v1537_v10, %v1538_v44  ;;  %v1545_v55 = vrot.slane %v1544_v46, 4  ;;  %v6919_v56 = vpop.f32.mrb[18].mxu0 }
 0x104   :  { %v846_v57 = vcombine.high %v734_v31, %v734_v31  ;;  %v853_v58 = vrot.slane %v734_v31, %v6846_v54  ;;  %v675_v59 = vmax.f32 %v445_v49, 0.0  ;;  %v6924_v60 = vadd.f32 %v6876_v42, %v6836_v40  ;;  %v6926_v61 = vpop.f32.mrb[19].mxu0 }
 0x105   :  { %v1527_v62 = vmax.f32 %v1525_v41, %v1526_v51  ;;  %v1533_v36 = vrot.slane %v1532_v52, 2  ;;  %v1540_v0 = vrot.slane %v1539_v53, 2  ;;  %v1546_v1 = vmax.f32 %v1544_v46, %v1545_v55 }
 0x106   :  { %v860_v2 = vrot.slane %v846_v57, %v6846_v54  ;;  %v861_v3 = vcombine.high %v853_v58, %v853_v58  ;;  %v1551_v4 = vsel %vm374_vm1, %v853_v58, -inf  ;;  %v735_v6 = vmax.f32 %v675_v59, %v677_v48 }
 0x107   :  { %v1528_v11 = vrot.slane %v1527_v62, 1  ;;  %v1534_v12 = vmax.f32 %v1532_v52, %v1533_v36  ;;  %v1541_v13 = vmax.f32 %v1539_v53, %v1540_v0  ;;  %v1547_v14 = vrot.slane %v1546_v1, 2 }
 0x108   :  { %v862_v16 = vcombine.high %v860_v2, %v860_v2  ;;  %v1552_v9 = vrot.slane %v1551_v4, 4  ;;  %v1558_v42 = vsel %vm374_vm1, %v861_v3, -inf  ;;  %v1565_v17 = vsel %vm374_vm1, %v860_v2, -inf }
 0x109   :  { %v1529_v18 = vmax.f32 %v1527_v62, %v1528_v11  ;;  %v1535_v20 = vrot.slane %v1534_v12, 1  ;;  %v1542_v21 = vrot.slane %v1541_v13, 1  ;;  %v1548_v22 = vmax.f32 %v1546_v1, %v1547_v14  ;;  %v6932_v23 = vpop.f32.mrb[20].mxu0 }
 0x10a   :  { %v1553_v8 = vmax.f32 %v1551_v4, %v1552_v9  ;;  %v1559_v5 = vrot.slane %v1558_v42, 4  ;;  %v1566_v24 = vrot.slane %v1565_v17, 4  ;;  %v1572_v25 = vsel %vm374_vm1, %v862_v16, -inf  ;;  %v6935_v26 = vpop.f32.mrb[21].mxu0 }
 0x10b   :  { %v1536_v27 = vmax.f32 %v1534_v12, %v1535_v20  ;;  %v1543_v28 = vmax.f32 %v1541_v13, %v1542_v21  ;;  %v1549_v29 = vrot.slane %v1548_v22, 1  ;;  %v1573_v30 = vrot.slane %v1572_v25, 4  ;;  %v6937_v32 = vpop.f32.mrb[22].mxu0 }
 0x10c   :  { %v1554_v33 = vrot.slane %v1553_v8, 2  ;;  %v1560_v34 = vmax.f32 %v1558_v42, %v1559_v5  ;;  %v1567_v35 = vmax.f32 %v1565_v17, %v1566_v24  ;;  %v863_v37 = vcombine.high %v735_v6, %v735_v6  ;;  %v6939_v38 = vpop.f32.mrb[23].mxu0 }
 0x10d   :  { %v1550_v10 = vmax.f32 %v1548_v22, %v1549_v29  ;;  %v2545_v41 = vsel %vm2531_vm3, %v1536_v27, %v1529_v18  ;;  %v1574_v43 = vmax.f32 %v1572_v25, %v1573_v30  ;;  %v870_v44 = vrot.slane %v735_v6, %v6846_v54 }
 0x10e   :  { %v2546_v46 = vsel %vm2533_vm4, %v1543_v28, %v2545_v41  ;;  %v1555_v31 = vmax.f32 %v1553_v8, %v1554_v33  ;;  %v1561_v48 = vrot.slane %v1560_v34, 2  ;;  %v1568_v49 = vrot.slane %v1567_v35, 2 }
 0x10f   :  { %v1575_v51 = vrot.slane %v1574_v43, 2  ;;  %v2547_v52 = vsel %vm2535_vm5, %v1550_v10, %v2546_v46  ;;  %v877_v53 = vrot.slane %v863_v37, %v6846_v54  ;;  %v878_v55 = vcombine.high %v870_v44, %v870_v44 }
 0x110   :  { %v1556_v57 = vrot.slane %v1555_v31, 1  ;;  %v1562_v58 = vmax.f32 %v1560_v34, %v1561_v48  ;;  %v1569_v59 = vmax.f32 %v1567_v35, %v1568_v49  ;;  %v1579_v62 = vsel %vm374_vm1, %v870_v44, -inf }
 0x111   :  { %v1576_v36 = vmax.f32 %v1574_v43, %v1575_v51  ;;  %v879_v0 = vcombine.high %v877_v53, %v877_v53  ;;  %v1580_v1 = vrot.slane %v1579_v62, 4  ;;  %v1586_v2 = vsel %vm374_vm1, %v878_v55, -inf  ;;  %v6948_v3 = vpop.f32.mrb[24].mxu0 }
 0x112   :  { %v1557_v4 = vmax.f32 %v1555_v31, %v1556_v57  ;;  %v1563_v6 = vrot.slane %v1562_v58, 1  ;;  %v1570_v11 = vrot.slane %v1569_v59, 1  ;;  %v1587_v12 = vrot.slane %v1586_v2, 4  ;;  %v6950_v13 = vpop.f32.mrb[25].mxu0 }
 0x113   :  { %v1577_v14 = vrot.slane %v1576_v36, 1  ;;  %v1581_v16 = vmax.f32 %v1579_v62, %v1580_v1  ;;  %v1593_v9 = vsel %vm374_vm1, %v877_v53, -inf  ;;  %v1600_v42 = vsel %vm374_vm1, %v879_v0, -inf  ;;  %v6954_v17 = vpop.f32.mrb[26].mxu0 }
 0x114   :  { %v1564_v18 = vmax.f32 %v1562_v58, %v1563_v6  ;;  %v1571_v20 = vmax.f32 %v1569_v59, %v1570_v11  ;;  %v2548_v21 = vsel %vm2537_vm6, %v1557_v4, %v2547_v52  ;;  %v1588_v22 = vmax.f32 %v1586_v2, %v1587_v12  ;;  %v6957_v8 = vpop.f32.mrb[27].mxu0 }
 0x115   :  { %v1578_v5 = vmax.f32 %v1576_v36, %v1577_v14  ;;  %v1582_v24 = vrot.slane %v1581_v16, 2  ;;  %v1594_v25 = vrot.slane %v1593_v9, 4  ;;  %v1601_v27 = vrot.slane %v1600_v42, 4 }
 0x116   :  { %v2549_v28 = vsel %vm2539_vm7, %v1564_v18, %v2548_v21  ;;  %v1589_v29 = vrot.slane %v1588_v22, 2  ;;  %v678_v30 = vmax.f32 %v6924_v60, 0.0  ;;  %v448_v33 = vadd.f32 %v6836_v40, %v6878_v47 }
 0x117   :  { %v2550_v34 = vsel %vm2541_vm8, %v1571_v20, %v2549_v28  ;;  %v1583_v35 = vmax.f32 %v1581_v16, %v1582_v24  ;;  %v1595_v37 = vmax.f32 %v1593_v9, %v1594_v25  ;;  %v1602_v10 = vmax.f32 %v1600_v42, %v1601_v27 }
 0x118   :  { %v6965_v41 = vsel %vm2543_vm9, %v1578_v5, %v2550_v34  ;;  %v1590_v43 = vmax.f32 %v1588_v22, %v1589_v29  ;;  %v676_v44 = vmax.f32 %v448_v33, 0.0  ;;  %v469_v46 = vadd.f32 %v6881_v7, %v6836_v40 }
 0x119   :  { %2668 = vst [vmem:[#allocation2 + $0x21] sm:$0xff] %v6965_v41  ;;  %v1584_v31 = vrot.slane %v1583_v35, 1  ;;  %v1596_v60 = vrot.slane %v1595_v37, 2  ;;  %v1603_v48 = vrot.slane %v1602_v10, 2  ;;  %v461_v47 = vadd.f32 %v6836_v40, %v6888_v15  ;;  %v6972_v49 = vpop.f32.mrb[28].mxu0 }
 0x11a   :  { %v1591_v51 = vrot.slane %v1590_v43, 1  ;;  %v736_v52 = vmax.f32 %v676_v44, %v678_v30  ;;  %v681_v53 = vmax.f32 %v469_v46, 0.0  ;;  %v6976_v55 = vadd.f32 %v6891_v19, %v6836_v40  ;;  %v6978_v57 = vpop.f32.mrb[29].mxu0 }
 0x11b   :  { %v1585_v7 = vmax.f32 %v1583_v35, %v1584_v31  ;;  %v1597_v58 = vmax.f32 %v1595_v37, %v1596_v60  ;;  %v1604_v59 = vmax.f32 %v1602_v10, %v1603_v48  ;;  %v679_v62 = vmax.f32 %v461_v47, 0.0  ;;  %v6980_v36 = vpop.f32.mrb[30].mxu0 }
 0x11c   :  { %v1592_v0 = vmax.f32 %v1590_v43, %v1591_v51  ;;  %v880_v1 = vcombine.high %v736_v52, %v736_v52  ;;  %v887_v15 = vrot.slane %v736_v52, %v6846_v54  ;;  %v682_v2 = vmax.f32 %v6976_v55, 0.0  ;;  %v6984_v4 = vpop.f32.mrb[31].mxu0 }
 0x11d   :  { %v1598_v6 = vrot.slane %v1597_v58, 1  ;;  %v1605_v11 = vrot.slane %v1604_v59, 1  ;;  %v737_v19 = vmax.f32 %v679_v62, %v681_v53  ;;  %v6988_v12 = vadd.f32 %v6836_v40, %v6895_v63 }
 0x11e   :  { %v2552_v14 = vsel %vm2531_vm3, %v1592_v0, %v1585_v7  ;;  %v894_v16 = vrot.slane %v880_v1, %v6846_v54  ;;  %v895_v9 = vcombine.high %v887_v15, %v887_v15  ;;  %v1607_v42 = vsel %vm374_vm1, %v887_v15, -inf }
 0x11f   :  { %v1599_v18 = vmax.f32 %v1597_v58, %v1598_v6  ;;  %v1606_v20 = vmax.f32 %v1604_v59, %v1605_v11  ;;  %v1608_v21 = vrot.slane %v1607_v42, 4  ;;  %v897_v22 = vcombine.high %v737_v19, %v737_v19 }
 0x120   :  { %v896_v5 = vcombine.high %v894_v16, %v894_v16  ;;  %v1614_v24 = vsel %vm374_vm1, %v895_v9, -inf  ;;  %v1621_v25 = vsel %vm374_vm1, %v894_v16, -inf  ;;  %v904_v27 = vrot.slane %v737_v19, %v6846_v54 }
 0x121   :  { %v2553_v63 = vsel %vm2533_vm4, %v1599_v18, %v2552_v14  ;;  %v1609_v28 = vmax.f32 %v1607_v42, %v1608_v21  ;;  %v1615_v29 = vrot.slane %v1614_v24, 4  ;;  %v1622_v30 = vrot.slane %v1621_v25, 4  ;;  %v6997_v33 = vpop.f32.mrb[32].mxu0 }
 0x122   :  { %v1628_v34 = vsel %vm374_vm1, %v896_v5, -inf  ;;  %v2554_v35 = vsel %vm2535_vm5, %v1606_v20, %v2553_v63  ;;  %v911_v37 = vrot.slane %v897_v22, %v6846_v54  ;;  %v912_v10 = vcombine.high %v904_v27, %v904_v27  ;;  %v7002_v43 = vpop.f32.mrb[33].mxu0 }
 0x123   :  { %v1610_v44 = vrot.slane %v1609_v28, 2  ;;  %v1616_v46 = vmax.f32 %v1614_v24, %v1615_v29  ;;  %v1623_v31 = vmax.f32 %v1621_v25, %v1622_v30  ;;  %v1629_v60 = vrot.slane %v1628_v34, 4  ;;  %v7004_v48 = vpop.f32.mrb[34].mxu0 }
 0x124   :  { %v913_v47 = vcombine.high %v911_v37, %v911_v37  ;;  %v1635_v51 = vsel %vm374_vm1, %v904_v27, -inf  ;;  %v1642_v52 = vsel %vm374_vm1, %v912_v10, -inf  ;;  %v1649_v53 = vsel %vm374_vm1, %v911_v37, -inf  ;;  %v7009_v7 = vpop.f32.mrb[35].mxu0 }
 0x125   :  { %v1611_v58 = vmax.f32 %v1609_v28, %v1610_v44  ;;  %v1617_v59 = vrot.slane %v1616_v46, 2  ;;  %v1624_v62 = vrot.slane %v1623_v31, 2  ;;  %v1630_v0 = vmax.f32 %v1628_v34, %v1629_v60 }
 0x126   :  { %v1636_v1 = vrot.slane %v1635_v51, 4  ;;  %v1643_v15 = vrot.slane %v1642_v52, 4  ;;  %v1650_v6 = vrot.slane %v1649_v53, 4  ;;  %v1656_v11 = vsel %vm374_vm1, %v913_v47, -inf }
 0x127   :  { %v1612_v19 = vrot.slane %v1611_v58, 1  ;;  %v1618_v14 = vmax.f32 %v1616_v46, %v1617_v59  ;;  %v1625_v16 = vmax.f32 %v1623_v31, %v1624_v62  ;;  %v1631_v9 = vrot.slane %v1630_v0, 2 }
 0x128   :  { %v1637_v42 = vmax.f32 %v1635_v51, %v1636_v1  ;;  %v1644_v18 = vmax.f32 %v1642_v52, %v1643_v15  ;;  %v1651_v20 = vmax.f32 %v1649_v53, %v1650_v6  ;;  %v1657_v21 = vrot.slane %v1656_v11, 4 }
 0x129   :  { %v1613_v22 = vmax.f32 %v1611_v58, %v1612_v19  ;;  %v1619_v5 = vrot.slane %v1618_v14, 1  ;;  %v1626_v24 = vrot.slane %v1625_v16, 1  ;;  %v1632_v25 = vmax.f32 %v1630_v0, %v1631_v9  ;;  %v7012_v27 = vpop.f32.mrb[36].mxu0 }
 0x12a   :  { %v1638_v63 = vrot.slane %v1637_v42, 2  ;;  %v1645_v28 = vrot.slane %v1644_v18, 2  ;;  %v1652_v29 = vrot.slane %v1651_v20, 2  ;;  %v1658_v30 = vmax.f32 %v1656_v11, %v1657_v21  ;;  %v7014_v34 = vpop.f32.mrb[37].mxu0 }
 0x12b   :  { %v1620_v37 = vmax.f32 %v1618_v14, %v1619_v5  ;;  %v1627_v10 = vmax.f32 %v1625_v16, %v1626_v24  ;;  %v1633_v44 = vrot.slane %v1632_v25, 1  ;;  %v2555_v46 = vsel %vm2537_vm6, %v1613_v22, %v2554_v35  ;;  %v7017_v31 = vpop.f32.mrb[38].mxu0 }
 0x12c   :  { %v1639_v60 = vmax.f32 %v1637_v42, %v1638_v63  ;;  %v1646_v47 = vmax.f32 %v1644_v18, %v1645_v28  ;;  %v1653_v51 = vmax.f32 %v1651_v20, %v1652_v29  ;;  %v1659_v52 = vrot.slane %v1658_v30, 2  ;;  %v7019_v53 = vpop.f32.mrb[39].mxu0 }
 0x12d   :  { %v1634_v58 = vmax.f32 %v1632_v25, %v1633_v44  ;;  %v2556_v59 = vsel %vm2539_vm7, %v1620_v37, %v2555_v46  ;;  %v680_v62 = vmax.f32 %v6988_v12, 0.0  ;;  %v485_v0 = vadd.f32 %v6911_v45, %v6836_v40 }
 0x12e   :  { %v2557_v1 = vsel %vm2541_vm8, %v1627_v10, %v2556_v59  ;;  %v1640_v15 = vrot.slane %v1639_v60, 1  ;;  %v1647_v35 = vrot.slane %v1646_v47, 1  ;;  %v1654_v6 = vrot.slane %v1653_v51, 1 }
 0x12f   :  { %v7027_v11 = vsel %vm2543_vm9, %v1634_v58, %v2557_v1  ;;  %v1660_v19 = vmax.f32 %v1658_v30, %v1659_v52  ;;  %v738_v14 = vmax.f32 %v680_v62, %v682_v2  ;;  %v685_v16 = vmax.f32 %v485_v0, 0.0 }
 0x130   :  { %2669 = vst [vmem:[#allocation2 + $0x31] sm:$0xff] %v7027_v11  ;;  %v1641_v9 = vmax.f32 %v1639_v60, %v1640_v15  ;;  %v1648_v12 = vmax.f32 %v1646_v47, %v1647_v35  ;;  %v1655_v42 = vmax.f32 %v1653_v51, %v1654_v6  ;;  %v477_v45 = vadd.f32 %v6836_v40, %v6917_v50 }
 0x131   :  { %v1661_v18 = vrot.slane %v1660_v19, 1  ;;  %v914_v20 = vcombine.high %v738_v14, %v738_v14  ;;  %v921_v21 = vrot.slane %v738_v14, %v6846_v54  ;;  %v488_v22 = vadd.f32 %v6919_v56, %v6836_v40  ;;  %v7037_v5 = vpop.f32.mrb[40].mxu0 }
 0x132   :  { %v2559_v55 = vsel %vm2531_vm3, %v1648_v12, %v1641_v9  ;;  %v683_v2 = vmax.f32 %v477_v45, 0.0  ;;  %v480_v24 = vadd.f32 %v6836_v40, %v6926_v61  ;;  %v7044_v25 = vadd.f32 %v6932_v23, %v6836_v40  ;;  %v7046_v50 = vpop.f32.mrb[41].mxu0 }
 0x133   :  { %v1662_v63 = vmax.f32 %v1660_v19, %v1661_v18  ;;  %v2560_v28 = vsel %vm2533_vm4, %v1655_v42, %v2559_v55  ;;  %v928_v29 = vrot.slane %v914_v20, %v6846_v54  ;;  %v929_v56 = vcombine.high %v921_v21, %v921_v21  ;;  %v7050_v30 = vpop.f32.mrb[42].mxu0 }
 0x134   :  { %v1663_v37 = vsel %vm374_vm1, %v921_v21, -inf  ;;  %v739_v10 = vmax.f32 %v683_v2, %v685_v16  ;;  %v686_v44 = vmax.f32 %v488_v22, 0.0  ;;  %v684_v46 = vmax.f32 %v480_v24, 0.0  ;;  %v7053_v61 = vpop.f32.mrb[43].mxu0 }
 0x135   :  { %v930_v60 = vcombine.high %v928_v29, %v928_v29  ;;  %v1664_v23 = vrot.slane %v1663_v37, 4  ;;  %v1670_v47 = vsel %vm374_vm1, %v929_v56, -inf  ;;  %v1677_v51 = vsel %vm374_vm1, %v928_v29, -inf }
 0x136   :  { %v1671_v52 = vrot.slane %v1670_v47, 4  ;;  %v1678_v58 = vrot.slane %v1677_v51, 4  ;;  %v2561_v59 = vsel %vm2535_vm5, %v1662_v63, %v2560_v28  ;;  %v931_v62 = vcombine.high %v739_v10, %v739_v10 }
 0x137   :  { %v1665_v0 = vmax.f32 %v1663_v37, %v1664_v23  ;;  %v1684_v1 = vsel %vm374_vm1, %v930_v60, -inf  ;;  %v938_v15 = vrot.slane %v739_v10, %v6846_v54  ;;  %v740_v35 = vmax.f32 %v684_v46, %v686_v44 }
 0x138   :  { %v1672_v6 = vmax.f32 %v1670_v47, %v1671_v52  ;;  %v1679_v19 = vmax.f32 %v1677_v51, %v1678_v58  ;;  %v1685_v14 = vrot.slane %v1684_v1, 4  ;;  %v945_v16 = vrot.slane %v931_v62, %v6846_v54 }
 0x139   :  { %v1666_v9 = vrot.slane %v1665_v0, 2  ;;  %v946_v12 = vcombine.high %v938_v15, %v938_v15  ;;  %v1691_v42 = vsel %vm374_vm1, %v938_v15, -inf  ;;  %v948_v45 = vcombine.high %v740_v35, %v740_v35 }
 0x13a   :  { %v1673_v18 = vrot.slane %v1672_v6, 2  ;;  %v1680_v20 = vrot.slane %v1679_v19, 2  ;;  %v1686_v21 = vmax.f32 %v1684_v1, %v1685_v14  ;;  %v947_v22 = vcombine.high %v945_v16, %v945_v16 }
 0x13b   :  { %v1667_v55 = vmax.f32 %v1665_v0, %v1666_v9  ;;  %v1692_v2 = vrot.slane %v1691_v42, 4  ;;  %v1698_v24 = vsel %vm374_vm1, %v946_v12, -inf  ;;  %v1705_v63 = vsel %vm374_vm1, %v945_v16, -inf }
 0x13c   :  { %v1674_v28 = vmax.f32 %v1672_v6, %v1673_v18  ;;  %v1681_v29 = vmax.f32 %v1679_v19, %v1680_v20  ;;  %v1687_v56 = vrot.slane %v1686_v21, 2  ;;  %v1699_v37 = vrot.slane %v1698_v24, 4 }
 0x13d   :  { %v1668_v10 = vrot.slane %v1667_v55, 1  ;;  %v1693_v44 = vmax.f32 %v1691_v42, %v1692_v2  ;;  %v1706_v46 = vrot.slane %v1705_v63, 4  ;;  %v1712_v60 = vsel %vm374_vm1, %v947_v22, -inf  ;;  %v7068_v2 = vpop.f32.mrb[44].mxu0 }
 0x13e   :  { %v1675_v23 = vrot.slane %v1674_v28, 1  ;;  %v1682_v47 = vrot.slane %v1681_v29, 1  ;;  %v1688_v51 = vmax.f32 %v1686_v21, %v1687_v56  ;;  %v1700_v52 = vmax.f32 %v1698_v24, %v1699_v37 }
 0x13f   :  { %v1669_v58 = vmax.f32 %v1667_v55, %v1668_v10  ;;  %v1694_v62 = vrot.slane %v1693_v44, 2  ;;  %v1707_v0 = vmax.f32 %v1705_v63, %v1706_v46  ;;  %v1713_v1 = vrot.slane %v1712_v60, 4 }
 0x140   :  { %v1676_v15 = vmax.f32 %v1674_v28, %v1675_v23  ;;  %v1683_v14 = vmax.f32 %v1681_v29, %v1682_v47  ;;  %v1689_v16 = vrot.slane %v1688_v51, 1  ;;  %v1701_v6 = vrot.slane %v1700_v52, 2  ;;  %v7071_v29 = vpop.f32.mrb[45].mxu0 }
 0x141   :  { %v2562_v19 = vsel %vm2537_vm6, %v1669_v58, %v2561_v59  ;;  %v1695_v9 = vmax.f32 %v1693_v44, %v1694_v62  ;;  %v1708_v12 = vrot.slane %v1707_v0, 2  ;;  %v1714_v42 = vmax.f32 %v1712_v60, %v1713_v1  ;;  %v7077_v44 = vpop.f32.mrb[46].mxu0 }
 0x142   :  { %v1690_v18 = vmax.f32 %v1688_v51, %v1689_v16  ;;  %v2563_v20 = vsel %vm2539_vm7, %v1676_v15, %v2562_v19  ;;  %v1702_v22 = vmax.f32 %v1700_v52, %v1701_v6  ;;  %v955_v21 = vrot.slane %v740_v35, %v6846_v54 }
 0x143   :  { %v2564_v55 = vsel %vm2541_vm8, %v1683_v14, %v2563_v20  ;;  %v1696_v24 = vrot.slane %v1695_v9, 1  ;;  %v1709_v63 = vmax.f32 %v1707_v0, %v1708_v12  ;;  %v1715_v28 = vrot.slane %v1714_v42, 2 }
 0x144   :  { %v7074_v59 = vsel %vm2543_vm9, %v1690_v18, %v2564_v55  ;;  %v1703_v56 = vrot.slane %v1702_v22, 1  ;;  %v962_v37 = vrot.slane %v948_v45, %v6846_v54  ;;  %v963_v10 = vcombine.high %v955_v21, %v955_v21  ;;  %v2708_v18 = vld [vmem:[#allocation2 + $0x1] sm:$0xff] }
 0x145   :  { %2670 = vst [vmem:[#allocation2 + $0x41] sm:$0xff] %v7074_v59  ;;  %v1697_v35 = vmax.f32 %v1695_v9, %v1696_v24  ;;  %v1710_v46 = vrot.slane %v1709_v63, 1  ;;  %v1716_v60 = vmax.f32 %v1714_v42, %v1715_v28  ;;  %v1719_v23 = vsel %vm374_vm1, %v955_v21, -inf }
 0x146   :  { %v1704_v47 = vmax.f32 %v1702_v22, %v1703_v56  ;;  %v964_v51 = vcombine.high %v962_v37, %v962_v37  ;;  %v1720_v52 = vrot.slane %v1719_v23, 4  ;;  %v1726_v58 = vsel %vm374_vm1, %v963_v10, -inf }
 0x147   :  { %v1711_v62 = vmax.f32 %v1709_v63, %v1710_v46  ;;  %v1717_v0 = vrot.slane %v1716_v60, 1  ;;  %v1727_v1 = vrot.slane %v1726_v58, 4  ;;  %v1733_v45 = vsel %vm374_vm1, %v962_v37, -inf }
 0x148   :  { %v2566_v15 = vsel %vm2531_vm3, %v1704_v47, %v1697_v35  ;;  %v1721_v14 = vmax.f32 %v1719_v23, %v1720_v52  ;;  %v1734_v16 = vrot.slane %v1733_v45, 4  ;;  %v1740_v6 = vsel %vm374_vm1, %v964_v51, -inf  ;;  %v7095_v51 = vpop.f32.mrb[47].mxu0 }
 0x149   :  { %v1718_v19 = vmax.f32 %v1716_v60, %v1717_v0  ;;  %v2567_v9 = vsel %vm2533_vm4, %v1711_v62, %v2566_v15  ;;  %v1728_v12 = vmax.f32 %v1726_v58, %v1727_v1  ;;  %v1741_v42 = vrot.slane %v1740_v6, 4 }
 0x14a   :  { %v1722_v20 = vrot.slane %v1721_v14, 2  ;;  %v1735_v22 = vmax.f32 %v1733_v45, %v1734_v16  ;;  %v689_v21 = vmax.f32 %v7044_v25, 0.0  ;;  %v493_v55 = vadd.f32 %v6836_v40, %v6935_v26 }
 0x14b   :  { %v1729_v24 = vrot.slane %v1728_v12, 2  ;;  %v1742_v63 = vmax.f32 %v1740_v6, %v1741_v42  ;;  %v2568_v28 = vsel %vm2535_vm5, %v1718_v19, %v2567_v9  ;;  %v504_v56 = vadd.f32 %v6937_v32, %v6836_v40 }
 0x14c   :  { %v1723_v37 = vmax.f32 %v1721_v14, %v1722_v20  ;;  %v1736_v10 = vrot.slane %v1735_v22, 2  ;;  %v687_v35 = vmax.f32 %v493_v55, 0.0  ;;  %v2724_v46 = vpack.c.bf16 %v6909_v39, %v2708_v18 }
 0x14d   :  { %v1730_v60 = vmax.f32 %v1728_v12, %v1729_v24  ;;  %v1743_v23 = vrot.slane %v1742_v63, 2  ;;  %v690_v47 = vmax.f32 %v504_v56, 0.0  ;;  %v496_v25 = vadd.f32 %v6836_v40, %v6939_v38  ;;  %v7114_v56 = vpop.f32.mrb[48].mxu0 }
 0x14e   :  { %v1724_v26 = vrot.slane %v1723_v37, 1  ;;  %v1737_v52 = vmax.f32 %v1735_v22, %v1736_v10  ;;  %v741_v58 = vmax.f32 %v687_v35, %v689_v21  ;;  %6156 = vmatprep.mubr.msk.bf16.mxu1 %vm2734_vm10, %v2724_v46  ;;  %v7100_v32 = vadd.f32 %v6948_v3, %v6836_v40 }
 0x14f   :  { %v1731_v62 = vrot.slane %v1730_v60, 1  ;;  %v1744_v0 = vmax.f32 %v1742_v63, %v1743_v23  ;;  %v688_v39 = vmax.f32 %v496_v25, 0.0  ;;  %v7104_v1 = vadd.f32 %v6836_v40, %v6950_v13  ;;  %v7124_v25 = vpop.f32.mrb[49].mxu0 }
 0x150   :  { %v1725_v45 = vmax.f32 %v1723_v37, %v1724_v26  ;;  %v1738_v38 = vrot.slane %v1737_v52, 1  ;;  %v965_v15 = vcombine.high %v741_v58, %v741_v58  ;;  %v972_v14 = vrot.slane %v741_v58, %v6846_v54 }
 0x151   :  { %v1732_v16 = vmax.f32 %v1730_v60, %v1731_v62  ;;  %v1745_v6 = vrot.slane %v1744_v0, 1  ;;  %v742_v19 = vmax.f32 %v688_v39, %v690_v47 }
 0x152   :  { %v1739_v12 = vmax.f32 %v1737_v52, %v1738_v38  ;;  %v2569_v3 = vsel %vm2537_vm6, %v1725_v45, %v2568_v28  ;;  %v979_v42 = vrot.slane %v965_v15, %v6846_v54  ;;  %v980_v18 = vcombine.high %v972_v14, %v972_v14 }
 0x153   :  { %v1746_v20 = vmax.f32 %v1744_v0, %v1745_v6  ;;  %v2570_v40 = vsel %vm2539_vm7, %v1732_v16, %v2569_v3  ;;  %v1747_v13 = vsel %vm374_vm1, %v972_v14, -inf  ;;  %v982_v22 = vcombine.high %v742_v19, %v742_v19 }
 0x154   :  { %v2571_v21 = vsel %vm2541_vm8, %v1739_v12, %v2570_v40  ;;  %v981_v55 = vcombine.high %v979_v42, %v979_v42  ;;  %v1748_v24 = vrot.slane %v1747_v13, 4  ;;  %v1754_v63 = vsel %vm374_vm1, %v980_v18, -inf }
 0x155   :  { %v7117_v37 = vsel %vm2543_vm9, %v1746_v20, %v2571_v21  ;;  %v1755_v28 = vrot.slane %v1754_v63, 4  ;;  %v1761_v10 = vsel %vm374_vm1, %v979_v42, -inf  ;;  %v989_v35 = vrot.slane %v742_v19, %v6846_v54 }
 0x156   :  { %2671 = vst [vmem:[#allocation2 + $0x51] sm:$0xff] %v7117_v37  ;;  %v1749_v46 = vmax.f32 %v1747_v13, %v1748_v24  ;;  %v1762_v60 = vrot.slane %v1761_v10, 4  ;;  %v1768_v23 = vsel %vm374_vm1, %v981_v55, -inf  ;;  %v996_v47 = vrot.slane %v982_v22, %v6846_v54  ;;  %v7130_v22 = vpop.f32.mrb[50].mxu0 }
 0x157   :  { %v1756_v26 = vmax.f32 %v1754_v63, %v1755_v28  ;;  %v1769_v52 = vrot.slane %v1768_v23, 4  ;;  %v997_v58 = vcombine.high %v989_v35, %v989_v35  ;;  %v1775_v62 = vsel %vm374_vm1, %v989_v35, -inf  ;;  %v7132_v28 = vpop.f32.mrb[51].mxu0 }
 0x158   :  { %v1750_v0 = vrot.slane %v1749_v46, 2  ;;  %v1763_v39 = vmax.f32 %v1761_v10, %v1762_v60  ;;  %v998_v45 = vcombine.high %v996_v47, %v996_v47  ;;  %v1776_v38 = vrot.slane %v1775_v62, 4 }
 0x159   :  { %v1757_v15 = vrot.slane %v1756_v26, 2  ;;  %v1770_v14 = vmax.f32 %v1768_v23, %v1769_v52  ;;  %v1782_v16 = vsel %vm374_vm1, %v997_v58, -inf  ;;  %v1789_v6 = vsel %vm374_vm1, %v996_v47, -inf }
 0x15a   :  { %v1751_v19 = vmax.f32 %v1749_v46, %v1750_v0  ;;  %v1764_v12 = vrot.slane %v1763_v39, 2  ;;  %v1777_v3 = vmax.f32 %v1775_v62, %v1776_v38  ;;  %v1783_v42 = vrot.slane %v1782_v16, 4 }
 0x15b   :  { %v1758_v18 = vmax.f32 %v1756_v26, %v1757_v15  ;;  %v1771_v20 = vrot.slane %v1770_v14, 2  ;;  %v1790_v40 = vrot.slane %v1789_v6, 4  ;;  %v1796_v13 = vsel %vm374_vm1, %v998_v45, -inf }
 0x15c   :  { %v1752_v21 = vrot.slane %v1751_v19, 1  ;;  %v1765_v55 = vmax.f32 %v1763_v39, %v1764_v12  ;;  %v1778_v24 = vrot.slane %v1777_v3, 2  ;;  %v1784_v63 = vmax.f32 %v1782_v16, %v1783_v42 }
 0x15d   :  { %v1759_v10 = vrot.slane %v1758_v18, 1  ;;  %v1772_v35 = vmax.f32 %v1770_v14, %v1771_v20  ;;  %v1791_v60 = vmax.f32 %v1789_v6, %v1790_v40  ;;  %v1797_v46 = vrot.slane %v1796_v13, 4 }
 0x15e   :  { %v1753_v23 = vmax.f32 %v1751_v19, %v1752_v21  ;;  %v1766_v47 = vrot.slane %v1765_v55, 1  ;;  %v1779_v52 = vmax.f32 %v1777_v3, %v1778_v24  ;;  %v1785_v26 = vrot.slane %v1784_v63, 2 }
 0x15f   :  { %v1760_v58 = vmax.f32 %v1758_v18, %v1759_v10  ;;  %v1773_v62 = vrot.slane %v1772_v35, 1  ;;  %v1792_v0 = vrot.slane %v1791_v60, 2  ;;  %v1798_v45 = vmax.f32 %v1796_v13, %v1797_v46 }
 0x160   :  { %v1767_v38 = vmax.f32 %v1765_v55, %v1766_v47  ;;  %v1780_v15 = vrot.slane %v1779_v52, 1  ;;  %v1786_v9 = vmax.f32 %v1784_v63, %v1785_v26  ;;  %v691_v39 = vmax.f32 %v7104_v1, 0.0  ;;  %v7143_v1 = vld [vmem:[%s8324_s6] ss:$0 sm:$0xff] }
 0x161   :  { %v1774_v16 = vmax.f32 %v1772_v35, %v1773_v62  ;;  %v2573_v12 = vsel %vm2531_vm3, %v1760_v58, %v1753_v23  ;;  %v1793_v42 = vmax.f32 %v1791_v60, %v1792_v0  ;;  %v1799_v14 = vrot.slane %v1798_v45, 2 }
 0x162   :  { %v2574_v6 = vsel %vm2533_vm4, %v1767_v38, %v2573_v12  ;;  %v1781_v19 = vmax.f32 %v1779_v52, %v1780_v15  ;;  %v1787_v20 = vrot.slane %v1786_v9, 1  ;;  %v8326_v3 = vmax.f32 %v7100_v32, 0.0 }
 0x163   :  { %v1794_v40 = vrot.slane %v1793_v42, 1  ;;  %v1800_v21 = vmax.f32 %v1798_v45, %v1799_v14  ;;  %v2575_v13 = vsel %vm2535_vm5, %v1774_v16, %v2574_v6  ;;  %v520_v55 = vadd.f32 %v7143_v1, %v6954_v17 }
 0x164   :  { %v743_v18 = vmax.f32 %v691_v39, %v8326_v3  ;;  %v1788_v24 = vmax.f32 %v1786_v9, %v1787_v20  ;;  %v2576_v63 = vsel %vm2537_vm6, %v1781_v19, %v2575_v13  ;;  %v512_v23 = vadd.f32 %v7143_v1, %v6957_v8  ;;  %v7166_v3 = vpop.f32.mrb[52].mxu0 }
 0x165   :  { %v1795_v32 = vmax.f32 %v1793_v42, %v1794_v40  ;;  %v1801_v60 = vrot.slane %v1800_v21, 1  ;;  %v694_v46 = vmax.f32 %v520_v55, 0.0  ;;  %v533_v8 = vadd.f32 %v7143_v1, %v6972_v49  ;;  %v7168_v13 = vpop.f32.mrb[53].mxu0 }
 0x166   :  { %v999_v10 = vcombine.high %v743_v18, %v743_v18  ;;  %v1006_v35 = vrot.slane %v743_v18, %v6846_v54  ;;  %v2577_v47 = vsel %vm2539_vm7, %v1788_v24, %v2576_v63  ;;  %v692_v0 = vmax.f32 %v512_v23, 0.0 }
 0x167   :  { %v1802_v17 = vmax.f32 %v1800_v21, %v1801_v60  ;;  %v2578_v9 = vsel %vm2541_vm8, %v1795_v32, %v2577_v47  ;;  %v697_v19 = vmax.f32 %v533_v8, 0.0  ;;  %v525_v20 = vadd.f32 %v7143_v1, %v6978_v57 }
 0x168   :  { %v1013_v52 = vrot.slane %v999_v10, %v6846_v54  ;;  %v1014_v26 = vcombine.high %v1006_v35, %v1006_v35  ;;  %v1803_v58 = vsel %vm374_vm1, %v1006_v35, -inf  ;;  %v744_v6 = vmax.f32 %v692_v0, %v694_v46 }
 0x169   :  { %v1804_v62 = vrot.slane %v1803_v58, 4  ;;  %v7160_v39 = vsel %vm2543_vm9, %v1802_v17, %v2578_v9  ;;  %v695_v63 = vmax.f32 %v525_v20, 0.0  ;;  %v7173_v10 = vadd.f32 %v7143_v1, %v6980_v36 }
 0x16a   :  { %v1015_v45 = vcombine.high %v1013_v52, %v1013_v52  ;;  %v1810_v38 = vsel %vm374_vm1, %v1014_v26, -inf  ;;  %v1817_v15 = vsel %vm374_vm1, %v1013_v52, -inf  ;;  %2672 = vst [vmem:[#allocation2 + $0x61] sm:$0xff] %v7160_v39  ;;  %v1016_v55 = vcombine.high %v744_v6, %v744_v6  ;;  %v7177_v26 = vpop.f32.mrb[54].mxu0 }
 0x16b   :  { %v1805_v16 = vmax.f32 %v1803_v58, %v1804_v62  ;;  %v1811_v12 = vrot.slane %v1810_v38, 4  ;;  %v1818_v42 = vrot.slane %v1817_v15, 4  ;;  %v1023_v24 = vrot.slane %v744_v6, %v6846_v54 }
 0x16c   :  { %v1824_v14 = vsel %vm374_vm1, %v1015_v45, -inf  ;;  %v1030_v46 = vrot.slane %v1016_v55, %v6846_v54  ;;  %v745_v52 = vmax.f32 %v695_v63, %v697_v19 }
 0x16d   :  { %v1806_v18 = vrot.slane %v1805_v16, 2  ;;  %v1812_v40 = vmax.f32 %v1810_v38, %v1811_v12  ;;  %v1819_v49 = vmax.f32 %v1817_v15, %v1818_v42  ;;  %v1825_v21 = vrot.slane %v1824_v14, 4 }
 0x16e   :  { %v1031_v23 = vcombine.high %v1023_v24, %v1023_v24  ;;  %v1831_v47 = vsel %vm374_vm1, %v1023_v24, -inf  ;;  %v1032_v0 = vcombine.high %v1030_v46, %v1030_v46  ;;  %v1845_v38 = vsel %vm374_vm1, %v1030_v46, -inf }
 0x16f   :  { %v1807_v35 = vmax.f32 %v1805_v16, %v1806_v18  ;;  %v1813_v32 = vrot.slane %v1812_v40, 2  ;;  %v1820_v60 = vrot.slane %v1819_v49, 2  ;;  %v1826_v57 = vmax.f32 %v1824_v14, %v1825_v21 }
 0x170   :  { %v1832_v45 = vrot.slane %v1831_v47, 4  ;;  %v1838_v36 = vsel %vm374_vm1, %v1031_v23, -inf  ;;  %v1846_v6 = vrot.slane %v1845_v38, 4  ;;  %v1852_v19 = vsel %vm374_vm1, %v1032_v0, -inf }
 0x171   :  { %v1808_v58 = vrot.slane %v1807_v35, 1  ;;  %v1814_v17 = vmax.f32 %v1812_v40, %v1813_v32  ;;  %v1821_v9 = vmax.f32 %v1819_v49, %v1820_v60  ;;  %v1827_v62 = vrot.slane %v1826_v57, 2 }
 0x172   :  { %v1833_v42 = vmax.f32 %v1831_v47, %v1832_v45  ;;  %v1839_v14 = vrot.slane %v1838_v36, 4  ;;  %v1853_v49 = vrot.slane %v1852_v19, 4  ;;  %v1847_v24 = vmax.f32 %v1845_v38, %v1846_v6 }
 0x173   :  { %v1809_v15 = vmax.f32 %v1807_v35, %v1808_v58  ;;  %v1815_v8 = vrot.slane %v1814_v17, 1  ;;  %v1822_v16 = vrot.slane %v1821_v9, 1  ;;  %v1828_v12 = vmax.f32 %v1826_v57, %v1827_v62 }
 0x174   :  { %v1834_v21 = vrot.slane %v1833_v42, 2  ;;  %v1840_v55 = vmax.f32 %v1838_v36, %v1839_v14  ;;  %v1033_v63 = vcombine.high %v745_v52, %v745_v52  ;;  %v1854_v35 = vmax.f32 %v1852_v19, %v1853_v49 }
 0x175   :  { %v1816_v20 = vmax.f32 %v1814_v17, %v1815_v8  ;;  %v1823_v18 = vmax.f32 %v1821_v9, %v1822_v16  ;;  %v1829_v40 = vrot.slane %v1828_v12, 1  ;;  %v1040_v46 = vrot.slane %v745_v52, %v6846_v54 }
 0x176   :  { %v1835_v23 = vmax.f32 %v1833_v42, %v1834_v21  ;;  %v1841_v47 = vrot.slane %v1840_v55, 2  ;;  %v1848_v58 = vrot.slane %v1847_v24, 2  ;;  %v1855_v62 = vrot.slane %v1854_v35, 2 }
 0x177   :  { %v1830_v32 = vmax.f32 %v1828_v12, %v1829_v40  ;;  %v2580_v60 = vsel %vm2531_vm3, %v1816_v20, %v1809_v15  ;;  %v1047_v9 = vrot.slane %v1033_v63, %v6846_v54  ;;  %v1048_v0 = vcombine.high %v1040_v46, %v1040_v46 }
 0x178   :  { %v2581_v57 = vsel %vm2533_vm4, %v1823_v18, %v2580_v60  ;;  %v1836_v45 = vrot.slane %v1835_v23, 1  ;;  %v1842_v36 = vmax.f32 %v1840_v55, %v1841_v47  ;;  %v1849_v38 = vmax.f32 %v1847_v24, %v1848_v58 }
 0x179   :  { %v2582_v17 = vsel %vm2535_vm5, %v1830_v32, %v2581_v57  ;;  %v1859_v8 = vsel %vm374_vm1, %v1040_v46, -inf  ;;  %v1856_v15 = vmax.f32 %v1854_v35, %v1855_v62  ;;  %v1049_v16 = vcombine.high %v1047_v9, %v1047_v9 }
 0x17a   :  { %v1860_v12 = vrot.slane %v1859_v8, 4  ;;  %v1866_v52 = vsel %vm374_vm1, %v1048_v0, -inf  ;;  %v1837_v14 = vmax.f32 %v1835_v23, %v1836_v45  ;;  %v1843_v42 = vrot.slane %v1842_v36, 1 }
 0x17b   :  { %v1850_v6 = vrot.slane %v1849_v38, 1  ;;  %v1867_v19 = vrot.slane %v1866_v52, 4  ;;  %v1857_v20 = vrot.slane %v1856_v15, 1  ;;  %v1873_v40 = vsel %vm374_vm1, %v1047_v9, -inf }
 0x17c   :  { %v1861_v18 = vmax.f32 %v1859_v8, %v1860_v12  ;;  %v1880_v49 = vsel %vm374_vm1, %v1049_v16, -inf  ;;  %v1844_v21 = vmax.f32 %v1842_v36, %v1843_v42  ;;  %v2583_v24 = vsel %vm2537_vm6, %v1837_v14, %v2582_v17 }
 0x17d   :  { %v1851_v55 = vmax.f32 %v1849_v38, %v1850_v6  ;;  %v1868_v63 = vmax.f32 %v1866_v52, %v1867_v19  ;;  %v1858_v32 = vmax.f32 %v1856_v15, %v1857_v20  ;;  %v1874_v35 = vrot.slane %v1873_v40, 4 }
 0x17e   :  { %v1862_v60 = vrot.slane %v1861_v18, 2  ;;  %v1881_v46 = vrot.slane %v1880_v49, 4  ;;  %v2584_v57 = vsel %vm2539_vm7, %v1844_v21, %v2583_v24  ;;  %v698_v47 = vmax.f32 %v7173_v10, 0.0  ;;  %v7216_v24 = vpop.f32.mrb[55].mxu0 }
 0x17f   :  { %v1869_v23 = vrot.slane %v1868_v63, 2  ;;  %v2725_v58 = vpack.c.bf16 %v7027_v11, %v6965_v41  ;;  %v2585_v62 = vsel %vm2541_vm8, %v1851_v55, %v2584_v57  ;;  %v1875_v0 = vmax.f32 %v1873_v40, %v1874_v35 }
 0x180   :  { %v1863_v9 = vmax.f32 %v1861_v18, %v1862_v60  ;;  %v1882_v45 = vmax.f32 %v1880_v49, %v1881_v46  ;;  %v7198_v17 = vsel %vm2543_vm9, %v1858_v32, %v2585_v62  ;;  %v528_v38 = vadd.f32 %v7143_v1, %v6984_v4 }
 0x181   :  { %v1870_v36 = vmax.f32 %v1868_v63, %v1869_v23  ;;  %6157 = vmatmul.mubr.msk.bf16.vlgmr.msra.gmra.mrb[0].mxu1 %vm2734_vm10, %v2725_v58  ;;  %v549_v10 = vadd.f32 %v7143_v1, %v6997_v33  ;;  %2673 = vst [vmem:[#allocation2 + $0x71] sm:$0xff] %v7198_v17  ;;  %v1876_v11 = vrot.slane %v1875_v0, 2  ;;  %v541_v15 = vadd.f32 %v7143_v1, %v7002_v43 }
 0x182   :  { %v1864_v41 = vrot.slane %v1863_v9, 1  ;;  %v1883_v8 = vrot.slane %v1882_v45, 2  ;;  %v696_v12 = vmax.f32 %v528_v38, 0.0  ;;  %v552_v14 = vadd.f32 %v7143_v1, %v7004_v48 }
 0x183   :  { %v1871_v16 = vrot.slane %v1870_v36, 1  ;;  %v701_v52 = vmax.f32 %v549_v10, 0.0  ;;  %v1877_v6 = vmax.f32 %v1875_v0, %v1876_v11  ;;  %v699_v19 = vmax.f32 %v541_v15, 0.0 }
 0x184   :  { %v1865_v42 = vmax.f32 %v1863_v9, %v1864_v41  ;;  %v1884_v4 = vmax.f32 %v1882_v45, %v1883_v8  ;;  %v746_v33 = vmax.f32 %v696_v12, %v698_v47  ;;  %v702_v18 = vmax.f32 %v552_v14, 0.0 }
 0x185   :  { %v1872_v20 = vmax.f32 %v1870_v36, %v1871_v16  ;;  %v544_v40 = vadd.f32 %v7143_v1, %v7009_v7  ;;  %v1878_v49 = vrot.slane %v1877_v6, 1  ;;  %v747_v55 = vmax.f32 %v699_v19, %v701_v52 }
 0x186   :  { %v1885_v21 = vrot.slane %v1884_v4, 1  ;;  %v7214_v43 = vadd.f32 %v7143_v1, %v7012_v27  ;;  %v1050_v63 = vcombine.high %v746_v33, %v746_v33  ;;  %v1057_v32 = vrot.slane %v746_v33, %v6846_v54 }
 0x187   :  { %v2587_v48 = vsel %vm2531_vm3, %v1872_v20, %v1865_v42  ;;  %v700_v60 = vmax.f32 %v544_v40, 0.0  ;;  %v1879_v35 = vmax.f32 %v1877_v6, %v1878_v49  ;;  %v1067_v57 = vcombine.high %v747_v55, %v747_v55  ;;  %v7234_v6 = vpop.f32.mrb[56].mxu0 }
 0x188   :  { %v1886_v46 = vmax.f32 %v1884_v4, %v1885_v21  ;;  %v1074_v7 = vrot.slane %v747_v55, %v6846_v54  ;;  %v1064_v23 = vrot.slane %v1050_v63, %v6846_v54  ;;  %v1065_v47 = vcombine.high %v1057_v32, %v1057_v32 }
 0x189   :  { %v1887_v58 = vsel %vm374_vm1, %v1057_v32, -inf  ;;  %v7223_v27 = vmax.f32 %v700_v60, %v702_v18  ;;  %v2588_v62 = vsel %vm2533_vm4, %v1879_v35, %v2587_v48  ;;  %v1081_v0 = vrot.slane %v1067_v57, %v6846_v54  ;;  %v7236_v18 = vpop.f32.mrb[57].mxu0 }
 0x18a   :  { %v1888_v9 = vrot.slane %v1887_v58, 4  ;;  %v1082_v45 = vcombine.high %v1074_v7, %v1074_v7  ;;  %v1066_v36 = vcombine.high %v1064_v23, %v1064_v23  ;;  %v1894_v38 = vsel %vm374_vm1, %v1065_v47, -inf  ;;  %v7239_v48 = vpop.f32.mrb[58].mxu0 }
 0x18b   :  { %v1901_v10 = vsel %vm374_vm1, %v1064_v23, -inf  ;;  %v2589_v41 = vsel %vm2535_vm5, %v1886_v46, %v2588_v62  ;;  %v1895_v8 = vrot.slane %v1894_v38, 4  ;;  %v1083_v16 = vcombine.high %v1081_v0, %v1081_v0  ;;  %v7241_v46 = vpop.f32.mrb[59].mxu0 }
 0x18c   :  { %v1889_v11 = vmax.f32 %v1887_v58, %v1888_v9  ;;  %v1902_v15 = vrot.slane %v1901_v10, 4  ;;  %v1908_v12 = vsel %vm374_vm1, %v1066_v36, -inf  ;;  %v1915_v52 = vsel %vm374_vm1, %v1074_v7, -inf  ;;  %8327 = vst [vmem:[#allocation6_spill] sm:$0xff] %v7241_v46 }
 0x18d   :  { %v1922_v14 = vsel %vm374_vm1, %v1082_v45, -inf  ;;  %v1929_v42 = vsel %vm374_vm1, %v1081_v0, -inf  ;;  %v1896_v19 = vmax.f32 %v1894_v38, %v1895_v8  ;;  %v1909_v33 = vrot.slane %v1908_v12, 4 }
 0x18e   :  { %v1890_v4 = vrot.slane %v1889_v11, 2  ;;  %v1903_v20 = vmax.f32 %v1901_v10, %v1902_v15  ;;  %v1916_v40 = vrot.slane %v1915_v52, 4  ;;  %v1923_v49 = vrot.slane %v1922_v14, 4 }
 0x18f   :  { %v1930_v21 = vrot.slane %v1929_v42, 4  ;;  %v1936_v55 = vsel %vm374_vm1, %v1083_v16, -inf  ;;  %v1897_v32 = vrot.slane %v1896_v19, 2  ;;  %v1910_v35 = vmax.f32 %v1908_v12, %v1909_v33 }
 0x190   :  { %v1891_v63 = vmax.f32 %v1889_v11, %v1890_v4  ;;  %v1904_v60 = vrot.slane %v1903_v20, 2  ;;  %v1917_v57 = vmax.f32 %v1915_v52, %v1916_v40  ;;  %v1924_v7 = vmax.f32 %v1922_v14, %v1923_v49 }
 0x191   :  { %v1931_v23 = vmax.f32 %v1929_v42, %v1930_v21  ;;  %v1937_v47 = vrot.slane %v1936_v55, 4  ;;  %v1898_v62 = vmax.f32 %v1896_v19, %v1897_v32  ;;  %v1911_v0 = vrot.slane %v1910_v35, 2  ;;  %v7244_v19 = vpop.f32.mrb[60].mxu0 }
 0x192   :  { %v1892_v58 = vrot.slane %v1891_v63, 1  ;;  %v1905_v9 = vmax.f32 %v1903_v20, %v1904_v60  ;;  %v1918_v45 = vrot.slane %v1917_v57, 2  ;;  %v1925_v36 = vrot.slane %v1924_v7, 2 }
 0x193   :  { %v1932_v38 = vrot.slane %v1931_v23, 2  ;;  %v1938_v10 = vmax.f32 %v1936_v55, %v1937_v47  ;;  %v1899_v15 = vrot.slane %v1898_v62, 1  ;;  %v1912_v16 = vmax.f32 %v1910_v35, %v1911_v0  ;;  %v7246_v55 = vpop.f32.mrb[61].mxu0 }
 0x194   :  { %v1893_v8 = vmax.f32 %v1891_v63, %v1892_v58  ;;  %v1906_v11 = vrot.slane %v1905_v9, 1  ;;  %v1919_v4 = vmax.f32 %v1917_v57, %v1918_v45  ;;  %v1926_v12 = vmax.f32 %v1924_v7, %v1925_v36 }
 0x195   :  { %v1933_v33 = vmax.f32 %v1931_v23, %v1932_v38  ;;  %v1939_v46 = vrot.slane %v1938_v10, 2  ;;  %v1900_v52 = vmax.f32 %v1898_v62, %v1899_v15  ;;  %v1913_v42 = vrot.slane %v1912_v16, 1 }
 0x196   :  { %v1907_v14 = vmax.f32 %v1905_v9, %v1906_v11  ;;  %v2590_v40 = vsel %vm2537_vm6, %v1893_v8, %v2589_v41  ;;  %v1920_v20 = vrot.slane %v1919_v4, 1  ;;  %v1927_v49 = vrot.slane %v1926_v12, 1 }
 0x197   :  { %v1934_v21 = vrot.slane %v1933_v33, 1  ;;  %v1940_v32 = vmax.f32 %v1938_v10, %v1939_v46  ;;  %v1914_v63 = vmax.f32 %v1912_v16, %v1913_v42  ;;  %v2591_v60 = vsel %vm2539_vm7, %v1900_v52, %v2590_v40 }
 0x198   :  { %v1084_v35 = vcombine.high %v7223_v27, %v7223_v27  ;;  %v1091_v57 = vrot.slane %v7223_v27, %v6846_v54  ;;  %v2592_v7 = vsel %vm2541_vm8, %v1907_v14, %v2591_v60  ;;  %v1921_v41 = vmax.f32 %v1919_v4, %v1920_v20 }
 0x199   :  { %v1928_v23 = vmax.f32 %v1926_v12, %v1927_v49  ;;  %v1935_v47 = vmax.f32 %v1933_v33, %v1934_v21  ;;  %v2593_v58 = vsel %vm2543_vm9, %v1914_v63, %v2592_v7  ;;  %v1941_v62 = vrot.slane %v1940_v32, 1 }
 0x19a   :  { %v1098_v46 = vrot.slane %v1084_v35, %v6846_v54  ;;  %v1099_v9 = vcombine.high %v1091_v57, %v1091_v57  ;;  %2674 = vst [vmem:[#allocation2 + $0x81] sm:$0xff] %v2593_v58  ;;  %v1943_v45 = vsel %vm374_vm1, %v1091_v57, -inf  ;;  %v705_v36 = vmax.f32 %v7214_v43, 0.0  ;;  %v7279_v58 = vpop.f32.mrb[62].mxu0 }
 0x19b   :  { %v2594_v0 = vsel %vm2531_vm3, %v1928_v23, %v1921_v41  ;;  %v557_v27 = vadd.f32 %v7143_v1, %v7014_v34  ;;  %v1942_v38 = vmax.f32 %v1940_v32, %v1941_v62  ;;  %v1944_v15 = vrot.slane %v1943_v45, 4 }
 0x19c   :  { %v2595_v10 = vsel %vm2533_vm4, %v1935_v47, %v2594_v0  ;;  %v1100_v8 = vcombine.high %v1098_v46, %v1098_v46  ;;  %v1950_v11 = vsel %vm374_vm1, %v1099_v9, -inf  ;;  %v1957_v16 = vsel %vm374_vm1, %v1098_v46, -inf  ;;  %v7283_v9 = vpop.f32.mrb[63].mxu0 }
 0x19d   :  { %v703_v4 = vmax.f32 %v557_v27, 0.0  ;;  %v7266_v12 = vadd.f32 %v7143_v1, %v7017_v31  ;;  %v1945_v33 = vmax.f32 %v1943_v45, %v1944_v15  ;;  %v1951_v52 = vrot.slane %v1950_v11, 4 }
 0x19e   :  { %v1958_v43 = vrot.slane %v1957_v16, 4  ;;  %v1964_v14 = vsel %vm374_vm1, %v1100_v8, -inf  ;;  %v2596_v42 = vsel %vm2535_vm5, %v1942_v38, %v2595_v10  ;;  %v2726_v63 = vpack.c.bf16 %v7117_v37, %v7074_v59 }
 0x19f   :  { %v1965_v34 = vrot.slane %v1964_v14, 4  ;;  %v749_v40 = vmax.f32 %v703_v4, %v705_v36  ;;  %v706_v20 = vmax.f32 %v7266_v12, 0.0  ;;  %v1946_v49 = vrot.slane %v1945_v33, 2 }
 0x1a0   :  { %v1952_v21 = vmax.f32 %v1950_v11, %v1951_v52  ;;  %v1959_v32 = vmax.f32 %v1957_v16, %v1958_v43  ;;  %v560_v57 = vadd.f32 %v7143_v1, %v7019_v53  ;;  %6160 = vmatprep.mubr.msk.bf16.mxu1 %vm2734_vm10, %v2726_v63  ;;  %v581_v47 = vadd.f32 %v7143_v1, %v7037_v5 }
 0x1a1   :  { %v1966_v60 = vmax.f32 %v1964_v14, %v1965_v34  ;;  %v1101_v31 = vcombine.high %v749_v40, %v749_v40  ;;  %v1108_v35 = vrot.slane %v749_v40, %v6846_v54  ;;  %v1947_v7 = vmax.f32 %v1945_v33, %v1946_v49 }
 0x1a2   :  { %v1953_v41 = vrot.slane %v1952_v21, 2  ;;  %v1960_v23 = vrot.slane %v1959_v32, 2 }
 0x1a3   :  { %v1967_v62 = vrot.slane %v1966_v60, 2  ;;  %v1115_v59 = vrot.slane %v1101_v31, %v6846_v54  ;;  %v1116_v37 = vcombine.high %v1108_v35, %v1108_v35  ;;  %v1971_v46 = vsel %vm374_vm1, %v1108_v35, -inf }
 0x1a4   :  { %v1948_v0 = vrot.slane %v1947_v7, 1  ;;  %v1954_v53 = vmax.f32 %v1952_v21, %v1953_v41  ;;  %v1961_v45 = vmax.f32 %v1959_v32, %v1960_v23  ;;  %v1972_v36 = vrot.slane %v1971_v46, 4 }
 0x1a5   :  { %v1968_v27 = vmax.f32 %v1966_v60, %v1967_v62  ;;  %v1117_v38 = vcombine.high %v1115_v59, %v1115_v59  ;;  %v1978_v10 = vsel %vm374_vm1, %v1116_v37, -inf  ;;  %v1985_v5 = vsel %vm374_vm1, %v1115_v59, -inf }
 0x1a6   :  { %v1949_v8 = vmax.f32 %v1947_v7, %v1948_v0  ;;  %v1955_v15 = vrot.slane %v1954_v53, 1  ;;  %v1962_v11 = vrot.slane %v1961_v45, 1  ;;  %v1973_v16 = vmax.f32 %v1971_v46, %v1972_v36 }
 0x1a7   :  { %v1969_v4 = vrot.slane %v1968_v27, 1  ;;  %v1979_v12 = vrot.slane %v1978_v10, 4  ;;  %v1986_v33 = vrot.slane %v1985_v5, 4  ;;  %v1992_v52 = vsel %vm374_vm1, %v1117_v38, -inf }
 0x1a8   :  { %v1956_v43 = vmax.f32 %v1954_v53, %v1955_v15  ;;  %v1963_v14 = vmax.f32 %v1961_v45, %v1962_v11  ;;  %v2597_v34 = vsel %vm2537_vm6, %v1949_v8, %v2596_v42  ;;  %v1974_v40 = vrot.slane %v1973_v16, 2 }
 0x1a9   :  { %v1970_v49 = vmax.f32 %v1968_v27, %v1969_v4  ;;  %v1980_v21 = vmax.f32 %v1978_v10, %v1979_v12  ;;  %v1987_v32 = vmax.f32 %v1985_v5, %v1986_v33  ;;  %v1993_v63 = vrot.slane %v1992_v52, 4 }
 0x1aa   :  { %v2598_v60 = vsel %vm2539_vm7, %v1956_v43, %v2597_v34  ;;  %v1975_v31 = vmax.f32 %v1973_v16, %v1974_v40  ;;  %v704_v35 = vmax.f32 %v560_v57, 0.0  ;;  %v709_v7 = vmax.f32 %v581_v47, 0.0 }
 0x1ab   :  { %v2599_v41 = vsel %vm2541_vm8, %v1963_v14, %v2598_v60  ;;  %v1981_v23 = vrot.slane %v1980_v21, 2  ;;  %v1988_v62 = vrot.slane %v1987_v32, 2  ;;  %v1994_v59 = vmax.f32 %v1992_v52, %v1993_v63 }
 0x1ac   :  { %v7292_v37 = vsel %vm2543_vm9, %v1970_v49, %v2599_v41  ;;  %v1976_v46 = vrot.slane %v1975_v31, 1  ;;  %v750_v42 = vmax.f32 %v704_v35, %v706_v20  ;;  %v573_v0 = vadd.f32 %v7143_v1, %v7046_v50 }
 0x1ad   :  { %2675 = vst [vmem:[#allocation2 + $0xb1] sm:$0xff] %v7292_v37  ;;  %v1982_v53 = vmax.f32 %v1980_v21, %v1981_v23  ;;  %v1989_v45 = vmax.f32 %v1987_v32, %v1988_v62  ;;  %v1995_v36 = vrot.slane %v1994_v59, 2  ;;  %v7299_v57 = vadd.f32 %v7143_v1, %v7050_v30 }
 0x1ae   :  { %v1977_v47 = vmax.f32 %v1975_v31, %v1976_v46  ;;  %v1118_v27 = vcombine.high %v750_v42, %v750_v42  ;;  %v1125_v38 = vrot.slane %v750_v42, %v6846_v54  ;;  %v707_v10 = vmax.f32 %v573_v0, 0.0 }
 0x1af   :  { %v1983_v5 = vrot.slane %v1982_v53, 1  ;;  %v1990_v8 = vrot.slane %v1989_v45, 1  ;;  %v1996_v20 = vmax.f32 %v1994_v59, %v1995_v36  ;;  %v710_v15 = vmax.f32 %v7299_v57, 0.0 }
 0x1b0   :  { %v1132_v50 = vrot.slane %v1118_v27, %v6846_v54  ;;  %v1133_v11 = vcombine.high %v1125_v38, %v1125_v38  ;;  %v1999_v16 = vsel %vm374_vm1, %v1125_v38, -inf  ;;  %v751_v4 = vmax.f32 %v707_v10, %v709_v7 }
 0x1b1   :  { %v1984_v12 = vmax.f32 %v1982_v53, %v1983_v5  ;;  %v1991_v33 = vmax.f32 %v1989_v45, %v1990_v8  ;;  %v1997_v30 = vrot.slane %v1996_v20, 1  ;;  %v2000_v52 = vrot.slane %v1999_v16, 4 }
 0x1b2   :  { %v1134_v43 = vcombine.high %v1132_v50, %v1132_v50  ;;  %v2006_v14 = vsel %vm374_vm1, %v1133_v11, -inf  ;;  %v2013_v34 = vsel %vm374_vm1, %v1132_v50, -inf  ;;  %v1135_v40 = vcombine.high %v751_v4, %v751_v4 }
 0x1b3   :  { %v1998_v49 = vmax.f32 %v1996_v20, %v1997_v30  ;;  %v2601_v21 = vsel %vm2531_vm3, %v1984_v12, %v1977_v47  ;;  %v2001_v32 = vmax.f32 %v1999_v16, %v2000_v52  ;;  %v2007_v63 = vrot.slane %v2006_v14, 4 }
 0x1b4   :  { %v2602_v60 = vsel %vm2533_vm4, %v1991_v33, %v2601_v21  ;;  %v2014_v31 = vrot.slane %v2013_v34, 4  ;;  %v2020_v35 = vsel %vm374_vm1, %v1134_v43, -inf  ;;  %v1142_v7 = vrot.slane %v751_v4, %v6846_v54 }
 0x1b5   :  { %v2002_v41 = vrot.slane %v2001_v32, 2  ;;  %v2008_v23 = vmax.f32 %v2006_v14, %v2007_v63  ;;  %v2021_v62 = vrot.slane %v2020_v35, 4  ;;  %v2603_v59 = vsel %vm2535_vm5, %v1998_v49, %v2602_v60  ;;  %v7320_v63 = vld [vmem:[%s8320_s2] sm:$0xf] }
 0x1b6   :  { %v2015_v46 = vmax.f32 %v2013_v34, %v2014_v31  ;;  %v1149_v42 = vrot.slane %v1135_v40, %v6846_v54  ;;  %v1150_v0 = vcombine.high %v1142_v7, %v1142_v7  ;;  %v2027_v53 = vsel %vm374_vm1, %v1142_v7, -inf  ;;  %6556 = vmatprep.subr.msk.bf16.mxu1 %vm2759_vm2, %v7320_v63 }
 0x1b7   :  { %v2003_v45 = vmax.f32 %v2001_v32, %v2002_v41  ;;  %v2009_v36 = vrot.slane %v2008_v23, 2  ;;  %v2022_v47 = vmax.f32 %v2020_v35, %v2021_v62  ;;  %v2028_v27 = vrot.slane %v2027_v53, 4 }
 0x1b8   :  { %v2016_v38 = vrot.slane %v2015_v46, 2  ;;  %v1151_v10 = vcombine.high %v1149_v42, %v1149_v42  ;;  %v2034_v5 = vsel %vm374_vm1, %v1150_v0, -inf  ;;  %v2041_v8 = vsel %vm374_vm1, %v1149_v42, -inf }
 0x1b9   :  { %v2004_v20 = vrot.slane %v2003_v45, 1  ;;  %v2010_v50 = vmax.f32 %v2008_v23, %v2009_v36  ;;  %v2023_v11 = vrot.slane %v2022_v47, 2  ;;  %v2029_v16 = vmax.f32 %v2027_v53, %v2028_v27 }
 0x1ba   :  { %v2017_v4 = vmax.f32 %v2015_v46, %v2016_v38  ;;  %v2035_v12 = vrot.slane %v2034_v5, 4  ;;  %v2042_v33 = vrot.slane %v2041_v8, 4  ;;  %v2048_v30 = vsel %vm374_vm1, %v1151_v10, -inf }
 0x1bb   :  { %v2005_v52 = vmax.f32 %v2003_v45, %v2004_v20  ;;  %v2011_v43 = vrot.slane %v2010_v50, 1  ;;  %v2024_v14 = vmax.f32 %v2022_v47, %v2023_v11  ;;  %v2030_v34 = vrot.slane %v2029_v16, 2 }
 0x1bc   :  { %v2018_v40 = vrot.slane %v2017_v4, 1  ;;  %v2036_v49 = vmax.f32 %v2034_v5, %v2035_v12  ;;  %v2043_v21 = vmax.f32 %v2041_v8, %v2042_v33  ;;  %v2049_v32 = vrot.slane %v2048_v30, 4 }
 0x1bd   :  { %v2012_v60 = vmax.f32 %v2010_v50, %v2011_v43  ;;  %v2025_v31 = vrot.slane %v2024_v14, 1  ;;  %v2604_v35 = vsel %vm2537_vm6, %v2005_v52, %v2603_v59  ;;  %v2031_v7 = vmax.f32 %v2029_v16, %v2030_v34 }
 0x1be   :  { %v2019_v41 = vmax.f32 %v2017_v4, %v2018_v40  ;;  %v2037_v23 = vrot.slane %v2036_v49, 2  ;;  %v2044_v62 = vrot.slane %v2043_v21, 2  ;;  %v2050_v46 = vmax.f32 %v2048_v30, %v2049_v32 }
 0x1bf   :  { %v2026_v42 = vmax.f32 %v2024_v14, %v2025_v31  ;;  %v2605_v0 = vsel %vm2539_vm7, %v2012_v60, %v2604_v35  ;;  %v2032_v53 = vrot.slane %v2031_v7, 1  ;;  %v576_v45 = vadd.f32 %v7143_v1, %v7053_v61 }
 0x1c0   :  { %v2606_v36 = vsel %vm2541_vm8, %v2019_v41, %v2605_v0  ;;  %v2038_v47 = vmax.f32 %v2036_v49, %v2037_v23  ;;  %v2045_v27 = vmax.f32 %v2043_v21, %v2044_v62  ;;  %v2051_v59 = vrot.slane %v2050_v46, 2 }
 0x1c1   :  { %v7330_v38 = vsel %vm2543_vm9, %v2026_v42, %v2606_v36  ;;  %v2033_v10 = vmax.f32 %v2031_v7, %v2032_v53  ;;  %v708_v5 = vmax.f32 %v576_v45, 0.0  ;;  %v597_v8 = vadd.f32 %v7143_v1, %v7068_v2 }
 0x1c2   :  { %2676 = vst [vmem:[#allocation2 + $0xc1] sm:$0xff] %v7330_v38  ;;  %v2039_v20 = vrot.slane %v2038_v47, 1  ;;  %v2046_v50 = vrot.slane %v2045_v27, 1  ;;  %v2052_v11 = vmax.f32 %v2050_v46, %v2051_v59  ;;  %v589_v61 = vadd.f32 %v7143_v1, %v7071_v29 }
 0x1c3   :  { %v752_v16 = vmax.f32 %v708_v5, %v710_v15  ;;  %v713_v4 = vmax.f32 %v597_v8, 0.0  ;;  %v600_v12 = vadd.f32 %v7143_v1, %v7077_v44  ;;  %v2727_v33 = vpack.c.bf16 %v7198_v17, %v7160_v39 }
 0x1c4   :  { %v2040_v30 = vmax.f32 %v2038_v47, %v2039_v20  ;;  %v2047_v2 = vmax.f32 %v2045_v27, %v2046_v50  ;;  %v2053_v52 = vrot.slane %v2052_v11, 1  ;;  %v711_v43 = vmax.f32 %v589_v61, 0.0 }
 0x1c5   :  { %v1152_v14 = vcombine.high %v752_v16, %v752_v16  ;;  %v1159_v34 = vrot.slane %v752_v16, %v6846_v54  ;;  %v714_v40 = vmax.f32 %v600_v12, 0.0  ;;  %6161 = vmatmul.mubr.msk.bf16.gmra.mrb[4].mxu1 %vm2734_vm10, %v2727_v33  ;;  %v592_v29 = vadd.f32 %v7143_v1, %v7095_v51 }
 0x1c6   :  { %v2054_v57 = vmax.f32 %v2052_v11, %v2053_v52  ;;  %v2608_v15 = vsel %vm2531_vm3, %v2040_v30, %v2033_v10  ;;  %v753_v44 = vmax.f32 %v711_v43, %v713_v4  ;;  %v7350_v39 = vadd.f32 %v7143_v1, %v7114_v56 }
 0x1c7   :  { %v2609_v17 = vsel %vm2533_vm4, %v2047_v2, %v2608_v15  ;;  %v1166_v49 = vrot.slane %v1152_v14, %v6846_v54  ;;  %v1167_v21 = vcombine.high %v1159_v34, %v1159_v34  ;;  %v2055_v32 = vsel %vm374_vm1, %v1159_v34, -inf }
 0x1c8   :  { %v2056_v60 = vrot.slane %v2055_v32, 4  ;;  %v2610_v31 = vsel %vm2535_vm5, %v2054_v57, %v2609_v17  ;;  %v1169_v35 = vcombine.high %v753_v44, %v753_v44  ;;  %v1176_v51 = vrot.slane %v753_v44, %v6846_v54 }
 0x1c9   :  { %v1168_v7 = vcombine.high %v1166_v49, %v1166_v49  ;;  %v2062_v41 = vsel %vm374_vm1, %v1167_v21, -inf  ;;  %v2069_v23 = vsel %vm374_vm1, %v1166_v49, -inf  ;;  %v712_v56 = vmax.f32 %v592_v29, 0.0 }
 0x1ca   :  { %v2057_v62 = vmax.f32 %v2055_v32, %v2056_v60  ;;  %v2063_v46 = vrot.slane %v2062_v41, 4  ;;  %v2070_v42 = vrot.slane %v2069_v23, 4  ;;  %v1183_v0 = vrot.slane %v1169_v35, %v6846_v54 }
 0x1cb   :  { %v2076_v53 = vsel %vm374_vm1, %v1168_v7, -inf  ;;  %v1184_v45 = vcombine.high %v1176_v51, %v1176_v51  ;;  %v2083_v36 = vsel %vm374_vm1, %v1176_v51, -inf  ;;  %v754_v47 = vmax.f32 %v712_v56, %v714_v40 }
 0x1cc   :  { %v2058_v27 = vrot.slane %v2057_v62, 2  ;;  %v2064_v59 = vmax.f32 %v2062_v41, %v2063_v46  ;;  %v2071_v10 = vmax.f32 %v2069_v23, %v2070_v42  ;;  %v2077_v5 = vrot.slane %v2076_v53, 4 }
 0x1cd   :  { %v1185_v8 = vcombine.high %v1183_v0, %v1183_v0  ;;  %v2084_v20 = vrot.slane %v2083_v36, 4  ;;  %v2090_v50 = vsel %vm374_vm1, %v1184_v45, -inf  ;;  %v2097_v11 = vsel %vm374_vm1, %v1183_v0, -inf }
 0x1ce   :  { %v2059_v61 = vmax.f32 %v2057_v62, %v2058_v27  ;;  %v2065_v16 = vrot.slane %v2064_v59, 2  ;;  %v2072_v4 = vrot.slane %v2071_v10, 2  ;;  %v2078_v12 = vmax.f32 %v2076_v53, %v2077_v5 }
 0x1cf   :  { %v2085_v33 = vmax.f32 %v2083_v36, %v2084_v20  ;;  %v2091_v30 = vrot.slane %v2090_v50, 4  ;;  %v2098_v2 = vrot.slane %v2097_v11, 4  ;;  %v2104_v52 = vsel %vm374_vm1, %v1185_v8, -inf }
 0x1d0   :  { %v2060_v43 = vrot.slane %v2059_v61, 1  ;;  %v2066_v14 = vmax.f32 %v2064_v59, %v2065_v16  ;;  %v2073_v34 = vmax.f32 %v2071_v10, %v2072_v4  ;;  %v2079_v40 = vrot.slane %v2078_v12, 2 }
 0x1d1   :  { %v2086_v29 = vrot.slane %v2085_v33, 2  ;;  %v2092_v57 = vmax.f32 %v2090_v50, %v2091_v30  ;;  %v2099_v15 = vmax.f32 %v2097_v11, %v2098_v2  ;;  %v2105_v44 = vrot.slane %v2104_v52, 4 }
 0x1d2   :  { %v2061_v17 = vmax.f32 %v2059_v61, %v2060_v43  ;;  %v2067_v49 = vrot.slane %v2066_v14, 1  ;;  %v2074_v21 = vrot.slane %v2073_v34, 1  ;;  %v2080_v32 = vmax.f32 %v2078_v12, %v2079_v40 }
 0x1d3   :  { %v2087_v60 = vmax.f32 %v2085_v33, %v2086_v29  ;;  %v2093_v35 = vrot.slane %v2092_v57, 2  ;;  %v2100_v51 = vrot.slane %v2099_v15, 2  ;;  %v2106_v7 = vmax.f32 %v2104_v52, %v2105_v44 }
 0x1d4   :  { %v2068_v41 = vmax.f32 %v2066_v14, %v2067_v49  ;;  %v2075_v23 = vmax.f32 %v2073_v34, %v2074_v21  ;;  %v2081_v56 = vrot.slane %v2080_v32, 1  ;;  %v2611_v62 = vsel %vm2537_vm6, %v2061_v17, %v2610_v31 }
 0x1d5   :  { %v2088_v46 = vrot.slane %v2087_v60, 1  ;;  %v2094_v42 = vmax.f32 %v2092_v57, %v2093_v35  ;;  %v2101_v0 = vmax.f32 %v2099_v15, %v2100_v51  ;;  %v2107_v53 = vrot.slane %v2106_v7, 2 }
 0x1d6   :  { %v2082_v45 = vmax.f32 %v2080_v32, %v2081_v56  ;;  %v2612_v36 = vsel %vm2539_vm7, %v2068_v41, %v2611_v62  ;;  %v1186_v27 = vcombine.high %v754_v47, %v754_v47  ;;  %v1193_v59 = vrot.slane %v754_v47, %v6846_v54 }
 0x1d7   :  { %v2613_v10 = vsel %vm2541_vm8, %v2075_v23, %v2612_v36  ;;  %v2089_v5 = vmax.f32 %v2087_v60, %v2088_v46  ;;  %v2095_v8 = vrot.slane %v2094_v42, 1  ;;  %v2102_v20 = vrot.slane %v2101_v0, 1  ;;  %v7389_v23 = vld [vmem:[%s8324_s6] ss:$0 sm:$0xff] }
 0x1d8   :  { %v7370_v50 = vsel %vm2543_vm9, %v2082_v45, %v2613_v10  ;;  %v2108_v11 = vmax.f32 %v2106_v7, %v2107_v53  ;;  %v1200_v31 = vrot.slane %v1186_v27, %v6846_v54  ;;  %v1201_v61 = vcombine.high %v1193_v59, %v1193_v59 }
 0x1d9   :  { %2677 = vst [vmem:[#allocation2 + $0xd1] sm:$0xff] %v7370_v50  ;;  %v2096_v16 = vmax.f32 %v2094_v42, %v2095_v8  ;;  %v2103_v4 = vmax.f32 %v2101_v0, %v2102_v20  ;;  %v2111_v12 = vsel %vm374_vm1, %v1193_v59, -inf  ;;  %v717_v47 = vmax.f32 %v7350_v39, 0.0 }
 0x1da   :  { %v2109_v33 = vrot.slane %v2108_v11, 1  ;;  %v1202_v30 = vcombine.high %v1200_v31, %v1200_v31  ;;  %v2112_v2 = vrot.slane %v2111_v12, 4  ;;  %v2118_v52 = vsel %vm374_vm1, %v1201_v61, -inf }
 0x1db   :  { %v2615_v43 = vsel %vm2531_vm3, %v2096_v16, %v2089_v5  ;;  %v2119_v14 = vrot.slane %v2118_v52, 4  ;;  %v2125_v34 = vsel %vm374_vm1, %v1200_v31, -inf  ;;  %v605_v40 = vadd.f32 %v7143_v1, %v7124_v25 }
 0x1dc   :  { %v2110_v29 = vmax.f32 %v2108_v11, %v2109_v33  ;;  %v2616_v57 = vsel %vm2533_vm4, %v2103_v4, %v2615_v43  ;;  %v2113_v15 = vmax.f32 %v2111_v12, %v2112_v2  ;;  %v2126_v44 = vrot.slane %v2125_v34, 4 }
 0x1dd   :  { %v2120_v17 = vmax.f32 %v2118_v52, %v2119_v14  ;;  %v2132_v39 = vsel %vm374_vm1, %v1202_v30, -inf  ;;  %v715_v49 = vmax.f32 %v605_v40, 0.0  ;;  %v616_v21 = vadd.f32 %v7143_v1, %v7130_v22 }
 0x1de   :  { %v2114_v32 = vrot.slane %v2113_v15, 2  ;;  %v2127_v60 = vmax.f32 %v2125_v34, %v2126_v44  ;;  %v2133_v35 = vrot.slane %v2132_v39, 4  ;;  %v2617_v51 = vsel %vm2535_vm5, %v2110_v29, %v2616_v57 }
 0x1df   :  { %v2121_v7 = vrot.slane %v2120_v17, 2  ;;  %v755_v41 = vmax.f32 %v715_v49, %v717_v47  ;;  %v718_v25 = vmax.f32 %v616_v21, 0.0  ;;  %v608_v56 = vadd.f32 %v7389_v23, %v7132_v28 }
 0x1e0   :  { %v2115_v62 = vmax.f32 %v2113_v15, %v2114_v32  ;;  %v2128_v46 = vrot.slane %v2127_v60, 2  ;;  %v2134_v42 = vmax.f32 %v2132_v39, %v2133_v35  ;;  %v629_v22 = vadd.f32 %v7389_v23, %v7166_v3 }
 0x1e1   :  { %v2122_v1 = vmax.f32 %v2120_v17, %v2121_v7  ;;  %v1203_v0 = vcombine.high %v755_v41, %v755_v41  ;;  %v1210_v53 = vrot.slane %v755_v41, %v6846_v54  ;;  %v716_v45 = vmax.f32 %v608_v56, 0.0 }
 0x1e2   :  { %v2116_v36 = vrot.slane %v2115_v62, 1  ;;  %v2129_v27 = vmax.f32 %v2127_v60, %v2128_v46  ;;  %v2135_v59 = vrot.slane %v2134_v42, 2  ;;  %v721_v10 = vmax.f32 %v629_v22, 0.0 }
 0x1e3   :  { %v2123_v5 = vrot.slane %v2122_v1, 1  ;;  %v1217_v8 = vrot.slane %v1203_v0, %v6846_v54  ;;  %v1218_v20 = vcombine.high %v1210_v53, %v1210_v53  ;;  %v2139_v28 = vsel %vm374_vm1, %v1210_v53, -inf }
 0x1e4   :  { %v2117_v11 = vmax.f32 %v2115_v62, %v2116_v36  ;;  %v2130_v31 = vrot.slane %v2129_v27, 1  ;;  %v2136_v61 = vmax.f32 %v2134_v42, %v2135_v59  ;;  %v2140_v16 = vrot.slane %v2139_v28, 4 }
 0x1e5   :  { %v2124_v3 = vmax.f32 %v2122_v1, %v2123_v5  ;;  %v1219_v4 = vcombine.high %v1217_v8, %v1217_v8  ;;  %v2146_v12 = vsel %vm374_vm1, %v1218_v20, -inf  ;;  %v2153_v47 = vsel %vm374_vm1, %v1217_v8, -inf }
 0x1e6   :  { %v2131_v33 = vmax.f32 %v2129_v27, %v2130_v31  ;;  %v2137_v30 = vrot.slane %v2136_v61, 1  ;;  %v2618_v2 = vsel %vm2537_vm6, %v2117_v11, %v2617_v51  ;;  %v2141_v52 = vmax.f32 %v2139_v28, %v2140_v16 }
 0x1e7   :  { %v2619_v43 = vsel %vm2539_vm7, %v2124_v3, %v2618_v2  ;;  %v2147_v14 = vrot.slane %v2146_v12, 4  ;;  %v2154_v34 = vrot.slane %v2153_v47, 4  ;;  %v2160_v40 = vsel %vm374_vm1, %v1219_v4, -inf }
 0x1e8   :  { %v2138_v29 = vmax.f32 %v2136_v61, %v2137_v30  ;;  %v2620_v57 = vsel %vm2541_vm8, %v2131_v33, %v2619_v43  ;;  %v2142_v15 = vrot.slane %v2141_v52, 2  ;;  %v2161_v44 = vrot.slane %v2160_v40, 4 }
 0x1e9   :  { %v2148_v17 = vmax.f32 %v2146_v12, %v2147_v14  ;;  %v2155_v39 = vmax.f32 %v2153_v47, %v2154_v34  ;;  %v756_v49 = vmax.f32 %v716_v45, %v718_v25  ;;  %v621_v21 = vadd.f32 %v7389_v23, %v7168_v13 }
 0x1ea   :  { %v7407_v32 = vsel %vm2543_vm9, %v2138_v29, %v2620_v57  ;;  %v2143_v60 = vmax.f32 %v2141_v52, %v2142_v15  ;;  %v2162_v35 = vmax.f32 %v2160_v40, %v2161_v44  ;;  %v7411_v51 = vadd.f32 %v7389_v23, %v7177_v26 }
 0x1eb   :  { %2678 = vst [vmem:[#allocation2 + $0xe1] sm:$0xff] %v7407_v32  ;;  %v2149_v7 = vrot.slane %v2148_v17, 2  ;;  %v2156_v41 = vrot.slane %v2155_v39, 2  ;;  %v1220_v56 = vcombine.high %v756_v49, %v756_v49  ;;  %v1227_v62 = vrot.slane %v756_v49, %v6846_v54 }
 0x1ec   :  { %v2144_v25 = vrot.slane %v2143_v60, 1  ;;  %v2163_v46 = vrot.slane %v2162_v35, 2  ;;  %v719_v42 = vmax.f32 %v621_v21, 0.0  ;;  %v722_v13 = vmax.f32 %v7411_v51, 0.0 }
 0x1ed   :  { %v2150_v22 = vmax.f32 %v2148_v17, %v2149_v7  ;;  %v2157_v1 = vmax.f32 %v2155_v39, %v2156_v41  ;;  %v1234_v0 = vrot.slane %v1220_v56, %v6846_v54  ;;  %v1235_v53 = vcombine.high %v1227_v62, %v1227_v62 }
 0x1ee   :  { %v2145_v45 = vmax.f32 %v2143_v60, %v2144_v25  ;;  %v2164_v26 = vmax.f32 %v2162_v35, %v2163_v46  ;;  %v2167_v36 = vsel %vm374_vm1, %v1227_v62, -inf  ;;  %v757_v27 = vmax.f32 %v719_v42, %v721_v10 }
 0x1ef   :  { %v2151_v59 = vrot.slane %v2150_v22, 1  ;;  %v2158_v5 = vrot.slane %v2157_v1, 1  ;;  %v1236_v8 = vcombine.high %v1234_v0, %v1234_v0  ;;  %v2168_v20 = vrot.slane %v2167_v36, 4 }
 0x1f0   :  { %v2165_v28 = vrot.slane %v2164_v26, 1  ;;  %v2174_v11 = vsel %vm374_vm1, %v1235_v53, -inf  ;;  %v2181_v31 = vsel %vm374_vm1, %v1234_v0, -inf  ;;  %v1237_v61 = vcombine.high %v757_v27, %v757_v27 }
 0x1f1   :  { %v2152_v16 = vmax.f32 %v2150_v22, %v2151_v59  ;;  %v2159_v3 = vmax.f32 %v2157_v1, %v2158_v5  ;;  %v2169_v4 = vmax.f32 %v2167_v36, %v2168_v20  ;;  %v2175_v12 = vrot.slane %v2174_v11, 4  ;;  %v2716_v5 = vld [vmem:[#allocation2 + $0xa1] sm:$0xff] }
 0x1f2   :  { %v2166_v47 = vmax.f32 %v2164_v26, %v2165_v28  ;;  %v2182_v33 = vrot.slane %v2181_v31, 4  ;;  %v2188_v30 = vsel %vm374_vm1, %v1236_v8, -inf  ;;  %v1244_v10 = vrot.slane %v757_v27, %v6846_v54 }
 0x1f3   :  { %v2622_v2 = vsel %vm2531_vm3, %v2152_v16, %v2145_v45  ;;  %v2170_v52 = vrot.slane %v2169_v4, 2  ;;  %v2176_v43 = vmax.f32 %v2174_v11, %v2175_v12  ;;  %v2189_v14 = vrot.slane %v2188_v30, 4 }
 0x1f4   :  { %v2623_v34 = vsel %vm2533_vm4, %v2159_v3, %v2622_v2  ;;  %v2183_v40 = vmax.f32 %v2181_v31, %v2182_v33  ;;  %v1251_v29 = vrot.slane %v1237_v61, %v6846_v54  ;;  %v1252_v57 = vcombine.high %v1244_v10, %v1244_v10 }
 0x1f5   :  { %v2171_v15 = vmax.f32 %v2169_v4, %v2170_v52  ;;  %v2177_v44 = vrot.slane %v2176_v43, 2  ;;  %v2190_v17 = vmax.f32 %v2188_v30, %v2189_v14  ;;  %v2624_v39 = vsel %vm2535_vm5, %v2166_v47, %v2623_v34 }
 0x1f6   :  { %v2184_v49 = vrot.slane %v2183_v40, 2  ;;  %v1253_v21 = vcombine.high %v1251_v29, %v1251_v29  ;;  %v2195_v60 = vsel %vm374_vm1, %v1244_v10, -inf  ;;  %v2202_v35 = vsel %vm374_vm1, %v1252_v57, -inf }
 0x1f7   :  { %v2172_v7 = vrot.slane %v2171_v15, 1  ;;  %v2178_v41 = vmax.f32 %v2176_v43, %v2177_v44  ;;  %v2191_v56 = vrot.slane %v2190_v17, 2  ;;  %v2196_v62 = vrot.slane %v2195_v60, 4 }
 0x1f8   :  { %v2185_v25 = vmax.f32 %v2183_v40, %v2184_v49  ;;  %v2203_v46 = vrot.slane %v2202_v35, 4  ;;  %v2209_v42 = vsel %vm374_vm1, %v1251_v29, -inf  ;;  %v2216_v22 = vsel %vm374_vm1, %v1253_v21, -inf }
 0x1f9   :  { %v2173_v1 = vmax.f32 %v2171_v15, %v2172_v7  ;;  %v2179_v0 = vrot.slane %v2178_v41, 1  ;;  %v2192_v53 = vmax.f32 %v2190_v17, %v2191_v56  ;;  %v2197_v45 = vmax.f32 %v2195_v60, %v2196_v62 }
 0x1fa   :  { %v2186_v26 = vrot.slane %v2185_v25, 1  ;;  %v2204_v36 = vmax.f32 %v2202_v35, %v2203_v46  ;;  %v2210_v27 = vrot.slane %v2209_v42, 4  ;;  %v2217_v59 = vrot.slane %v2216_v22, 4 }
 0x1fb   :  { %v2180_v8 = vmax.f32 %v2178_v41, %v2179_v0  ;;  %v2193_v20 = vrot.slane %v2192_v53, 1  ;;  %v2625_v28 = vsel %vm2537_vm6, %v2173_v1, %v2624_v39  ;;  %v2198_v11 = vrot.slane %v2197_v45, 2  ;;  %v8328_v41 = vld [vmem:[#allocation6_spill] sm:$0xff] }
 0x1fc   :  { %v2187_v31 = vmax.f32 %v2185_v25, %v2186_v26  ;;  %v2205_v61 = vrot.slane %v2204_v36, 2  ;;  %v2211_v16 = vmax.f32 %v2209_v42, %v2210_v27  ;;  %v2218_v3 = vmax.f32 %v2216_v22, %v2217_v59 }
 0x1fd   :  { %v2194_v4 = vmax.f32 %v2192_v53, %v2193_v20  ;;  %v2626_v12 = vsel %vm2539_vm7, %v2180_v8, %v2625_v28  ;;  %v2199_v47 = vmax.f32 %v2197_v45, %v2198_v11  ;;  %v2728_v33 = vpack.c.bf16 %v7292_v37, %v2716_v5 }
 0x1fe   :  { %v2627_v30 = vsel %vm2541_vm8, %v2187_v31, %v2626_v12  ;;  %v2206_v10 = vmax.f32 %v2204_v36, %v2205_v61  ;;  %v2212_v2 = vrot.slane %v2211_v16, 2  ;;  %v2219_v52 = vrot.slane %v2218_v3, 2 }
 0x1ff   :  { %v7435_v43 = vsel %vm2543_vm9, %v2194_v4, %v2627_v30  ;;  %v2200_v14 = vrot.slane %v2199_v47, 1  ;;  %6164 = vmatprep.mubr.msk.bf16.mxu1 %vm2734_vm10, %v2728_v33  ;;  %v624_v34 = vadd.f32 %v7389_v23, %v7216_v24  ;;  %v645_v40 = vadd.f32 %v7389_v23, %v7234_v6 }
 0x200   :  { %2679 = vst [vmem:[#allocation2 + $0xf1] sm:$0xff] %v7435_v43  ;;  %v2207_v37 = vrot.slane %v2206_v10, 1  ;;  %v2213_v29 = vmax.f32 %v2211_v16, %v2212_v2  ;;  %v2220_v57 = vmax.f32 %v2218_v3, %v2219_v52  ;;  %v637_v15 = vadd.f32 %v7389_v23, %v7236_v18 }
 0x201   :  { %v2201_v44 = vmax.f32 %v2199_v47, %v2200_v14  ;;  %v720_v17 = vmax.f32 %v624_v34, 0.0  ;;  %v725_v39 = vmax.f32 %v645_v40, 0.0  ;;  %v7447_v49 = vadd.f32 %v7389_v23, %v7239_v48 }
 0x202   :  { %v2208_v21 = vmax.f32 %v2206_v10, %v2207_v37  ;;  %v2214_v24 = vrot.slane %v2213_v29, 1  ;;  %v2221_v60 = vrot.slane %v2220_v57, 1  ;;  %v723_v35 = vmax.f32 %v637_v15, 0.0 }
 0x203   :  { %v758_v6 = vmax.f32 %v720_v17, %v722_v13  ;;  %v726_v7 = vmax.f32 %v7447_v49, 0.0  ;;  %v7454_v56 = vadd.f32 %v7389_v23, %v8328_v41  ;;  %v7458_v18 = vadd.f32 %v7389_v23, %v7244_v19 }
 0x204   :  { %v2215_v62 = vmax.f32 %v2213_v29, %v2214_v24  ;;  %v2222_v48 = vmax.f32 %v2220_v57, %v2221_v60  ;;  %v2629_v25 = vsel %vm2531_vm3, %v2208_v21, %v2201_v44  ;;  %v759_v46 = vmax.f32 %v723_v35, %v725_v39 }
 0x205   :  { %v1254_v42 = vcombine.high %v758_v6, %v758_v6  ;;  %v1261_v22 = vrot.slane %v758_v6, %v6846_v54  ;;  %v724_v51 = vmax.f32 %v7454_v56, 0.0  ;;  %v729_v13 = vmax.f32 %v7458_v18, 0.0 }
 0x206   :  { %v2630_v1 = vsel %vm2533_vm4, %v2215_v62, %v2629_v25  ;;  %v1271_v0 = vcombine.high %v759_v46, %v759_v46  ;;  %v1278_v53 = vrot.slane %v759_v46, %v6846_v54  ;;  %v7468_v19 = vadd.f32 %v7389_v23, %v7246_v55 }
 0x207   :  { %v1268_v45 = vrot.slane %v1254_v42, %v6846_v54  ;;  %v1269_v26 = vcombine.high %v1261_v22, %v1261_v22  ;;  %v2223_v36 = vsel %vm374_vm1, %v1261_v22, -inf  ;;  %v2631_v27 = vsel %vm2535_vm5, %v2222_v48, %v2630_v1 }
 0x208   :  { %v2224_v59 = vrot.slane %v2223_v36, 4  ;;  %v1285_v5 = vrot.slane %v1271_v0, %v6846_v54  ;;  %v1286_v8 = vcombine.high %v1278_v53, %v1278_v53  ;;  %v2251_v20 = vsel %vm374_vm1, %v1278_v53, -inf }
 0x209   :  { %v1270_v28 = vcombine.high %v1268_v45, %v1268_v45  ;;  %v2230_v11 = vsel %vm374_vm1, %v1269_v26, -inf  ;;  %v2237_v31 = vsel %vm374_vm1, %v1268_v45, -inf  ;;  %v2252_v55 = vrot.slane %v2251_v20, 4 }
 0x20a   :  { %v2225_v61 = vmax.f32 %v2223_v36, %v2224_v59  ;;  %v2231_v16 = vrot.slane %v2230_v11, 4  ;;  %v2238_v3 = vrot.slane %v2237_v31, 4  ;;  %v1287_v4 = vcombine.high %v1285_v5, %v1285_v5 }
 0x20b   :  { %v2244_v12 = vsel %vm374_vm1, %v1270_v28, -inf  ;;  %v2253_v47 = vmax.f32 %v2251_v20, %v2252_v55  ;;  %v2258_v33 = vsel %vm374_vm1, %v1286_v8, -inf  ;;  %v2265_v30 = vsel %vm374_vm1, %v1285_v5, -inf }
 0x20c   :  { %v2226_v10 = vrot.slane %v2225_v61, 2  ;;  %v2232_v2 = vmax.f32 %v2230_v11, %v2231_v16  ;;  %v2239_v52 = vmax.f32 %v2237_v31, %v2238_v3  ;;  %v2245_v14 = vrot.slane %v2244_v12, 4 }
 0x20d   :  { %v2254_v34 = vrot.slane %v2253_v47, 2  ;;  %v2259_v40 = vrot.slane %v2258_v33, 4  ;;  %v2266_v37 = vrot.slane %v2265_v30, 4  ;;  %v2272_v29 = vsel %vm374_vm1, %v1287_v4, -inf }
 0x20e   :  { %v2227_v57 = vmax.f32 %v2225_v61, %v2226_v10  ;;  %v2233_v15 = vrot.slane %v2232_v2, 2  ;;  %v2240_v44 = vrot.slane %v2239_v52, 2  ;;  %v2246_v17 = vmax.f32 %v2244_v12, %v2245_v14 }
 0x20f   :  { %v2255_v39 = vmax.f32 %v2253_v47, %v2254_v34  ;;  %v2260_v21 = vmax.f32 %v2258_v33, %v2259_v40  ;;  %v2267_v24 = vmax.f32 %v2265_v30, %v2266_v37  ;;  %v2273_v60 = vrot.slane %v2272_v29, 4 }
 0x210   :  { %v2228_v35 = vrot.slane %v2227_v57, 1  ;;  %v2234_v6 = vmax.f32 %v2232_v2, %v2233_v15  ;;  %v2241_v41 = vmax.f32 %v2239_v52, %v2240_v44  ;;  %v2247_v62 = vrot.slane %v2246_v17, 2 }
 0x211   :  { %v2256_v48 = vrot.slane %v2255_v39, 1  ;;  %v2261_v25 = vrot.slane %v2260_v21, 2  ;;  %v2268_v46 = vrot.slane %v2267_v24, 2  ;;  %v2274_v42 = vmax.f32 %v2272_v29, %v2273_v60 }
 0x212   :  { %v2229_v22 = vmax.f32 %v2227_v57, %v2228_v35  ;;  %v2235_v1 = vrot.slane %v2234_v6, 1  ;;  %v2242_v0 = vrot.slane %v2241_v41, 1  ;;  %v2248_v53 = vmax.f32 %v2246_v17, %v2247_v62 }
 0x213   :  { %v2257_v45 = vmax.f32 %v2255_v39, %v2256_v48  ;;  %v2262_v26 = vmax.f32 %v2260_v21, %v2261_v25  ;;  %v2269_v36 = vmax.f32 %v2267_v24, %v2268_v46  ;;  %v2275_v59 = vrot.slane %v2274_v42, 2 }
 0x214   :  { %v2236_v5 = vmax.f32 %v2234_v6, %v2235_v1  ;;  %v2243_v8 = vmax.f32 %v2241_v41, %v2242_v0  ;;  %v2249_v20 = vrot.slane %v2248_v53, 1  ;;  %v2632_v28 = vsel %vm2537_vm6, %v2229_v22, %v2631_v27 }
 0x215   :  { %v2263_v11 = vrot.slane %v2262_v26, 1  ;;  %v2270_v31 = vrot.slane %v2269_v36, 1  ;;  %v2276_v55 = vmax.f32 %v2274_v42, %v2275_v59  ;;  %v760_v61 = vmax.f32 %v724_v51, %v726_v7 }
 0x216   :  { %v2250_v16 = vmax.f32 %v2248_v53, %v2249_v20  ;;  %v2633_v3 = vsel %vm2539_vm7, %v2236_v5, %v2632_v28  ;;  %v727_v4 = vmax.f32 %v7468_v19, 0.0  ;;  %v2729_v12 = vpack.c.bf16 %v7370_v50, %v7330_v38 }
 0x217   :  { %v2634_v47 = vsel %vm2541_vm8, %v2243_v8, %v2633_v3  ;;  %v2264_v33 = vmax.f32 %v2262_v26, %v2263_v11  ;;  %v2271_v27 = vmax.f32 %v2269_v36, %v2270_v31  ;;  %v2277_v30 = vrot.slane %v2276_v55, 1 }
 0x218   :  { %v7492_v10 = vsel %vm2543_vm9, %v2250_v16, %v2634_v47  ;;  %v1288_v49 = vcombine.high %v760_v61, %v760_v61  ;;  %v1295_v56 = vrot.slane %v760_v61, %v6846_v54  ;;  %v761_v7 = vmax.f32 %v727_v4, %v729_v13  ;;  %6165 = vmatmul.mubr.msk.bf16.gmra.mrb[8].mxu1 %vm2734_vm10, %v2729_v12 }
 0x219   :  { %2680 = vst [vmem:[#allocation2 + $0x101] sm:$0xff] %v7492_v10  ;;  %v2278_v51 = vmax.f32 %v2276_v55, %v2277_v30  ;;  %v2636_v38 = vsel %vm2531_vm3, %v2264_v33, %v2257_v45  ;;  %v7502_v50 = vadd.f32 %v7389_v23, %v7279_v58  ;;  %v7506_v19 = vadd.f32 %v7389_v23, %v7283_v9 }
 0x21a   :  { %v2637_v2 = vsel %vm2533_vm4, %v2271_v27, %v2636_v38  ;;  %v1302_v18 = vrot.slane %v1288_v49, %v6846_v54  ;;  %v1303_v13 = vcombine.high %v1295_v56, %v1295_v56  ;;  %v2279_v52 = vsel %vm374_vm1, %v1295_v56, -inf }
 0x21b   :  { %v2280_v14 = vrot.slane %v2279_v52, 4  ;;  %v2638_v34 = vsel %vm2535_vm5, %v2278_v51, %v2637_v2  ;;  %v1305_v40 = vcombine.high %v761_v7, %v761_v7  ;;  %v1312_v37 = vrot.slane %v761_v7, %v6846_v54 }
 0x21c   :  { %v1304_v29 = vcombine.high %v1302_v18, %v1302_v18  ;;  %v2286_v58 = vsel %vm374_vm1, %v1303_v13, -inf  ;;  %v2293_v57 = vsel %vm374_vm1, %v1302_v18, -inf  ;;  %v730_v9 = vmax.f32 %v7502_v50, 0.0  ;;  %v5797_v18 = vld [vmem:[%s8320_s2 + $0x8] sm:$0xf] }
 0x21d   :  { %v2281_v23 = vmax.f32 %v2279_v52, %v2280_v14  ;;  %v2287_v15 = vrot.slane %v2286_v58, 4  ;;  %v2294_v44 = vrot.slane %v2293_v57, 4  ;;  %v1319_v17 = vrot.slane %v1305_v40, %v6846_v54 }
 0x21e   :  { %v2300_v39 = vsel %vm374_vm1, %v1304_v29, -inf  ;;  %v1320_v21 = vcombine.high %v1312_v37, %v1312_v37  ;;  %v2307_v24 = vsel %vm374_vm1, %v1312_v37, -inf  ;;  %v728_v60 = vmax.f32 %v7506_v19, 0.0 }
 0x21f   :  { %v2282_v35 = vrot.slane %v2281_v23, 2  ;;  %v2288_v6 = vmax.f32 %v2286_v58, %v2287_v15  ;;  %v2295_v41 = vmax.f32 %v2293_v57, %v2294_v44  ;;  %v2301_v62 = vrot.slane %v2300_v39, 4  ;;  %v7535_v15 = vld [vmem:[#allocation2 + $0x10] sm:$0xff] }
 0x220   :  { %v1321_v48 = vcombine.high %v1319_v17, %v1319_v17  ;;  %v2308_v25 = vrot.slane %v2307_v24, 4  ;;  %v2314_v46 = vsel %vm374_vm1, %v1320_v21, -inf  ;;  %v2321_v42 = vsel %vm374_vm1, %v1319_v17, -inf }
 0x221   :  { %v2283_v22 = vmax.f32 %v2281_v23, %v2282_v35  ;;  %v2289_v1 = vrot.slane %v2288_v6, 2  ;;  %v2296_v0 = vrot.slane %v2295_v41, 2  ;;  %v2302_v53 = vmax.f32 %v2300_v39, %v2301_v62 }
 0x222   :  { %v2309_v45 = vmax.f32 %v2307_v24, %v2308_v25  ;;  %v2315_v26 = vrot.slane %v2314_v46, 4  ;;  %v2322_v36 = vrot.slane %v2321_v42, 4  ;;  %v2328_v59 = vsel %vm374_vm1, %v1321_v48, -inf }
 0x223   :  { %v2284_v5 = vrot.slane %v2283_v22, 1  ;;  %v2290_v8 = vmax.f32 %v2288_v6, %v2289_v1  ;;  %v2297_v20 = vmax.f32 %v2295_v41, %v2296_v0  ;;  %v2303_v28 = vrot.slane %v2302_v53, 2  ;;  %v7548_v6 = vld [vmem:[#allocation2] sm:$0xff] }
 0x224   :  { %v2310_v11 = vrot.slane %v2309_v45, 2  ;;  %v2316_v31 = vmax.f32 %v2314_v46, %v2315_v26  ;;  %v2323_v55 = vmax.f32 %v2321_v42, %v2322_v36  ;;  %v2329_v61 = vrot.slane %v2328_v59, 4  ;;  %6318 = vmatprep.mubr.msk.bf16.mxu0 %vm6652_vm11, %v7548_v6 }
 0x225   :  { %v2285_v16 = vmax.f32 %v2283_v22, %v2284_v5  ;;  %v2291_v3 = vrot.slane %v2290_v8, 1  ;;  %v2298_v4 = vrot.slane %v2297_v20, 1  ;;  %v2304_v12 = vmax.f32 %v2302_v53, %v2303_v28  ;;  %v7559_v5 = vld [vmem:[#allocation2 + $0x30] sm:$0xff] }
 0x226   :  { %v2311_v47 = vmax.f32 %v2309_v45, %v2310_v11  ;;  %v2317_v33 = vrot.slane %v2316_v31, 2  ;;  %v2324_v27 = vrot.slane %v2323_v55, 2  ;;  %v2330_v30 = vmax.f32 %v2328_v59, %v2329_v61  ;;  %v7561_v28 = vld [vmem:[#allocation2 + $0x50] sm:$0xff] }
 0x227   :  { %v2292_v49 = vmax.f32 %v2290_v8, %v2291_v3  ;;  %v2299_v56 = vmax.f32 %v2297_v20, %v2298_v4  ;;  %v2305_v7 = vrot.slane %v2304_v12, 1  ;;  %v2639_v51 = vsel %vm2537_vm6, %v2285_v16, %v2638_v34  ;;  %v7564_v16 = vld [vmem:[#allocation2 + $0x20] sm:$0xff] }
 0x228   :  { %v2312_v38 = vrot.slane %v2311_v47, 1  ;;  %v2318_v50 = vmax.f32 %v2316_v31, %v2317_v33  ;;  %v2325_v19 = vmax.f32 %v2323_v55, %v2324_v27  ;;  %v2331_v2 = vrot.slane %v2330_v30, 2 }
 0x229   :  { %v2306_v13 = vmax.f32 %v2304_v12, %v2305_v7  ;;  %v2640_v52 = vsel %vm2539_vm7, %v2292_v49, %v2639_v51  ;;  %v762_v14 = vmax.f32 %v728_v60, %v730_v9  ;;  %v2885_v40 = vsel %vm2759_vm2, %v7320_v63, 0 }
 0x22a   :  { %v2641_v37 = vsel %vm2541_vm8, %v2299_v56, %v2640_v52  ;;  %v2319_v29 = vrot.slane %v2318_v50, 1  ;;  %6173 = vmatpush3.bf16.msra.mxu1 %v2885_v40  ;;  %v2332_v58 = vmax.f32 %v2330_v30, %v2331_v2  ;;  %v2313_v9 = vmax.f32 %v2311_v47, %v2312_v38  ;;  %v7571_v47 = vld [vmem:[#allocation2 + $0x40] sm:$0xff]  ;;  %v7580_v56 = vld [vmem:[%s8320_s2 + $0xc] sm:$0xf] }
 0x22b   :  { %v7532_v34 = vsel %vm2543_vm9, %v2306_v13, %v2641_v37  ;;  %v1322_v57 = vcombine.high %v762_v14, %v762_v14  ;;  %v1329_v23 = vrot.slane %v762_v14, %v6846_v54  ;;  %6557 = vmatprep.subr.msk.bf16.mxu1 %vm2759_vm2, %v5797_v18  ;;  %v2326_v44 = vrot.slane %v2325_v19, 1  ;;  %v7590_v14 = vld [vmem:[#allocation2 + $0x70] sm:$0xff] }
 0x22c   :  { %2681 = vst [vmem:[#allocation2 + $0x111] sm:$0xff] %v7532_v34  ;;  %v2730_v63 = vpack.c.bf16 %v7435_v43, %v7407_v32  ;;  %v7543_v17 = vpack.c.bf16 %v7532_v34, %v7492_v10  ;;  %v2320_v39 = vmax.f32 %v2318_v50, %v2319_v29  ;;  %v2699_v41 = vpack.c.bf16 %v7535_v15, %v7548_v6  ;;  %v7592_v37 = vld [vmem:[#allocation2 + $0xb0] sm:$0xff] }
 0x22d   :  { %v1336_v21 = vrot.slane %v1322_v57, %v6846_v54  ;;  %v1337_v24 = vcombine.high %v1329_v23, %v1329_v23  ;;  %v2335_v60 = vsel %vm374_vm1, %v1329_v23, -inf  ;;  %v2333_v62 = vrot.slane %v2332_v58, 1  ;;  %v7595_v57 = vld [vmem:[#allocation2 + $0x60] sm:$0xff]  ;;  %v7597_v23 = vld [vmem:[#allocation2 + $0x12] sm:$0xff] }
 0x22e   :  { %v2336_v35 = vrot.slane %v2335_v60, 4  ;;  %6168 = vmatprep.mubr.msk.bf16.mxu1 %vm2734_vm10, %v2730_v63  ;;  %v2327_v46 = vmax.f32 %v2325_v19, %v2326_v44  ;;  %v2643_v0 = vsel %vm2531_vm3, %v2320_v39, %v2313_v9  ;;  %v7568_v4 = vpack.c.bf16 %v7559_v5, %v7564_v16  ;;  %v7599_v9 = vld [vmem:[#allocation2 + $0x22] sm:$0xff]  ;;  %v7606_v39 = vld [vmem:[#allocation2 + $0x32] sm:$0xff] }
 0x22f   :  { %v1338_v48 = vcombine.high %v1336_v21, %v1336_v21  ;;  %v2342_v25 = vsel %vm374_vm1, %v1337_v24, -inf  ;;  %6169 = vmatmul.mubr.msk.bf16.gmra.mrb[12].mxu1 %vm2734_vm10, %v7543_v17  ;;  %v2349_v1 = vsel %vm374_vm1, %v1336_v21, -inf  ;;  %v2334_v8 = vmax.f32 %v2332_v58, %v2333_v62  ;;  %v7608_v21 = vld [vmem:[#allocation2 + $0x42] sm:$0xff]  ;;  %v7610_v24 = vld [vmem:[#allocation2 + $0x52] sm:$0xff] }
 0x230   :  { %v2337_v42 = vmax.f32 %v2335_v60, %v2336_v35  ;;  %v2343_v22 = vrot.slane %v2342_v25, 4  ;;  %6174 = vmatprep.mubr.msk.bf16.mxu1 %vm2734_vm10, %v2699_v41  ;;  %v2350_v53 = vrot.slane %v2349_v1, 4  ;;  %v2644_v11 = vsel %vm2533_vm4, %v2327_v46, %v2643_v0  ;;  %v7612_v60 = vld [vmem:[#allocation2 + $0x62] sm:$0xff]  ;;  %v7614_v35 = vld [vmem:[#allocation2 + $0x31] sm:$0xff] }
 0x231   :  { %v2356_v45 = vsel %vm374_vm1, %v1338_v48, -inf  ;;  %v3035_v12 = vsel %vm2759_vm2, %v5797_v18, 0  ;;  %v7575_v49 = vpack.c.bf16 %v7561_v28, %v7571_v47  ;;  %v2645_v51 = vsel %vm2535_vm5, %v2334_v8, %v2644_v11  ;;  %v7621_v48 = vld [vmem:[#allocation2 + $0xc2] sm:$0xff] }
 0x232   :  { %v2338_v26 = vrot.slane %v2337_v42, 2  ;;  %v2344_v36 = vmax.f32 %v2342_v25, %v2343_v22  ;;  %v2357_v59 = vrot.slane %v2356_v45, 4  ;;  %v2351_v20 = vmax.f32 %v2349_v1, %v2350_v53  ;;  %v7623_v25 = vld [vmem:[#allocation2 + $0xe2] sm:$0xff]  ;;  %v7632_v22 = vld [vmem:[#allocation2 + $0x51] sm:$0xff] }
 0x233   :  { %v7604_v63 = vpack.c.bf16 %v7590_v14, %v7595_v57  ;;  %v2703_v62 = vpack.c.bf16 %v7592_v37, %v7548_v6  ;;  %v7625_v46 = vld [vmem:[#allocation2 + $0x102] sm:$0xff]  ;;  %v7634_v1 = vld [vmem:[#allocation2 + $0x71] sm:$0xff]  ;;  %v3338_v0 = vpack.c.bf16 %v7492_v10, %v7435_v43  ;;  %v3168_v8 = vpack.c.bf16 %v7595_v57, %v7561_v28  ;;  %v5842_v43 = vld [vmem:[%s8320_s2 + $0x1c] sm:$0xf] }
 0x234   :  { %v2339_v31 = vmax.f32 %v2337_v42, %v2338_v26  ;;  %v2345_v55 = vrot.slane %v2344_v36, 2  ;;  %v2358_v61 = vmax.f32 %v2356_v45, %v2357_v59  ;;  %v2352_v3 = vrot.slane %v2351_v20, 2  ;;  %v7630_v42 = vld [vmem:[#allocation2 + $0xb2] sm:$0xff]  ;;  %v7653_v11 = vld [vmem:[#allocation2 + $0x21] sm:$0xff] }
 0x235   :  { %v7643_v26 = vld [vmem:[#allocation2 + $0xd2] sm:$0xff]  ;;  %v8330_v10 = vpack.c.bf16 %v7608_v21, %v7606_v39 }
 0x236   :  { %v2340_v33 = vrot.slane %v2339_v31, 1  ;;  %v2346_v27 = vmax.f32 %v2344_v36, %v2345_v55  ;;  %v2359_v30 = vrot.slane %v2358_v61, 2  ;;  %v2353_v7 = vmax.f32 %v2351_v20, %v2352_v3  ;;  %v7645_v36 = vld [vmem:[#allocation2 + $0xf2] sm:$0xff]  ;;  %v7657_v55 = vld [vmem:[#allocation2 + $0x61] sm:$0xff] }
 0x237   :  { %6175 = vmatmul.mubr.msk.bf16.vlgmr.msra.gmra.mrb[0].mxu1 %vm2734_vm10, %v7568_v4  ;;  %v7647_v59 = vld [vmem:[#allocation2 + $0xd1] sm:$0xff] }
 0x238   :  { %v2341_v38 = vmax.f32 %v2339_v31, %v2340_v33  ;;  %v2347_v50 = vrot.slane %v2346_v27, 1  ;;  %v2360_v19 = vmax.f32 %v2358_v61, %v2359_v30  ;;  %6191 = vmatpush3.bf16.msra.mxu1 %v3035_v12  ;;  %6178 = vmatprep.mubr.msk.bf16.mxu1 %vm2734_vm10, %v7575_v49  ;;  %v2354_v2 = vrot.slane %v2353_v7, 1  ;;  %v7655_v31 = vld [vmem:[#allocation2 + $0x41] sm:$0xff]  ;;  %v2694_v33 = vld [vmem:[#allocation2 + $0xd0] sm:$0xff] }
 0x239   :  { %6558 = vmatprep.subr.msk.bf16.mxu1 %vm2759_vm2, %v7580_v56  ;;  %v7723_v12 = vpack.c.bf16 %v7645_v36, %v7623_v25  ;;  %v3167_v61 = vpack.c.bf16 %v7571_v47, %v7559_v5  ;;  %v5824_v45 = vld [vmem:[%s8320_s2 + $0x14] sm:$0xf] }
 0x23a   :  { %v2348_v18 = vmax.f32 %v2346_v27, %v2347_v50  ;;  %v2361_v13 = vrot.slane %v2360_v19, 1  ;;  %v2646_v52 = vsel %vm2537_vm6, %v2341_v38, %v2645_v51  ;;  %v2355_v40 = vmax.f32 %v2353_v7, %v2354_v2  ;;  %v7665_v27 = vld [vmem:[#allocation2 + $0xc1] sm:$0xff]  ;;  %v2696_v38 = vld [vmem:[#allocation2 + $0xf0] sm:$0xff] }
 0x23b   :  { %v3201_v50 = vsel %vm2759_vm2, %v7580_v56, 0  ;;  %v7697_v51 = vpack.c.bf16 %v7610_v24, %v7608_v21  ;;  %v2992_v56 = vld [vmem:[#allocation2 + $0xa2] sm:$0xff]  ;;  %v8334_v21 = vpack.c.bf16 %v7625_v46, %v7645_v36 }
 0x23c   :  { %v2362_v29 = vmax.f32 %v2360_v19, %v2361_v13  ;;  %v2647_v58 = vsel %vm2539_vm7, %v2348_v18, %v2646_v52  ;;  %v2693_v19 = vld [vmem:[#allocation2 + $0xc0] sm:$0xff]  ;;  %v2698_v52 = vld [vmem:[#allocation2 + $0x110] sm:$0xff]  ;;  %v3004_v30 = vpack.c.bf16 %v7630_v42, %v2992_v56 }
 0x23d   :  { %v2648_v44 = vsel %vm2541_vm8, %v2355_v40, %v2647_v58  ;;  %v7675_v2 = vpack.c.bf16 %v2694_v33, %v2693_v19  ;;  %v2695_v18 = vld [vmem:[#allocation2 + $0xe0] sm:$0xff]  ;;  %v7729_v56 = vld [vmem:[#allocation2 + $0x112] sm:$0xff]  ;;  %v3170_v5 = vpack.c.bf16 %v2693_v19, %v7592_v37  ;;  %v3533_v37 = vsel %vm2759_vm2, %v5824_v45, 0 }
 0x23e   :  { %v7617_v41 = vsel %vm2543_vm9, %v2362_v29, %v2648_v44  ;;  %v7677_v13 = vpack.c.bf16 %v2696_v38, %v2695_v18  ;;  %v2984_v40 = vld [vmem:[#allocation2 + $0x2] sm:$0xff]  ;;  %v7733_v3 = vpack.c.bf16 %v7729_v56, %v7625_v46  ;;  %v3171_v28 = vpack.c.bf16 %v2695_v18, %v2694_v33 }
 0x23f   :  { %2682 = vst [vmem:[#allocation2 + $0x121] sm:$0xff] %v7617_v41  ;;  %6179 = vmatmul.mubr.msk.bf16.gmra.mrb[4].mxu1 %vm2734_vm10, %v7604_v63  ;;  %v3339_v53 = vpack.c.bf16 %v7617_v41, %v7532_v34  ;;  %v2697_v29 = vld [vmem:[#allocation2 + $0x100] sm:$0xff]  ;;  %v3000_v44 = vpack.c.bf16 %v7597_v23, %v2984_v40  ;;  %v5815_v40 = vld [vmem:[%s8320_s2 + $0x10] sm:$0xf]  ;;  %v3334_v33 = vpack.c.bf16 %v7657_v55, %v7632_v22 }
 0x240   :  { %6182 = vmatprep.mubr.msk.bf16.mxu1 %vm2734_vm10, %v2703_v62  ;;  %v7683_v58 = vpack.c.bf16 %v2698_v52, %v2697_v29  ;;  %v7691_v62 = vpack.c.bf16 %v7606_v39, %v7599_v9  ;;  %v3367_v20 = vsel %vm2759_vm2, %v5815_v40, 0  ;;  %v3172_v47 = vpack.c.bf16 %v2697_v29, %v2696_v38  ;;  %v5833_v38 = vld [vmem:[%s8320_s2 + $0x18] sm:$0xf]  ;;  %v3323_v19 = vld [vmem:[#allocation2 + $0x81] sm:$0xff] }
 0x241   :  { %v3335_v18 = vpack.c.bf16 %v3323_v19, %v7634_v1  ;;  %v3337_v29 = vpack.c.bf16 %v7407_v32, %v7647_v59  ;;  %v3700_v32 = vsel %vm2759_vm2, %v5833_v38, 0  ;;  %v8331_v34 = vpack.c.bf16 %v7612_v60, %v7610_v24 }
 0x242   :  { %v8333_v39 = vpack.c.bf16 %v7623_v25, %v7643_v26  ;;  %v5851_v25 = vld [vmem:[%s8320_s2 + $0x20] sm:$0xf] }
 0x246   :  { %v3165_v57 = vld [vmem:[#allocation2 + $0x120] sm:$0xff] }
 0x247   :  { %6183 = vmatmul.mubr.msk.bf16.gmra.mrb[8].mxu1 %vm2734_vm10, %v7675_v2  ;;  %v3497_v24 = vld [vmem:[#allocation2 + $0x122] sm:$0xff] }
 0x248   :  { %6186 = vmatprep.mubr.msk.bf16.mxu1 %vm2734_vm10, %v7677_v13 }
 0x24f   :  { %6187 = vmatmul.mubr.msk.bf16.gmra.mrb[12].mxu1 %vm2734_vm10, %v7683_v58 }
 0x250   :  { %6192 = vmatprep.mubr.msk.bf16.mxu1 %vm2734_vm10, %v3000_v44  ;;  %v7707_v44 = vld [vmem:[#allocation2 + $0x72] sm:$0xff] }
 0x251   :  { %v7711_v7 = vpack.c.bf16 %v7707_v44, %v7612_v60  ;;  %v3505_v60 = vpack.c.bf16 %v3497_v24, %v7729_v56 }
 0x257   :  { %6193 = vmatmul.mubr.msk.bf16.vlgmr.msra.gmra.mrb[0].mxu1 %vm2734_vm10, %v7691_v62 }
 0x258   :  { %6209 = vmatpush3.bf16.msra.mxu1 %v3201_v50  ;;  %6196 = vmatprep.mubr.msk.bf16.mxu1 %vm2734_vm10, %v7697_v51  ;;  %v7719_v50 = vpack.c.bf16 %v7643_v26, %v7621_v48  ;;  %v3822_v26 = vld [vmem:[#allocation2 + $0x91] sm:$0xff] }
 0x259   :  { %6559 = vmatprep.subr.msk.bf16.mxu1 %vm2759_vm2, %v5815_v40  ;;  %v6603_v40 = vld [vmem:[%s8321_s3 + $0x8] sm:$0xff]   ;;  %v3834_v36 = vpack.c.bf16 %v3822_v26, %v3323_v19 }
 0x25a   :  { %6317 = vmatpush3.bf16.msra.mxu0 %v6603_v40 }
 0x25b   :  { %6322 = vmatprep.subr.bf16.mxu0 %v7548_v6 }
 0x25f   :  { %6197 = vmatmul.mubr.msk.bf16.gmra.mrb[4].mxu1 %vm2734_vm10, %v7711_v7 }
 0x260   :  { %6200 = vmatprep.mubr.msk.bf16.mxu1 %vm2734_vm10, %v3004_v30  ;;  %v3166_v30 = vpack.c.bf16 %v7564_v16, %v7535_v15  ;;  %v3157_v15 = vld [vmem:[#allocation2 + $0x80] sm:$0xff] }
 0x261   :  { %v3169_v16 = vpack.c.bf16 %v3157_v15, %v7590_v14  ;;  %v3333_v14 = vpack.c.bf16 %v7655_v31, %v7614_v35  ;;  %v3668_v46 = vpack.c.bf16 %v7548_v6, %v3157_v15 }
 0x267   :  { %6201 = vmatmul.mubr.msk.bf16.gmra.mrb[8].mxu1 %vm2734_vm10, %v7719_v50 }
 0x268   :  { %6204 = vmatprep.mubr.msk.bf16.mxu1 %vm2734_vm10, %v7723_v12 }
 0x26f   :  { %6205 = vmatmul.mubr.msk.bf16.gmra.mrb[12].mxu1 %vm2734_vm10, %v7733_v3 }
 0x270   :  { %6210 = vmatprep.mubr.msk.bf16.mxu1 %vm2734_vm10, %v3166_v30  ;;  %v8329_v30 = vpack.c.bf16 %v7599_v9, %v7597_v23  ;;  %v3489_v23 = vld [vmem:[#allocation2 + $0x82] sm:$0xff] }
 0x271   :  { %v3501_v9 = vpack.c.bf16 %v3489_v23, %v7707_v44 }
 0x277   :  { %6211 = vmatmul.mubr.msk.bf16.vlgmr.msra.gmra.mrb[0].mxu1 %vm2734_vm10, %v3167_v61 }
 0x278   :  { %6227 = vmatpush3.bf16.msra.mxu1 %v3367_v20  ;;  %6214 = vmatprep.mubr.msk.bf16.mxu1 %vm2734_vm10, %v3168_v8  ;;  %v3173_v20 = vpack.c.bf16 %v3165_v57, %v2698_v52  ;;  %v3316_v8 = vld [vmem:[#allocation2 + $0x11] sm:$0xff] }
 0x279   :  { %6560 = vmatprep.subr.msk.bf16.mxu1 %vm2759_vm2, %v5824_v45  ;;  %v3332_v61 = vpack.c.bf16 %v7653_v11, %v3316_v8  ;;  %v3324_v52 = vld [vmem:[#allocation2 + $0xb1] sm:$0xff] }
 0x27a   :  { %v3336_v45 = vpack.c.bf16 %v7665_v27, %v3324_v52 }
 0x27f   :  { %6215 = vmatmul.mubr.msk.bf16.gmra.mrb[4].mxu1 %vm2734_vm10, %v3169_v16 }
 0x280   :  { %6218 = vmatprep.mubr.msk.bf16.mxu1 %vm2734_vm10, %v3170_v5 }
 0x287   :  { %6219 = vmatmul.mubr.msk.bf16.gmra.mrb[8].mxu1 %vm2734_vm10, %v3171_v28 }
 0x288   :  { %6222 = vmatprep.mubr.msk.bf16.mxu1 %vm2734_vm10, %v3172_v47 }
 0x28f   :  { %6223 = vmatmul.mubr.msk.bf16.gmra.mrb[12].mxu1 %vm2734_vm10, %v3173_v20 }
 0x290   :  { %6228 = vmatprep.mubr.msk.bf16.mxu1 %vm2734_vm10, %v3332_v61 }
 0x297   :  { %6229 = vmatmul.mubr.msk.bf16.vlgmr.msra.gmra.mrb[0].mxu1 %vm2734_vm10, %v3333_v14 }
 0x298   :  { %6245 = vmatpush3.bf16.msra.mxu1 %v3533_v37  ;;  %6232 = vmatprep.mubr.msk.bf16.mxu1 %vm2734_vm10, %v3334_v33 }
 0x299   :  { %6561 = vmatprep.subr.msk.bf16.mxu1 %vm2759_vm2, %v5833_v38 }
 0x29f   :  { %6233 = vmatmul.mubr.msk.bf16.gmra.mrb[4].mxu1 %vm2734_vm10, %v3335_v18 }
 0x2a0   :  { %6236 = vmatprep.mubr.msk.bf16.mxu1 %vm2734_vm10, %v3336_v45 }
 0x2a7   :  { %6237 = vmatmul.mubr.msk.bf16.gmra.mrb[8].mxu1 %vm2734_vm10, %v3337_v29 }
 0x2a8   :  { %6240 = vmatprep.mubr.msk.bf16.mxu1 %vm2734_vm10, %v3338_v0  ;;  %v8332_v0 = vpack.c.bf16 %v7621_v48, %v7630_v42  ;;  %v3866_v48 = vsel %vm2759_vm2, %v5842_v43, 0  ;;  %v8336_v42 = vpack.c.bf16 %v7632_v22, %v7655_v31 }
 0x2af   :  { %6241 = vmatmul.mubr.msk.bf16.gmra.mrb[12].mxu1 %vm2734_vm10, %v3339_v53  ;;  %v8337_v53 = vpack.c.bf16 %v7634_v1, %v7657_v55  ;;  %v3830_v1 = vld [vmem:[#allocation2 + $0x131] sm:$0xff] }
 0x2b0   :  { %6246 = vmatprep.mubr.msk.bf16.mxu1 %vm2734_vm10, %v8329_v30  ;;  %v3838_v31 = vpack.c.bf16 %v3830_v1, %v7617_v41 }
 0x2b7   :  { %6247 = vmatmul.mubr.msk.bf16.vlgmr.msra.gmra.mrb[0].mxu1 %vm2734_vm10, %v8330_v10 }
 0x2b8   :  { %6263 = vmatpush3.bf16.msra.mxu1 %v3700_v32  ;;  %6250 = vmatprep.mubr.msk.bf16.mxu1 %vm2734_vm10, %v8331_v34 }
 0x2b9   :  { %6562 = vmatprep.subr.msk.bf16.mxu1 %vm2759_vm2, %v5842_v43 }
 0x2bf   :  { %6251 = vmatmul.mubr.msk.bf16.gmra.mrb[4].mxu1 %vm2734_vm10, %v3501_v9 }
 0x2c0   :  { %6254 = vmatprep.mubr.msk.bf16.mxu1 %vm2734_vm10, %v8332_v0 }
 0x2c7   :  { %6255 = vmatmul.mubr.msk.bf16.gmra.mrb[8].mxu1 %vm2734_vm10, %v8333_v39 }
 0x2c8   :  { %6258 = vmatprep.mubr.msk.bf16.mxu1 %vm2734_vm10, %v8334_v21 }
 0x2cf   :  { %6259 = vmatmul.mubr.msk.bf16.gmra.mrb[12].mxu1 %vm2734_vm10, %v3505_v60 }
 0x2d0   :  { %6264 = vmatprep.mubr.msk.bf16.mxu1 %vm2734_vm10, %v7568_v4  ;;  %v3672_v4 = vpack.c.bf16 %v7548_v6, %v3165_v57 }
 0x2d7   :  { %6265 = vmatmul.mubr.msk.bf16.vlgmr.msra.gmra.mrb[0].mxu1 %vm2734_vm10, %v7575_v49  ;;  %v8335_v49 = vpack.c.bf16 %v7614_v35, %v7653_v11  ;;  %v8338_v35 = vpack.c.bf16 %v7647_v59, %v7665_v27  ;;  %v3826_v11 = vld [vmem:[#allocation2 + $0xf1] sm:$0xff]  ;;  %v7886_v27 = vld [vmem:[%s8324_s6 + $0x1] ss:$0 sm:$0xff] }
 0x2d8   :  { %6281 = vmatpush3.bf16.msra.mxu1 %v3866_v48  ;;  %6268 = vmatprep.mubr.msk.bf16.mxu1 %vm2734_vm10, %v7604_v63  ;;  %v4032_v63 = vsel %vm2759_vm2, %v5851_v25, 0  ;;  %v3988_v59 = vld [vmem:[#allocation2 + $0x92] sm:$0xff] }
 0x2d9   :  { %6563 = vmatprep.subr.msk.bf16.mxu1 %vm2759_vm2, %v5851_v25  ;;  %v4000_v55 = vpack.c.bf16 %v3988_v59, %v3489_v23 }
 0x2df   :  { %6269 = vmatmul.mubr.msk.bf16.gmra.mrb[4].mxu1 %vm2734_vm10, %v3668_v46 }
 0x2e0   :  { %6272 = vmatprep.mubr.msk.bf16.mxu1 %vm2734_vm10, %v7675_v2  ;;  %v3825_v2 = vld [vmem:[#allocation2 + $0xe1] sm:$0xff] }
 0x2e1   :  { %v3836_v22 = vpack.c.bf16 %v3826_v11, %v3825_v2 }
 0x2e7   :  { %6273 = vmatmul.mubr.msk.bf16.gmra.mrb[8].mxu1 %vm2734_vm10, %v7677_v13 }
 0x2e8   :  { %6276 = vmatprep.mubr.msk.bf16.mxu1 %vm2734_vm10, %v7683_v58 }
 0x2ef   :  { %6277 = vmatmul.mubr.msk.bf16.gmra.mrb[12].mxu1 %vm2734_vm10, %v3672_v4 }
 0x2f0   :  { %6282 = vmatprep.mubr.msk.bf16.mxu1 %vm2734_vm10, %v8335_v49 }
 0x2f7   :  { %6283 = vmatmul.mubr.msk.bf16.vlgmr.msra.gmra.mrb[0].mxu1 %vm2734_vm10, %v8336_v42 }
 0x2f8   :  { %6299 = vmatpush3.bf16.msra.mxu1 %v4032_v63  ;;  %6286 = vmatprep.mubr.msk.bf16.mxu1 %vm2734_vm10, %v8337_v53 }
 0x2ff   :  { %6287 = vmatmul.mubr.msk.bf16.gmra.mrb[4].mxu1 %vm2734_vm10, %v3834_v36 }
 0x300   :  { %6290 = vmatprep.mubr.msk.bf16.mxu1 %vm2734_vm10, %v8338_v35 }
 0x307   :  { %6291 = vmatmul.mubr.msk.bf16.gmra.mrb[8].mxu1 %vm2734_vm10, %v3836_v22 }
 0x308   :  { %6294 = vmatprep.mubr.msk.bf16.mxu1 %vm2734_vm10, %v7543_v17  ;;  %v3996_v17 = vld [vmem:[#allocation2 + $0x132] sm:$0xff] }
 0x309   :  { %v4004_v41 = vpack.c.bf16 %v3996_v17, %v3497_v24 }
 0x30f   :  { %6295 = vmatmul.mubr.msk.bf16.gmra.mrb[12].mxu1 %vm2734_vm10, %v3838_v31 }
 0x310   :  { %6300 = vmatprep.mubr.msk.bf16.mxu1 %vm2734_vm10, %v7691_v62 }
 0x317   :  { %6301 = vmatmul.mubr.msk.bf16.vlgmr.msra.gmra.mrb[0].mxu1 %vm2734_vm10, %v7697_v51 }
 0x318   :  { %6304 = vmatprep.mubr.msk.bf16.mxu1 %vm2734_vm10, %v7711_v7 }
 0x31f   :  { %6305 = vmatmul.mubr.msk.bf16.gmra.mrb[4].mxu1 %vm2734_vm10, %v4000_v55 }
 0x320   :  { %6308 = vmatprep.mubr.msk.bf16.mxu1 %vm2734_vm10, %v7719_v50 }
 0x327   :  { %6309 = vmatmul.mubr.msk.bf16.gmra.mrb[8].mxu1 %vm2734_vm10, %v7723_v12 }
 0x328   :  { %6312 = vmatprep.mubr.msk.bf16.mxu1 %vm2734_vm10, %v7733_v3 }
 0x32f   :  { %6313 = vmatmul.mubr.msk.bf16.gmra.mrb[12].mxu1 %vm2734_vm10, %v4004_v41 }
 0x3ea   :  { %v6302_v7 = vpop.f32.mrb[0].mxu1 }
 0x3eb   :  { %v4154_v51 = vadd.f32 %v6302_v7, %v7886_v27  ;;  %v4068_v12 = vpop.f32.mrb[1].mxu1 }
 0x3ec   :  { %v4152_v13 = vadd.f32 %v7886_v27, %v4068_v12  ;;  %v6303_v3 = vpop.f32.mrb[2].mxu1 }
 0x3ed   :  { %v4155_v58 = vadd.f32 %v6303_v3, %v7886_v27  ;;  %v4071_v62 = vpop.f32.mrb[3].mxu1  ;;  %v4170_v50 = vmax.f32 %v4154_v51, 0.0 }
 0x3ee   :  { %v4153_v44 = vadd.f32 %v7886_v27, %v4071_v62  ;;  %v4168_v6 = vmax.f32 %v4152_v13, 0.0 }
 0x3ef   :  { %v4171_v56 = vmax.f32 %v4155_v58, 0.0 }
 0x3f0   :  { %v4169_v15 = vmax.f32 %v4153_v44, 0.0 }
 0x3f1   :  { %v4185_v16 = vmax.f32 %v4170_v50, %v4171_v56 }
 0x3f2   :  { %v4184_v5 = vmax.f32 %v4168_v6, %v4169_v15  ;;  %v6306_v28 = vpop.f32.mrb[4].mxu1 }
 0x3f3   :  { %v4217_v47 = vcombine.high %v4185_v16, %v4185_v16  ;;  %v4224_v57 = vrot.slane %v4185_v16, %v6846_v54  ;;  %v7894_v20 = vadd.f32 %v6306_v28, %v7886_v27  ;;  %v4084_v8 = vpop.f32.mrb[5].mxu1 }
 0x3f4   :  { %v4200_v61 = vcombine.high %v4184_v5, %v4184_v5  ;;  %v4207_v14 = vrot.slane %v4184_v5, %v6846_v54  ;;  %v7898_v37 = vadd.f32 %v7886_v27, %v4084_v8  ;;  %v7900_v33 = vpop.f32.mrb[6].mxu1 }
 0x3f5   :  { %v4231_v38 = vrot.slane %v4217_v47, %v6846_v54  ;;  %v4232_v19 = vcombine.high %v4224_v57, %v4224_v57  ;;  %v4396_v18 = vsel %vm374_vm1, %v4224_v57, -inf  ;;  %v7904_v52 = vpop.f32.mrb[7].mxu1 }
 0x3f6   :  { %v4397_v45 = vrot.slane %v4396_v18, 4  ;;  %v4214_v29 = vrot.slane %v4200_v61, %v6846_v54  ;;  %v4215_v40 = vcombine.high %v4207_v14, %v4207_v14  ;;  %v4368_v30 = vsel %vm374_vm1, %v4207_v14, -inf }
 0x3f7   :  { %v4233_v32 = vcombine.high %v4231_v38, %v4231_v38  ;;  %v4403_v43 = vsel %vm374_vm1, %v4232_v19, -inf  ;;  %v4410_v10 = vsel %vm374_vm1, %v4231_v38, -inf  ;;  %v4369_v34 = vrot.slane %v4368_v30, 4 }
 0x3f8   :  { %v4398_v23 = vmax.f32 %v4396_v18, %v4397_v45  ;;  %v4404_v9 = vrot.slane %v4403_v43, 4  ;;  %v4411_v0 = vrot.slane %v4410_v10, 4  ;;  %v4216_v39 = vcombine.high %v4214_v29, %v4214_v29 }
 0x3f9   :  { %v4417_v21 = vsel %vm374_vm1, %v4233_v32, -inf  ;;  %v4370_v24 = vmax.f32 %v4368_v30, %v4369_v34  ;;  %v4375_v60 = vsel %vm374_vm1, %v4215_v40, -inf  ;;  %v4382_v48 = vsel %vm374_vm1, %v4214_v29, -inf }
 0x3fa   :  { %v4399_v25 = vrot.slane %v4398_v23, 2  ;;  %v4405_v46 = vmax.f32 %v4403_v43, %v4404_v9  ;;  %v4412_v4 = vmax.f32 %v4410_v10, %v4411_v0  ;;  %v4418_v49 = vrot.slane %v4417_v21, 4  ;;  %v6310_v63 = vpop.f32.mrb[8].mxu1 }
 0x3fb   :  { %v4371_v42 = vrot.slane %v4370_v24, 2  ;;  %v4376_v53 = vrot.slane %v4375_v60, 4  ;;  %v4383_v26 = vrot.slane %v4382_v48, 4  ;;  %v4389_v36 = vsel %vm374_vm1, %v4216_v39, -inf  ;;  %v4100_v35 = vpop.f32.mrb[9].mxu1 }
 0x3fc   :  { %v4400_v11 = vmax.f32 %v4398_v23, %v4399_v25  ;;  %v4406_v2 = vrot.slane %v4405_v46, 2  ;;  %v4413_v22 = vrot.slane %v4412_v4, 2  ;;  %v4419_v1 = vmax.f32 %v4417_v21, %v4418_v49  ;;  %v6311_v31 = vpop.f32.mrb[10].mxu1 }
 0x3fd   :  { %v4372_v59 = vmax.f32 %v4370_v24, %v4371_v42  ;;  %v4377_v55 = vmax.f32 %v4375_v60, %v4376_v53  ;;  %v4384_v17 = vmax.f32 %v4382_v48, %v4383_v26  ;;  %v4390_v41 = vrot.slane %v4389_v36, 4  ;;  %v4103_v7 = vpop.f32.mrb[11].mxu1 }
 0x3fe   :  { %v4401_v51 = vrot.slane %v4400_v11, 1  ;;  %v4407_v12 = vmax.f32 %v4405_v46, %v4406_v2  ;;  %v4414_v13 = vmax.f32 %v4412_v4, %v4413_v22  ;;  %v4420_v3 = vrot.slane %v4419_v1, 2 }
 0x3ff   :  { %v4373_v58 = vrot.slane %v4372_v59, 1  ;;  %v4378_v62 = vrot.slane %v4377_v55, 2  ;;  %v4385_v44 = vrot.slane %v4384_v17, 2  ;;  %v4391_v50 = vmax.f32 %v4389_v36, %v4390_v41 }
 0x400   :  { %v4402_v56 = vmax.f32 %v4400_v11, %v4401_v51  ;;  %v4408_v6 = vrot.slane %v4407_v12, 1  ;;  %v4415_v15 = vrot.slane %v4414_v13, 1  ;;  %v4421_v16 = vmax.f32 %v4419_v1, %v4420_v3 }
 0x401   :  { %v4374_v5 = vmax.f32 %v4372_v59, %v4373_v58  ;;  %v4379_v28 = vmax.f32 %v4377_v55, %v4378_v62  ;;  %v4386_v47 = vmax.f32 %v4384_v17, %v4385_v44  ;;  %v4392_v57 = vrot.slane %v4391_v50, 2 }
 0x402   :  { %v7914_v8 = vmax.f32 %v4407_v12, %v4408_v6  ;;  %v7916_v61 = vmax.f32 %v4414_v13, %v4415_v15  ;;  %v4422_v14 = vrot.slane %v4421_v16, 1  ;;  %v6314_v38 = vpop.f32.mrb[12].mxu1  ;;  %v4596_v19 = vpack.c.bf16 %v4402_v56, %v4402_v56 }
 0x403   :  { %v4380_v18 = vrot.slane %v4379_v28, 1  ;;  %v4387_v45 = vrot.slane %v4386_v47, 1  ;;  %v4393_v29 = vmax.f32 %v4391_v50, %v4392_v57  ;;  %v4116_v40 = vpop.f32.mrb[13].mxu1  ;;  %v4592_v30 = vpack.c.bf16 %v4374_v5, %v4374_v5 }
 0x404   :  { %v6315_v32 = vpop.f32.mrb[14].mxu1  ;;  %v7918_v43 = vmax.f32 %v4421_v16, %v4422_v14  ;;  %v4597_v34 = vpack.c.bf16 %v7914_v8, %v7914_v8  ;;  %v4598_v23 = vpack.c.bf16 %v7916_v61, %v7916_v61  ;;  %v4174_v0 = vmax.f32 %v7894_v20, 0.0 }
 0x405   :  { %v4119_v10 = vpop.f32.mrb[15].mxu1  ;;  %v4394_v9 = vrot.slane %v4393_v29, 1  ;;  %v7925_v39 = vunpack.c.l.b16 %v4596_v19  ;;  %v7927_v21 = vmax.f32 %v4379_v28, %v4380_v18  ;;  %v7929_v24 = vmax.f32 %v4386_v47, %v4387_v45 }
 0x406   :  { %v4159_v60 = vadd.f32 %v7900_v33, %v7886_v27  ;;  %v7933_v48 = vunpack.c.l.b16 %v4592_v30  ;;  %v4157_v25 = vadd.f32 %v7886_v27, %v7904_v52  ;;  %v4162_v46 = vadd.f32 %v6310_v63, %v7886_v27 }
 0x407   :  { %v4163_v4 = vadd.f32 %v6311_v31, %v7886_v27  ;;  %v4599_v20 = vpack.c.bf16 %v7918_v43, %v7918_v43  ;;  %v4172_v49 = vmax.f32 %v7898_v37, 0.0  ;;  %v4160_v53 = vadd.f32 %v7886_v27, %v4100_v35 }
 0x408   :  { %v4175_v42 = vmax.f32 %v4159_v60, 0.0  ;;  %v7943_v26 = vmax.f32 %v4393_v29, %v4394_v9  ;;  %v4173_v33 = vmax.f32 %v4157_v25, 0.0  ;;  %v4178_v36 = vmax.f32 %v4162_v46, 0.0 }
 0x409   :  { %v4179_v11 = vmax.f32 %v4163_v4, 0.0  ;;  %v4161_v52 = vadd.f32 %v7886_v27, %v4103_v7  ;;  %v7947_v63 = vadd.f32 %v6314_v38, %v7886_v27  ;;  %v7950_v22 = vadd.f32 %v7886_v27, %v4116_v40 }
 0x40a   :  { %v4187_v2 = vmax.f32 %v4174_v0, %v4175_v42  ;;  %v4186_v1 = vmax.f32 %v4172_v49, %v4173_v33  ;;  %v7955_v37 = vadd.f32 %v6315_v32, %v7886_v27  ;;  %v7958_v35 = vadd.f32 %v7886_v27, %v4119_v10 }
 0x40b   :  { %v7952_v31 = vmax.f32 %v4178_v36, %v4179_v11  ;;  %v4176_v17 = vmax.f32 %v4160_v53, 0.0  ;;  %v4177_v41 = vmax.f32 %v4161_v52, 0.0  ;;  %v4593_v7 = vpack.c.bf16 %v7927_v21, %v7927_v21 }
 0x40c   :  { %v4251_v59 = vcombine.high %v4187_v2, %v4187_v2  ;;  %v4258_v55 = vrot.slane %v4187_v2, %v6846_v54  ;;  %v4594_v51 = vpack.c.bf16 %v7929_v24, %v7929_v24  ;;  %v4234_v12 = vcombine.high %v4186_v1, %v4186_v1 }
 0x40d   :  { %v4241_v13 = vrot.slane %v4186_v1, %v6846_v54  ;;  %v7968_v62 = vmax.f32 %v4176_v17, %v4177_v41 }
 0x40e   :  { %v4265_v3 = vrot.slane %v4251_v59, %v6846_v54  ;;  %v4266_v58 = vcombine.high %v4258_v55, %v4258_v55  ;;  %v4452_v27 = vsel %vm374_vm1, %v4258_v55, -inf  ;;  %v4248_v50 = vrot.slane %v4234_v12, %v6846_v54 }
 0x40f   :  { %v4453_v44 = vrot.slane %v4452_v27, 4  ;;  %v4249_v56 = vcombine.high %v4241_v13, %v4241_v13  ;;  %v4424_v6 = vsel %vm374_vm1, %v4241_v13, -inf }
 0x410   :  { %v4267_v15 = vcombine.high %v4265_v3, %v4265_v3  ;;  %v4459_v16 = vsel %vm374_vm1, %v4266_v58, -inf  ;;  %v4466_v5 = vsel %vm374_vm1, %v4265_v3, -inf  ;;  %v4425_v28 = vrot.slane %v4424_v6, 4 }
 0x411   :  { %v4454_v47 = vmax.f32 %v4452_v27, %v4453_v44  ;;  %v4460_v57 = vrot.slane %v4459_v16, 4  ;;  %v4467_v14 = vrot.slane %v4466_v5, 4  ;;  %v4250_v38 = vcombine.high %v4248_v50, %v4248_v50 }
 0x412   :  { %v4473_v19 = vsel %vm374_vm1, %v4267_v15, -inf  ;;  %v4426_v18 = vmax.f32 %v4424_v6, %v4425_v28  ;;  %v4431_v45 = vsel %vm374_vm1, %v4249_v56, -inf  ;;  %v4438_v29 = vsel %vm374_vm1, %v4248_v50, -inf }
 0x413   :  { %v4455_v40 = vrot.slane %v4454_v47, 2  ;;  %v4461_v30 = vmax.f32 %v4459_v16, %v4460_v57  ;;  %v4468_v32 = vmax.f32 %v4466_v5, %v4467_v14  ;;  %v4474_v10 = vrot.slane %v4473_v19, 4 }
 0x414   :  { %v4427_v9 = vrot.slane %v4426_v18, 2  ;;  %v4432_v0 = vrot.slane %v4431_v45, 4  ;;  %v4439_v60 = vrot.slane %v4438_v29, 4  ;;  %v4445_v25 = vsel %vm374_vm1, %v4250_v38, -inf }
 0x415   :  { %v4456_v46 = vmax.f32 %v4454_v47, %v4455_v40  ;;  %v4462_v4 = vrot.slane %v4461_v30, 2  ;;  %v4469_v49 = vrot.slane %v4468_v32, 2  ;;  %v4475_v42 = vmax.f32 %v4473_v19, %v4474_v10 }
 0x416   :  { %v4428_v53 = vmax.f32 %v4426_v18, %v4427_v9  ;;  %v4433_v33 = vmax.f32 %v4431_v45, %v4432_v0  ;;  %v4440_v36 = vmax.f32 %v4438_v29, %v4439_v60  ;;  %v4446_v11 = vrot.slane %v4445_v25, 4 }
 0x417   :  { %v4457_v2 = vrot.slane %v4456_v46, 1  ;;  %v4463_v52 = vmax.f32 %v4461_v30, %v4462_v4  ;;  %v4470_v1 = vmax.f32 %v4468_v32, %v4469_v49  ;;  %v4476_v59 = vrot.slane %v4475_v42, 2 }
 0x418   :  { %v4429_v55 = vrot.slane %v4428_v53, 1  ;;  %v4434_v17 = vrot.slane %v4433_v33, 2  ;;  %v4441_v41 = vrot.slane %v4440_v36, 2  ;;  %v4447_v12 = vmax.f32 %v4445_v25, %v4446_v11 }
 0x419   :  { %v4458_v13 = vmax.f32 %v4456_v46, %v4457_v2  ;;  %v4464_v3 = vrot.slane %v4463_v52, 1  ;;  %v4471_v58 = vrot.slane %v4470_v1, 1  ;;  %v4477_v27 = vmax.f32 %v4475_v42, %v4476_v59 }
 0x41a   :  { %v4430_v44 = vmax.f32 %v4428_v53, %v4429_v55  ;;  %v4435_v50 = vmax.f32 %v4433_v33, %v4434_v17  ;;  %v4442_v56 = vmax.f32 %v4440_v36, %v4441_v41  ;;  %v4448_v6 = vrot.slane %v4447_v12, 2 }
 0x41b   :  { %v7978_v15 = vmax.f32 %v4463_v52, %v4464_v3  ;;  %v4478_v16 = vrot.slane %v4477_v27, 1  ;;  %v4285_v5 = vcombine.high %v7952_v31, %v7952_v31  ;;  %v4292_v28 = vrot.slane %v7952_v31, %v6846_v54 }
 0x41c   :  { %v7984_v47 = vmax.f32 %v4470_v1, %v4471_v58  ;;  %v4604_v57 = vpack.c.bf16 %v4458_v13, %v4458_v13  ;;  %v4436_v14 = vrot.slane %v4435_v50, 1  ;;  %v4449_v38 = vmax.f32 %v4447_v12, %v4448_v6 }
 0x41d   :  { %v7989_v19 = vunpack.c.l.b16 %v4597_v34  ;;  %v7994_v18 = vunpack.c.l.b16 %v4598_v23  ;;  %v4595_v45 = vpack.c.bf16 %v7943_v26, %v7943_v26  ;;  %v8001_v31 = vunpack.c.l.b16 %v4593_v7 }
 0x41e   :  { %v8006_v29 = vunpack.c.l.b16 %v4594_v51  ;;  %v4443_v8 = vrot.slane %v4442_v56, 1  ;;  %v4450_v34 = vrot.slane %v4449_v38, 1  ;;  %v4600_v40 = vpack.c.bf16 %v4430_v44, %v4430_v44 }
 0x41f   :  { %v8008_v30 = vmax.f32 %v4477_v27, %v4478_v16  ;;  %v4605_v61 = vpack.c.bf16 %v7978_v15, %v7978_v15  ;;  %v4299_v23 = vrot.slane %v4285_v5, %v6846_v54  ;;  %v4182_v32 = vmax.f32 %v7947_v63, 0.0  ;;  %v6605_v15 = vld [vmem:[%s8321_s3 + $0x10] sm:$0xff]  }
 0x420   :  { %v4606_v21 = vpack.c.bf16 %v7984_v47, %v7984_v47  ;;  %v8016_v7 = vunpack.c.l.b16 %v4604_v57  ;;  %v4437_v24 = vmax.f32 %v4435_v50, %v4436_v14  ;;  %v4300_v51 = vcombine.high %v4292_v28, %v4292_v28 }
 0x421   :  { %v4301_v10 = vcombine.high %v4299_v23, %v4299_v23  ;;  %v4508_v9 = vsel %vm374_vm1, %v4292_v28, -inf  ;;  %v4522_v0 = vsel %vm374_vm1, %v4299_v23, -inf  ;;  %v4268_v60 = vcombine.high %v7968_v62, %v7968_v62 }
 0x422   :  { %v8022_v25 = vmax.f32 %v4442_v56, %v4443_v8  ;;  %v8024_v46 = vmax.f32 %v4449_v38, %v4450_v34  ;;  %v8026_v4 = vunpack.c.l.b16 %v4600_v40  ;;  %v4509_v49 = vrot.slane %v4508_v9, 4 }
 0x423   :  { %v4515_v42 = vsel %vm374_vm1, %v4300_v51, -inf  ;;  %v4523_v53 = vrot.slane %v4522_v0, 4  ;;  %v4529_v33 = vsel %vm374_vm1, %v4301_v10, -inf  ;;  %v4275_v36 = vrot.slane %v7968_v62, %v6846_v54 }
 0x424   :  { %v4510_v11 = vmax.f32 %v4508_v9, %v4509_v49  ;;  %v4516_v2 = vrot.slane %v4515_v42, 4  ;;  %v4530_v52 = vrot.slane %v4529_v33, 4  ;;  %v4282_v1 = vrot.slane %v4268_v60, %v6846_v54 }
 0x425   :  { %v4601_v59 = vpack.c.bf16 %v4437_v24, %v4437_v24  ;;  %v4524_v55 = vmax.f32 %v4522_v0, %v4523_v53  ;;  %v4283_v17 = vcombine.high %v4275_v36, %v4275_v36  ;;  %v4480_v41 = vsel %vm374_vm1, %v4275_v36, -inf }
 0x426   :  { %v4511_v12 = vrot.slane %v4510_v11, 2  ;;  %v4517_v13 = vmax.f32 %v4515_v42, %v4516_v2  ;;  %v4531_v3 = vmax.f32 %v4529_v33, %v4530_v52  ;;  %v4284_v58 = vcombine.high %v4282_v1, %v4282_v1 }
 0x427   :  { %v4525_v27 = vrot.slane %v4524_v55, 2  ;;  %v4481_v44 = vrot.slane %v4480_v41, 4  ;;  %v4487_v50 = vsel %vm374_vm1, %v4283_v17, -inf  ;;  %v4494_v62 = vsel %vm374_vm1, %v4282_v1, -inf }
 0x428   :  { %v4512_v56 = vmax.f32 %v4510_v11, %v4511_v12  ;;  %v4518_v6 = vrot.slane %v4517_v13, 2  ;;  %v4532_v16 = vrot.slane %v4531_v3, 2  ;;  %v4488_v5 = vrot.slane %v4487_v50, 4 }
 0x429   :  { %v4526_v28 = vmax.f32 %v4524_v55, %v4525_v27  ;;  %v4482_v57 = vmax.f32 %v4480_v41, %v4481_v44  ;;  %v4495_v14 = vrot.slane %v4494_v62, 4  ;;  %v4501_v38 = vsel %vm374_vm1, %v4284_v58, -inf }
 0x42a   :  { %v4513_v8 = vrot.slane %v4512_v56, 1  ;;  %v4519_v34 = vmax.f32 %v4517_v13, %v4518_v6  ;;  %v4533_v40 = vmax.f32 %v4531_v3, %v4532_v16  ;;  %v4489_v23 = vmax.f32 %v4487_v50, %v4488_v5 }
 0x42b   :  { %v4527_v24 = vrot.slane %v4526_v28, 1  ;;  %v4483_v51 = vrot.slane %v4482_v57, 2  ;;  %v4496_v10 = vmax.f32 %v4494_v62, %v4495_v14  ;;  %v4502_v9 = vrot.slane %v4501_v38, 4 }
 0x42c   :  { %v4514_v0 = vmax.f32 %v4512_v56, %v4513_v8  ;;  %v4520_v60 = vrot.slane %v4519_v34, 1  ;;  %v4534_v49 = vrot.slane %v4533_v40, 1  ;;  %v4490_v42 = vrot.slane %v4489_v23, 2 }
 0x42d   :  { %v4602_v53 = vpack.c.bf16 %v8022_v25, %v8022_v25  ;;  %v4484_v33 = vmax.f32 %v4482_v57, %v4483_v51  ;;  %v4497_v36 = vrot.slane %v4496_v10, 2  ;;  %v4503_v11 = vmax.f32 %v4501_v38, %v4502_v9 }
 0x42e   :  { %v4603_v2 = vpack.c.bf16 %v8024_v46, %v8024_v46  ;;  %v4521_v52 = vmax.f32 %v4519_v34, %v4520_v60  ;;  %v4612_v1 = vpack.c.bf16 %v4514_v0, %v4514_v0  ;;  %v4491_v55 = vmax.f32 %v4489_v23, %v4490_v42 }
 0x42f   :  { %v8041_v17 = vunpack.c.l.b16 %v4601_v59  ;;  %v4485_v41 = vrot.slane %v4484_v33, 1  ;;  %v4498_v12 = vmax.f32 %v4496_v10, %v4497_v36  ;;  %v4504_v13 = vrot.slane %v4503_v11, 2 }
 0x430   :  { %v8043_v3 = vmax.f32 %v4526_v28, %v4527_v24  ;;  %v8045_v58 = vmax.f32 %v4533_v40, %v4534_v49  ;;  %v4864_v27 = vunpack.c.l.b16 %v4612_v1  ;;  %v4492_v25 = vrot.slane %v4491_v55, 1 }
 0x431   :  { %v4613_v44 = vpack.c.bf16 %v4521_v52, %v4521_v52  ;;  %v4486_v50 = vmax.f32 %v4484_v33, %v4485_v41  ;;  %v4499_v62 = vrot.slane %v4498_v12, 1  ;;  %v4505_v56 = vmax.f32 %v4503_v11, %v4504_v13 }
 0x432   :  { %v4493_v6 = vmax.f32 %v4491_v55, %v4492_v25  ;;  %v4180_v16 = vmax.f32 %v7950_v22, 0.0  ;;  %v4183_v5 = vmax.f32 %v7955_v37, 0.0  ;;  %v4181_v59 = vmax.f32 %v7958_v35, 0.0 }
 0x433   :  { %v8050_v57 = vunpack.c.l.b16 %v4602_v53  ;;  %v8052_v14 = vmax.f32 %v4498_v12, %v4499_v62  ;;  %v4506_v28 = vrot.slane %v4505_v56, 1  ;;  %v4608_v38 = vpack.c.bf16 %v4486_v50, %v4486_v50 }
 0x434   :  { %v4609_v8 = vpack.c.bf16 %v4493_v6, %v4493_v6  ;;  %v4191_v34 = vmax.f32 %v4182_v32, %v4183_v5  ;;  %v4190_v40 = vmax.f32 %v4180_v16, %v4181_v59  ;;  %v8058_v23 = vsel %vm2531_vm3, %v4864_v27, %v7925_v39 }
 0x435   :  { %v4614_v22 = vpack.c.bf16 %v8043_v3, %v8043_v3  ;;  %v4615_v37 = vpack.c.bf16 %v8045_v58, %v8045_v58  ;;  %v8064_v35 = vunpack.c.l.b16 %v4613_v44  ;;  %v4688_v24 = vunpack.c.l.b16 %v4608_v38 }
 0x436   :  { %v4632_v51 = vunpack.c.l.b16 %v4609_v8  ;;  %v4319_v10 = vcombine.high %v4191_v34, %v4191_v34  ;;  %v4326_v9 = vrot.slane %v4191_v34, %v6846_v54  ;;  %v4302_v63 = vcombine.high %v4190_v40, %v4190_v40 }
 0x437   :  { %v8067_v32 = vmax.f32 %v4505_v56, %v4506_v28  ;;  %v4610_v39 = vpack.c.bf16 %v8052_v14, %v8052_v14  ;;  %v4309_v0 = vrot.slane %v4190_v40, %v6846_v54  ;;  %v8074_v60 = vsel %vm2531_vm3, %v4688_v24, %v7933_v48 }
 0x438   :  { %v4333_v49 = vrot.slane %v4319_v10, %v6846_v54  ;;  %v4334_v42 = vcombine.high %v4326_v9, %v4326_v9  ;;  %v4564_v53 = vsel %vm374_vm1, %v4326_v9, -inf  ;;  %v4316_v33 = vrot.slane %v4302_v63, %v6846_v54 }
 0x439   :  { %v4565_v36 = vrot.slane %v4564_v53, 4  ;;  %v4317_v11 = vcombine.high %v4309_v0, %v4309_v0  ;;  %v4536_v52 = vsel %vm374_vm1, %v4309_v0, -inf  ;;  %v8082_v1 = vsel %vm2531_vm3, %v4632_v51, %v8001_v31 }
 0x43a   :  { %v4335_v55 = vcombine.high %v4333_v49, %v4333_v49  ;;  %v4571_v41 = vsel %vm374_vm1, %v4334_v42, -inf  ;;  %v4578_v48 = vsel %vm374_vm1, %v4333_v49, -inf  ;;  %v4318_v12 = vcombine.high %v4316_v33, %v4316_v33 }
 0x43b   :  { %v4566_v13 = vmax.f32 %v4564_v53, %v4565_v36  ;;  %v4572_v27 = vrot.slane %v4571_v41, 4  ;;  %v4579_v25 = vrot.slane %v4578_v48, 4  ;;  %v4537_v44 = vrot.slane %v4536_v52, 4 }
 0x43c   :  { %v4585_v54 = vsel %vm374_vm1, %v4335_v55, -inf  ;;  %v4543_v50 = vsel %vm374_vm1, %v4317_v11, -inf  ;;  %v4550_v62 = vsel %vm374_vm1, %v4316_v33, -inf  ;;  %v4557_v56 = vsel %vm374_vm1, %v4318_v12, -inf }
 0x43d   :  { %v4567_v31 = vrot.slane %v4566_v13, 2  ;;  %v4573_v6 = vmax.f32 %v4571_v41, %v4572_v27  ;;  %v4580_v16 = vmax.f32 %v4578_v48, %v4579_v25  ;;  %v4586_v5 = vrot.slane %v4585_v54, 4 }
 0x43e   :  { %v4538_v59 = vmax.f32 %v4536_v52, %v4537_v44  ;;  %v4544_v28 = vrot.slane %v4543_v50, 4  ;;  %v4551_v38 = vrot.slane %v4550_v62, 4  ;;  %v4558_v8 = vrot.slane %v4557_v56, 4 }
 0x43f   :  { %v4568_v34 = vmax.f32 %v4566_v13, %v4567_v31  ;;  %v4574_v40 = vrot.slane %v4573_v6, 2  ;;  %v4581_v24 = vrot.slane %v4580_v16, 2  ;;  %v4587_v51 = vmax.f32 %v4585_v54, %v4586_v5 }
 0x440   :  { %v4539_v10 = vrot.slane %v4538_v59, 2  ;;  %v4545_v9 = vmax.f32 %v4543_v50, %v4544_v28  ;;  %v4552_v63 = vmax.f32 %v4550_v62, %v4551_v38  ;;  %v4559_v0 = vmax.f32 %v4557_v56, %v4558_v8 }
 0x441   :  { %v4569_v49 = vrot.slane %v4568_v34, 1  ;;  %v4575_v42 = vmax.f32 %v4573_v6, %v4574_v40  ;;  %v4582_v53 = vmax.f32 %v4580_v16, %v4581_v24  ;;  %v4588_v33 = vrot.slane %v4587_v51, 2 }
 0x442   :  { %v4540_v36 = vmax.f32 %v4538_v59, %v4539_v10  ;;  %v4546_v11 = vrot.slane %v4545_v9, 2  ;;  %v4553_v55 = vrot.slane %v4552_v63, 2  ;;  %v4560_v52 = vrot.slane %v4559_v0, 2 }
 0x443   :  { %v4570_v41 = vmax.f32 %v4568_v34, %v4569_v49  ;;  %v4576_v48 = vrot.slane %v4575_v42, 1  ;;  %v4583_v12 = vrot.slane %v4582_v53, 1  ;;  %v4589_v13 = vmax.f32 %v4587_v51, %v4588_v33 }
 0x444   :  { %v4541_v27 = vrot.slane %v4540_v36, 1  ;;  %v4547_v25 = vmax.f32 %v4545_v9, %v4546_v11  ;;  %v4554_v44 = vmax.f32 %v4552_v63, %v4553_v55  ;;  %v4561_v54 = vmax.f32 %v4559_v0, %v4560_v52  ;;  %v6604_v9 = vld [vmem:[%s8321_s3] sm:$0xff]  }
 0x445   :  { %v4577_v50 = vmax.f32 %v4575_v42, %v4576_v48  ;;  %v4584_v62 = vmax.f32 %v4582_v53, %v4583_v12  ;;  %v4590_v56 = vrot.slane %v4589_v13, 1  ;;  %v4620_v31 = vpack.c.bf16 %v4570_v41, %v4570_v41 }
 0x446   :  { %v4542_v5 = vmax.f32 %v4540_v36, %v4541_v27  ;;  %v4548_v6 = vrot.slane %v4547_v25, 1  ;;  %v4555_v16 = vrot.slane %v4554_v44, 1  ;;  %v4562_v28 = vrot.slane %v4561_v54, 1  ;;  %v6607_v27 = vld [vmem:[%s8321_s3 + $0x20] sm:$0xff]  }
 0x447   :  { %v4611_v59 = vpack.c.bf16 %v8067_v32, %v8067_v32  ;;  %v4746_v38 = vunpack.c.l.b16 %v4610_v39  ;;  %v4621_v8 = vpack.c.bf16 %v4577_v50, %v4577_v50  ;;  %v4622_v34 = vpack.c.bf16 %v4584_v62, %v4584_v62  ;;  %v6609_v50 = vld [vmem:[%s8321_s3 + $0x30] sm:$0xff]  }
 0x448   :  { %v4549_v40 = vmax.f32 %v4547_v25, %v4548_v6  ;;  %v4556_v24 = vmax.f32 %v4554_v44, %v4555_v16  ;;  %v4563_v51 = vmax.f32 %v4561_v54, %v4562_v28  ;;  %v4616_v10 = vpack.c.bf16 %v4542_v5, %v4542_v5  ;;  %v6608_v44 = vld [vmem:[%s8321_s3 + $0x28] sm:$0xff]   ;;  %v6613_v28 = vld [vmem:[%s8321_s3 + $0x50] sm:$0xff]  }
 0x449   :  { %v4982_v63 = vunpack.c.l.b16 %v4614_v22  ;;  %v4591_v0 = vmax.f32 %v4589_v13, %v4590_v56  ;;  %v4634_v32 = vpack.c.b16 %v8082_v1, %v8082_v1  ;;  %v4804_v14 = vunpack.c.l.b16 %v4595_v45  ;;  %v8112_v45 = vld [vmem:[#allocation2] sm:$0xff]  ;;  %v6612_v6 = vld [vmem:[%s8321_s3 + $0x48] sm:$0xff]  }
 0x44a   :  { %v5336_v39 = vunpack.c.l.b16 %v4620_v31  ;;  %v4617_v49 = vpack.c.bf16 %v4549_v40, %v4549_v40  ;;  %v4618_v42 = vpack.c.bf16 %v4556_v24, %v4556_v24  ;;  %v5100_v53 = vunpack.c.l.b16 %v4616_v10  ;;  %v6611_v31 = vld [vmem:[%s8321_s3 + $0x40] sm:$0xff]   ;;  %v6616_v24 = vld [vmem:[%s8321_s3 + $0x68] sm:$0xff]   ;;  %v6617_v10 = vld [vmem:[%s8321_s3 + $0x70] sm:$0xff]  }
 0x44b   :  { %v5395_v33 = vunpack.c.l.b16 %v4621_v8  ;;  %6319 = vmatmul.mubr.msk.bf16.vlgmr.msra.gmra.mrb[64].mxu0 %vm4641_vm12, %v4634_v32  ;;  %v4747_v36 = vsel %vm2531_vm3, %v4746_v38, %v8006_v29  ;;  %v4805_v3 = vunpack.c.l.b16 %v4611_v59  ;;  %v4924_v22 = vsel %vm2531_vm3, %v8064_v35, %v7989_v19  ;;  %v6614_v38 = vld [vmem:[%s8321_s3 + $0x58] sm:$0xff]  }
 0x44c   :  { %v5454_v1 = vunpack.c.l.b16 %v4622_v34  ;;  %v4619_v11 = vpack.c.bf16 %v4563_v51, %v4563_v51  ;;  %v5159_v55 = vunpack.c.l.b16 %v4617_v49  ;;  %v5218_v26 = vunpack.c.l.b16 %v4618_v42  ;;  %6323 = vmatpush3.bf16.msra.mxu0 %v6604_v9  ;;  %6324 = vmatprep.mubr.msk.bf16.mxu0 %vm6652_vm11, %v8112_v45  ;;  %v6615_v34 = vld [vmem:[%s8321_s3 + $0x60] sm:$0xff]   ;;  %v6620_v42 = vld [vmem:[%s8322_s4 + $0x8] sm:$0xff]  }
 0x44d   :  { %6328 = vmatprep.subr.bf16.mxu0 %v8112_v45  ;;  %v4806_v52 = vsel %vm2531_vm3, %v4805_v3, %v4804_v14  ;;  %v4983_v29 = vsel %vm2531_vm3, %v4982_v63, %v7994_v18  ;;  %v5040_v19 = vunpack.c.l.b16 %v4599_v20  ;;  %v5041_v35 = vunpack.c.l.b16 %v4615_v37  ;;  %v6618_v63 = vld [vmem:[%s8321_s3 + $0x78] sm:$0xff]   ;;  %v6619_v14 = vld [vmem:[%s8322_s4] sm:$0xff]  }
 0x44e   :  { %v4607_v41 = vpack.c.bf16 %v8008_v30, %v8008_v30  ;;  %v5394_v48 = vunpack.c.l.b16 %v4605_v61  ;;  %v5101_v12 = vsel %vm2531_vm3, %v5100_v53, %v8026_v4  ;;  %v8135_v18 = vsel %vm2531_vm3, %v5159_v55, %v8041_v17 }
 0x44f   :  { %v5453_v43 = vunpack.c.l.b16 %v4606_v21  ;;  %v4623_v20 = vpack.c.bf16 %v4591_v0, %v4591_v0  ;;  %v5042_v58 = vsel %vm2531_vm3, %v5041_v35, %v5040_v19  ;;  %v8143_v30 = vsel %vm2531_vm3, %v5218_v26, %v8050_v57 }
 0x450   :  { %v5276_v61 = vunpack.c.l.b16 %v4603_v2  ;;  %v5277_v4 = vunpack.c.l.b16 %v4619_v11  ;;  %v4690_v47 = vpack.c.b16 %v8074_v60, %v8074_v60  ;;  %v8155_v21 = vsel %vm2531_vm3, %v5336_v39, %v8016_v7  ;;  %v6606_v60 = vld [vmem:[%s8321_s3 + $0x18] sm:$0xff]  }
 0x451   :  { %v8158_v17 = vsel %vm2531_vm3, %v5395_v33, %v5394_v48  ;;  %v8161_v57 = vsel %vm2531_vm3, %v5454_v1, %v5453_v43  ;;  %v5512_v46 = vunpack.c.l.b16 %v4607_v41  ;;  %v5513_v2 = vunpack.c.l.b16 %v4623_v20 }
 0x452   :  { %v8164_v37 = vsel %vm2531_vm3, %v5277_v4, %v5276_v61  ;;  %v4748_v13 = vpack.c.b16 %v4747_v36, %v4747_v36  ;;  %v4807_v25 = vpack.c.b16 %v4806_v52, %v4806_v52  ;;  %v4866_v54 = vpack.c.b16 %v8058_v23, %v8058_v23  ;;  %v6610_v23 = vld [vmem:[%s8321_s3 + $0x38] sm:$0xff]  }
 0x453   :  { %6325 = vmatmul.mubr.msk.bf16.vlgmr.msra.gmra.mrb[68].mxu0 %vm4641_vm12, %v4690_v47  ;;  %v8171_v7 = vsel %vm2531_vm3, %v5513_v2, %v5512_v46  ;;  %v4925_v62 = vpack.c.b16 %v4924_v22, %v4924_v22  ;;  %v4984_v56 = vpack.c.b16 %v4983_v29, %v4983_v29  ;;  %v5043_v5 = vpack.c.b16 %v5042_v58, %v5042_v58 }
 0x454   :  { %6329 = vmatpush3.bf16.msra.mxu0 %v6605_v15  ;;  %6330 = vmatprep.mubr.msk.bf16.mxu0 %vm6652_vm11, %v8112_v45  ;;  %v5102_v16 = vpack.c.b16 %v5101_v12, %v5101_v12  ;;  %v5161_v59 = vpack.c.b16 %v8135_v18, %v8135_v18  ;;  %v5220_v8 = vpack.c.b16 %v8143_v30, %v8143_v30 }
 0x455   :  { %6334 = vmatprep.subr.bf16.mxu0 %v8112_v45  ;;  %v5279_v40 = vpack.c.b16 %v8164_v37, %v8164_v37  ;;  %v5338_v51 = vpack.c.b16 %v8155_v21, %v8155_v21  ;;  %v5397_v9 = vpack.c.b16 %v8158_v17, %v8158_v17  ;;  %v5456_v0 = vpack.c.b16 %v8161_v57, %v8161_v57 }
 0x456   :  { %v5515_v32 = vpack.c.b16 %v8171_v7, %v8171_v7 }
 0x45b   :  { %6331 = vmatmul.mubr.msk.bf16.vlgmr.msra.gmra.mrb[72].mxu0 %vm4641_vm12, %v4748_v13 }
 0x45c   :  { %6335 = vmatpush3.bf16.msra.mxu0 %v6606_v60  ;;  %6336 = vmatprep.mubr.msk.bf16.mxu0 %vm6652_vm11, %v8112_v45 }
 0x45d   :  { %6340 = vmatprep.subr.bf16.mxu0 %v8112_v45 }
 0x463   :  { %6337 = vmatmul.mubr.msk.bf16.vlgmr.msra.gmra.mrb[76].mxu0 %vm4641_vm12, %v4807_v25 }
 0x464   :  { %6341 = vmatpush3.bf16.msra.mxu0 %v6607_v27  ;;  %6342 = vmatprep.mubr.msk.bf16.mxu0 %vm6652_vm11, %v8112_v45 }
 0x465   :  { %6346 = vmatprep.subr.bf16.mxu0 %v8112_v45 }
 0x46b   :  { %6343 = vmatmul.mubr.msk.bf16.vlgmr.msra.gmra.mrb[80].mxu0 %vm4641_vm12, %v4866_v54 }
 0x46c   :  { %6347 = vmatpush3.bf16.msra.mxu0 %v6608_v44  ;;  %6348 = vmatprep.mubr.msk.bf16.mxu0 %vm6652_vm11, %v8112_v45 }
 0x46d   :  { %6352 = vmatprep.subr.bf16.mxu0 %v8112_v45 }
 0x473   :  { %6349 = vmatmul.mubr.msk.bf16.vlgmr.msra.gmra.mrb[84].mxu0 %vm4641_vm12, %v4925_v62 }
 0x474   :  { %6353 = vmatpush3.bf16.msra.mxu0 %v6609_v50  ;;  %6354 = vmatprep.mubr.msk.bf16.mxu0 %vm6652_vm11, %v8112_v45 }
 0x475   :  { %6358 = vmatprep.subr.bf16.mxu0 %v8112_v45 }
 0x47b   :  { %6355 = vmatmul.mubr.msk.bf16.vlgmr.msra.gmra.mrb[88].mxu0 %vm4641_vm12, %v4984_v56 }
 0x47c   :  { %6359 = vmatpush3.bf16.msra.mxu0 %v6610_v23  ;;  %6360 = vmatprep.mubr.msk.bf16.mxu0 %vm6652_vm11, %v8112_v45 }
 0x47d   :  { %6364 = vmatprep.subr.bf16.mxu0 %v8112_v45 }
 0x483   :  { %6361 = vmatmul.mubr.msk.bf16.vlgmr.msra.gmra.mrb[92].mxu0 %vm4641_vm12, %v5043_v5 }
 0x484   :  { %6365 = vmatpush3.bf16.msra.mxu0 %v6611_v31  ;;  %6366 = vmatprep.mubr.msk.bf16.mxu0 %vm6652_vm11, %v8112_v45 }
 0x485   :  { %6370 = vmatprep.subr.bf16.mxu0 %v8112_v45 }
 0x48b   :  { %6367 = vmatmul.mubr.msk.bf16.vlgmr.msra.gmra.mrb[96].mxu0 %vm4641_vm12, %v5102_v16 }
 0x48c   :  { %6371 = vmatpush3.bf16.msra.mxu0 %v6612_v6  ;;  %6372 = vmatprep.mubr.msk.bf16.mxu0 %vm6652_vm11, %v8112_v45 }
 0x48d   :  { %6376 = vmatprep.subr.bf16.mxu0 %v8112_v45 }
 0x493   :  { %6373 = vmatmul.mubr.msk.bf16.vlgmr.msra.gmra.mrb[100].mxu0 %vm4641_vm12, %v5161_v59 }
 0x494   :  { %6377 = vmatpush3.bf16.msra.mxu0 %v6613_v28  ;;  %6378 = vmatprep.mubr.msk.bf16.mxu0 %vm6652_vm11, %v8112_v45 }
 0x495   :  { %6382 = vmatprep.subr.bf16.mxu0 %v8112_v45 }
 0x49b   :  { %6379 = vmatmul.mubr.msk.bf16.vlgmr.msra.gmra.mrb[104].mxu0 %vm4641_vm12, %v5220_v8 }
 0x49c   :  { %6383 = vmatpush3.bf16.msra.mxu0 %v6614_v38  ;;  %6384 = vmatprep.mubr.msk.bf16.mxu0 %vm6652_vm11, %v8112_v45 }
 0x49d   :  { %6388 = vmatprep.subr.bf16.mxu0 %v8112_v45 }
 0x4a3   :  { %6385 = vmatmul.mubr.msk.bf16.vlgmr.msra.gmra.mrb[108].mxu0 %vm4641_vm12, %v5279_v40 }
 0x4a4   :  { %6389 = vmatpush3.bf16.msra.mxu0 %v6615_v34  ;;  %6390 = vmatprep.mubr.msk.bf16.mxu0 %vm6652_vm11, %v8112_v45 }
 0x4a5   :  { %6394 = vmatprep.subr.bf16.mxu0 %v8112_v45 }
 0x4ab   :  { %6391 = vmatmul.mubr.msk.bf16.vlgmr.msra.gmra.mrb[112].mxu0 %vm4641_vm12, %v5338_v51 }
 0x4ac   :  { %6395 = vmatpush3.bf16.msra.mxu0 %v6616_v24  ;;  %6396 = vmatprep.mubr.msk.bf16.mxu0 %vm6652_vm11, %v8112_v45 }
 0x4ad   :  { %6400 = vmatprep.subr.bf16.mxu0 %v8112_v45 }
 0x4b3   :  { %6397 = vmatmul.mubr.msk.bf16.vlgmr.msra.gmra.mrb[116].mxu0 %vm4641_vm12, %v5397_v9 }
 0x4b4   :  { %6401 = vmatpush3.bf16.msra.mxu0 %v6617_v10  ;;  %6402 = vmatprep.mubr.msk.bf16.mxu0 %vm6652_vm11, %v8112_v45 }
 0x4b5   :  { %6406 = vmatprep.subr.bf16.mxu0 %v8112_v45 }
 0x4bb   :  { %6403 = vmatmul.mubr.msk.bf16.vlgmr.msra.gmra.mrb[120].mxu0 %vm4641_vm12, %v5456_v0 }
 0x4bc   :  { %6407 = vmatpush3.bf16.msra.mxu0 %v6618_v63  ;;  %6408 = vmatprep.mubr.msk.bf16.mxu0 %vm6652_vm11, %v8112_v45 }
 0x4bd   :  { %6412 = vmatprep.subr.bf16.mxu0 %v8112_v45 }
 0x4c3   :  { %6409 = vmatmul.mubr.msk.bf16.vlgmr.msra.gmra.mrb[124].mxu0 %vm4641_vm12, %v5515_v32 }
 0x4c4   :  { %6416 = vmatprep.mubr.msk.bf16.mxu0 %vm6652_vm11, %v8112_v45  ;;  %6413 = vmatpush3.bf16.msra.mxu0 %v6619_v14 }
 0x4c5   :  { %6414 = vmatprep.subr.bf16.mxu0 %v8112_v45 }
 0x4c8   :  { %6415 = vmatpush3.bf16.msra.mxu0 %v6620_v42 }
 0x4c9   :  { %6420 = vmatprep.subr.bf16.mxu0 %v8112_v45 }
 0x51e   :  { %v4679_v39 = vpop.f32.mrb[64].mxu0 }
 0x51f   :  { %v6320_v49 = vpop.f32.mrb[65].mxu0 }
 0x520   :  { %v4682_v53 = vpop.f32.mrb[66].mxu0 }
 0x521   :  { %v6321_v33 = vpop.f32.mrb[67].mxu0 }
 0x526   :  { %v4734_v36 = vpop.f32.mrb[68].mxu0 }
 0x527   :  { %v4735_v3 = vadd.f32 %v4734_v36, %v4679_v39  ;;  %v6326_v22 = vpop.f32.mrb[69].mxu0 }
 0x528   :  { %v4737_v1 = vpop.f32.mrb[70].mxu0 }
 0x529   :  { %v6327_v11 = vpop.f32.mrb[71].mxu0 }
 0x52e   :  { %v4792_v55 = vpop.f32.mrb[72].mxu0 }
 0x52f   :  { %v4798_v26 = vadd.f32 %v4792_v55, %v4735_v3  ;;  %v6332_v52 = vpop.f32.mrb[73].mxu0 }
 0x530   :  { %v4795_v29 = vpop.f32.mrb[74].mxu0 }
 0x531   :  { %v6333_v19 = vpop.f32.mrb[75].mxu0  ;;  %v5923_v29 = vld [vmem:[%s8324_s6 + $0x2] ss:$0 sm:$0xff] }
 0x536   :  { %v4851_v35 = vpop.f32.mrb[76].mxu0 }
 0x537   :  { %v4857_v41 = vadd.f32 %v4851_v35, %v4798_v26  ;;  %v6338_v48 = vpop.f32.mrb[77].mxu0 }
 0x538   :  { %v4854_v12 = vpop.f32.mrb[78].mxu0 }
 0x539   :  { %v6339_v18 = vpop.f32.mrb[79].mxu0 }
 0x53e   :  { %v4910_v43 = vpop.f32.mrb[80].mxu0 }
 0x53f   :  { %v4916_v20 = vadd.f32 %v4910_v43, %v4857_v41  ;;  %v6344_v58 = vpop.f32.mrb[81].mxu0  ;;  %v6621_v43 = vld [vmem:[%s8323_s5] sm:$0xff]  }
 0x540   :  { %v4913_v30 = vpop.f32.mrb[82].mxu0  ;;  %v5924_v58 = vld [vmem:[%s8324_s6 + $0x3] ss:$0 sm:$0xff] }
 0x541   :  { %v6345_v15 = vpop.f32.mrb[83].mxu0 }
 0x546   :  { %v4969_v61 = vpop.f32.mrb[84].mxu0 }
 0x547   :  { %v4975_v4 = vadd.f32 %v4969_v61, %v4916_v20  ;;  %v6350_v47 = vpop.f32.mrb[85].mxu0 }
 0x548   :  { %v4972_v21 = vpop.f32.mrb[86].mxu0 }
 0x549   :  { %v6351_v17 = vpop.f32.mrb[87].mxu0 }
 0x54e   :  { %v5028_v57 = vpop.f32.mrb[88].mxu0 }
 0x54f   :  { %v5034_v37 = vadd.f32 %v5028_v57, %v4975_v4  ;;  %v6356_v46 = vpop.f32.mrb[89].mxu0  ;;  %v5928_v57 = vld [vmem:[%s8324_s6 + $0x4] ss:$0 sm:$0xff] }
 0x550   :  { %v5031_v2 = vpop.f32.mrb[90].mxu0 }
 0x551   :  { %v6357_v7 = vpop.f32.mrb[91].mxu0 }
 0x556   :  { %v5087_v60 = vpop.f32.mrb[92].mxu0 }
 0x557   :  { %v5093_v13 = vadd.f32 %v5087_v60, %v5034_v37  ;;  %v6362_v27 = vpop.f32.mrb[93].mxu0 }
 0x558   :  { %v5090_v25 = vpop.f32.mrb[94].mxu0 }
 0x559   :  { %v6363_v44 = vpop.f32.mrb[95].mxu0 }
 0x55e   :  { %v5146_v54 = vpop.f32.mrb[96].mxu0 }
 0x55f   :  { %v5152_v50 = vadd.f32 %v5146_v54, %v5093_v13  ;;  %v6368_v62 = vpop.f32.mrb[97].mxu0 }
 0x560   :  { %v5149_v23 = vpop.f32.mrb[98].mxu0 }
 0x561   :  { %v6369_v56 = vpop.f32.mrb[99].mxu0 }
 0x566   :  { %v5205_v31 = vpop.f32.mrb[100].mxu0 }
 0x567   :  { %v5211_v5 = vadd.f32 %v5205_v31, %v5152_v50  ;;  %v6374_v6 = vpop.f32.mrb[101].mxu0 }
 0x568   :  { %v5208_v16 = vpop.f32.mrb[102].mxu0 }
 0x569   :  { %v6375_v28 = vpop.f32.mrb[103].mxu0 }
 0x56e   :  { %v5264_v59 = vpop.f32.mrb[104].mxu0 }
 0x56f   :  { %v5270_v38 = vadd.f32 %v5264_v59, %v5211_v5  ;;  %v6380_v8 = vpop.f32.mrb[105].mxu0 }
 0x570   :  { %v5267_v34 = vpop.f32.mrb[106].mxu0 }
 0x571   :  { %v6381_v40 = vpop.f32.mrb[107].mxu0 }
 0x576   :  { %v5323_v24 = vpop.f32.mrb[108].mxu0 }
 0x577   :  { %v5329_v51 = vadd.f32 %v5323_v24, %v5270_v38  ;;  %v6386_v10 = vpop.f32.mrb[109].mxu0 }
 0x578   :  { %v5326_v9 = vpop.f32.mrb[110].mxu0 }
 0x579   :  { %v6387_v63 = vpop.f32.mrb[111].mxu0 }
 0x57e   :  { %v5382_v0 = vpop.f32.mrb[112].mxu0 }
 0x57f   :  { %v5388_v32 = vadd.f32 %v5382_v0, %v5329_v51  ;;  %v6392_v14 = vpop.f32.mrb[113].mxu0 }
 0x580   :  { %v5385_v39 = vpop.f32.mrb[114].mxu0 }
 0x581   :  { %v6393_v49 = vpop.f32.mrb[115].mxu0 }
 0x586   :  { %v5441_v42 = vpop.f32.mrb[116].mxu0 }
 0x587   :  { %v5447_v53 = vadd.f32 %v5441_v42, %v5388_v32  ;;  %v6398_v33 = vpop.f32.mrb[117].mxu0 }
 0x588   :  { %v5444_v36 = vpop.f32.mrb[118].mxu0 }
 0x589   :  { %v6399_v3 = vpop.f32.mrb[119].mxu0 }
 0x58e   :  { %v5500_v22 = vpop.f32.mrb[120].mxu0 }
 0x58f   :  { %v5506_v1 = vadd.f32 %v5500_v22, %v5447_v53  ;;  %v6404_v11 = vpop.f32.mrb[121].mxu0 }
 0x590   :  { %v5503_v55 = vpop.f32.mrb[122].mxu0 }
 0x591   :  { %v6405_v26 = vpop.f32.mrb[123].mxu0 }
 0x596   :  { %v5559_v52 = vpop.f32.mrb[124].mxu0 }
 0x597   :  { %v5565_v19 = vadd.f32 %v5559_v52, %v5506_v1  ;;  %v6410_v35 = vpop.f32.mrb[125].mxu0 }
 0x598   :  { %v5562_v41 = vpop.f32.mrb[126].mxu0 }
 0x599   :  { %v5571_v48 = vadd.f32 %v5923_v29, %v5565_v19  ;;  %v6411_v12 = vpop.f32.mrb[127].mxu0 }
 0x59b   :  { %v5572_v18 = vmax.f32 %v5571_v48, 0.0 }
 0x59d   :  { %v5573_v20 = vpack.c.bf16 %v5572_v18, %v5572_v18 }
 0x59f   :  { %6417 = vmatmul.mubr.msk.bf16.vlgmr.msra.gmra.mrb[128].mxu0 %vm5595_vm13, %v5573_v20 }
 0x5a0   :  { %6421 = vmatpush3.bf16.msra.mxu0 %v6621_v43  ;;  %6422 = vmatprep.mubr.msk.bf16.mxu0 %vm6652_vm11, %v8112_v45 }
 0x672   :  { %v5633_v30 = vpop.f32.mrb[128].mxu0 }
 0x673   :  { %v5634_v15 = vadd.f32 %v5924_v58, %v5633_v30  ;;  %v6418_v61 = vpop.f32.mrb[129].mxu0 }
 0x674   :  { %v5636_v4 = vpop.f32.mrb[130].mxu0 }
 0x675   :  { %v5639_v47 = vmax.f32 %v5634_v15, 0.0  ;;  %v6419_v21 = vpop.f32.mrb[131].mxu0 }
 0x677   :  { %v5640_v17 = vpack.c.bf16 %v5639_v47, %v5639_v47 }
 0x679   :  { %6423 = vmatmul.mubr.msk.bf16.vlgmr.msra.gmra.mrb[132].mxu0 %vm4641_vm12, %v5640_v17 }
 0x74c   :  { %v5691_v45 = vpop.f32.mrb[132].mxu0 }
 0x74d   :  { %v5692_v37 = vadd.f32 %v5928_v57, %v5691_v45  ;;  %v6424_v46 = vpop.f32.mrb[133].mxu0 }
 0x74e   :  { %v5694_v2 = vpop.f32.mrb[134].mxu0 }
 0x74f   :  { %5697 = vst [vmem:[#allocation3] sm:$0x3] %v5692_v37  ;;  %v6425_v7 = vpop.f32.mrb[135].mxu0 }
 0x750   :  { %6637 = shalt.err (!%p6634_p4)
}
 0x751   :  { %s6638_s6 = scalar_lea.hbm %s8325_s7, 32 }
 0x752   :  { %p6639_p5 = scmp.ne.s32.totalorder %s8325_s7, %s6638_s6  ;;  %p6642_p6 = scmp.lt.u32.totalorder %s6638_s6, %s8325_s7 }
 0x754   :  { %p6644_p7 = pnand %p6642_p6, %p6639_p5 }
 0x756   :  { %6647 = shalt.err (!%p6644_p7)
}
 0x757   :  { %5707 = dma.vmem_to_hbm [thread:$0]  %s5705_s13, 32, %s8325_s7, [#allocation4]  }
 0x758   :  { %6648 = dma.done.wait [#allocation4], 32  }
 0x759   :  { %6649 = vsyncadd [#allocation4], 4294967264 }
 0x75a   :  { %5711 = vsyncpa [#allocation4], 1 }

</bundles_post_ra>
